<compile_context>
chip_gen: v7x
topology: tpu7x:2x2x1
jax: 0.10.0
libtpu: 0.0.40
codegen_flags: <defaults>
</compile_context>

<pallas_src>
import jax
import jax.numpy as jnp
from jax.experimental import pallas as pl
from jax.experimental.pallas import tpu as pltpu

# ---- small shapes consistent with the module ----
BATCH = 2
SEQ = 8
D_MODEL = 128                                   # lane-dense (full 128-lane vreg)
D_FF = int(D_MODEL * 8 / 3 // 64) * 64          # module's default formula -> 320


# ------------------------------- Pallas kernel --------------------------------
def ffn_kernel(x_ref, w1t_ref, w3t_ref, w2t_ref, o_ref):
    x = x_ref[...]                                                        # (N, D)
    a = jnp.dot(x, w1t_ref[...], preferred_element_type=jnp.float32)     # (N, D_FF)
    b = jnp.dot(x, w3t_ref[...], preferred_element_type=jnp.float32)     # (N, D_FF)
    gated = (a * jax.nn.sigmoid(a)) * b                                   # SiLU(a) * b
    o_ref[...] = jnp.dot(gated, w2t_ref[...],
                         preferred_element_type=jnp.float32).astype(o_ref.dtype)


# --------------------------------- wrapper ------------------------------------
def positionwise_feedforward(x, w1, w2, w3):
    """x: (B, S, d_model) f32.  w1/w3: (d_ff, d_model), w2: (d_model, d_ff)
    in PyTorch Linear layout (out_features, in_features), no bias."""
    B, S, D = x.shape
    d_ff = w1.shape[0]
    n = B * S

    x2d = x.reshape(n, D)          # fold batch+seq: one invocation, no batch grid
    w1t = w1.T                     # (D, d_ff)  so kernel computes x @ W.T
    w3t = w3.T                     # (D, d_ff)
    w2t = w2.T                     # (d_ff, D)

    vmem = lambda: pl.BlockSpec(memory_space=pltpu.MemorySpace.VMEM)

    out2d = pl.pallas_call(
        ffn_kernel,
        out_shape=jax.ShapeDtypeStruct((n, D), x.dtype),
        in_specs=[vmem(), vmem(), vmem(), vmem()],   # whole arrays resident in VMEM
        out_specs=vmem(),
    )(x2d, w1t, w3t, w2t)
    return out2d.reshape(B, S, D)


# ------------------------------ pure-JAX reference -----------------------------
def reference(x, w1, w2, w3):
    a = x @ w1.T
    o1 = a * jax.nn.sigmoid(a)
    o3 = x @ w3.T
    return (o1 * o3) @ w2.T


# ------------------------- parameter construction ------------------------------
def make_params(key):
    k1, k2, k3 = jax.random.split(key, 3)

    def linear_weight(k, d_in, d_out):
        std = (2.0 / (d_in + d_out)) ** 0.5
        return std * jax.random.normal(k, (d_out, d_in), jnp.float32)

    w1 = linear_weight(k1, D_MODEL, D_FF)   # (d_ff, d_model)
    w2 = linear_weight(k2, D_FF, D_MODEL)   # (d_model, d_ff)
    w3 = linear_weight(k3, D_MODEL, D_FF)   # (d_ff, d_model)
    return w1, w2, w3


if __name__ == "__main__":
    # keep the pure-JAX reference matmuls in full f32 so it matches the kernel's
    # f32-accumulating MXU path
    jax.config.update("jax_default_matmul_precision", "highest")

    key = jax.random.PRNGKey(0)
    kx, kp = jax.random.split(key)
    x = jax.random.normal(kx, (BATCH, SEQ, D_MODEL), jnp.float32)
    w1, w2, w3 = make_params(kp)

    out = positionwise_feedforward(x, w1, w2, w3)
    out = jax.block_until_ready(out)

    ref = reference(x, w1, w2, w3)
    assert out.shape == (BATCH, SEQ, D_MODEL)
    assert jnp.allclose(out, ref, atol=2e-3, rtol=2e-3), "mismatch vs JAX reference"

    print("KERNEL_OK")
</pallas_src>

<mosaic_0001>
module attributes {stable_mosaic.version = 11 : i64} {
  func.func @ffn_kernel(%arg0: memref<16x128xf32, #tpu.memory_space<vmem>>, %arg1: memref<128x320xf32, #tpu.memory_space<vmem>>, %arg2: memref<128x320xf32, #tpu.memory_space<vmem>>, %arg3: memref<320x128xf32, #tpu.memory_space<vmem>>, %arg4: memref<16x128xf32, #tpu.memory_space<vmem>>) attributes {dimension_semantics = [], scalar_prefetch = 0 : i64, scratch_operands = 0 : i64, tpu.core_type = #tpu.core_type<tc>} {
    %c0 = arith.constant 0 : index
    %c0_0 = arith.constant 0 : index
    %0 = vector.load %arg0[%c0, %c0_0] : memref<16x128xf32, #tpu.memory_space<vmem>>, vector<16x128xf32>
    %c0_1 = arith.constant 0 : index
    %c0_2 = arith.constant 0 : index
    %1 = vector.load %arg1[%c0_1, %c0_2] : memref<128x320xf32, #tpu.memory_space<vmem>>, vector<128x320xf32>
    %cst = arith.constant dense<0.000000e+00> : vector<16x320xf32>
    %2 = tpu.matmul %0, %1, %cst {dimension_numbers = #tpu.dot_dimension_numbers<[1], [0], [0], [1], [0, 0, 1, 1], [], []>, precision = #tpu.contract_precision<fp32>} : vector<16x128xf32>, vector<128x320xf32>, vector<16x320xf32> -> vector<16x320xf32>
    %c0_3 = arith.constant 0 : index
    %c0_4 = arith.constant 0 : index
    %3 = vector.load %arg2[%c0_3, %c0_4] : memref<128x320xf32, #tpu.memory_space<vmem>>, vector<128x320xf32>
    %cst_5 = arith.constant dense<0.000000e+00> : vector<16x320xf32>
    %4 = tpu.matmul %0, %3, %cst_5 {dimension_numbers = #tpu.dot_dimension_numbers<[1], [0], [0], [1], [0, 0, 1, 1], [], []>, precision = #tpu.contract_precision<fp32>} : vector<16x128xf32>, vector<128x320xf32>, vector<16x320xf32> -> vector<16x320xf32>
    %5 = arith.negf %2 : vector<16x320xf32>
    %6 = math.exp %5 : vector<16x320xf32>
    %cst_6 = arith.constant 1.000000e+00 : f32
    %7 = vector.broadcast %cst_6 : f32 to vector<16x320xf32>
    %8 = arith.addf %7, %6 : vector<16x320xf32>
    %9 = arith.divf %7, %8 : vector<16x320xf32>
    %10 = arith.mulf %2, %9 : vector<16x320xf32>
    %11 = arith.mulf %10, %4 : vector<16x320xf32>
    %c0_7 = arith.constant 0 : index
    %c0_8 = arith.constant 0 : index
    %12 = vector.load %arg3[%c0_7, %c0_8] : memref<320x128xf32, #tpu.memory_space<vmem>>, vector<320x128xf32>
    %cst_9 = arith.constant dense<0.000000e+00> : vector<16x128xf32>
    %13 = tpu.matmul %11, %12, %cst_9 {dimension_numbers = #tpu.dot_dimension_numbers<[1], [0], [0], [1], [0, 0, 1, 1], [], []>, precision = #tpu.contract_precision<fp32>} : vector<16x320xf32>, vector<320x128xf32>, vector<16x128xf32> -> vector<16x128xf32>
    %c0_10 = arith.constant 0 : index
    %c0_11 = arith.constant 0 : index
    %14 = vector.load %arg4[%c0_10, %c0_11] : memref<16x128xf32, #tpu.memory_space<vmem>>, vector<16x128xf32>
    tpu.vector_store %arg4[%c0_10, %c0_11], %13 {strides = array<i32>} : memref<16x128xf32, #tpu.memory_space<vmem>>, vector<16x128xf32>,
    return
  }
}

</mosaic_0001>

<bundles_post_ra>
// kernel: tpu_custom_call.1
= control target key start
LH: loop header
LB: loop body
LE: loop exit
PB: predicated region body
PF: predicated region fallthrough
CT: control target
= control target key end

     0   :  { %v10104_v9 = vmov 0.0   ;;  %s10077_s0 = inlined_call_operand.vmem [shape: f32[16,128], index: 0, kind: input, shape index: {}]   ;;  %s10078_s1 = inlined_call_operand.vmem [shape: f32[128,320], index: 1, kind: input, shape index: {}]   ;;  %s10079_s2 = inlined_call_operand.vmem [shape: f32[128,320], index: 2, kind: input, shape index: {}]   ;;  %s10080_s3 = inlined_call_operand.vmem [shape: f32[320,128], index: 3, kind: input, shape index: {}]   ;;  %s10081_s4 = inlined_call_operand.hbm [shape: f32[16,128], index: 4, kind: output, shape index: {}]  }
   0x1   :  { %v21_v0 = vld [vmem:[%s10078_s1 + $0x8] sm:$0xff]  ;;  %v24_v1 = vld [vmem:[%s10078_s1 + $0x20] sm:$0xff]  ;;  %v23_v5 = vld [vmem:[%s10078_s1 + $0x18] sm:$0xff]  ;;  %164 = vmatprep.mubr.f32.mxu1 %v10104_v9  ;;  %411 = vmatprep.mubr.f32.mxu0 %v10104_v9 }
   0x2   :  { %v20_v2 = vld [vmem:[%s10078_s1] sm:$0xff]  ;;  %v68_v3 = vand.u32 4294901760, %v21_v0  ;;  %v72_v4 = vand.u32 4294901760, %v24_v1  ;;  %v27_v7 = vld [vmem:[%s10078_s1 + $0x38] sm:$0xff]  ;;  %v30_v8 = vld [vmem:[%s10078_s1 + $0x50] sm:$0xff]  ;;  %v74_v10 = vand.u32 4294901760, %v23_v5 }
   0x3   :  { %v70_v6 = vand.u32 4294901760, %v20_v2  ;;  %v76_v11 = vand.u32 4294901760, %v27_v7  ;;  %v80_v12 = vand.u32 4294901760, %v30_v8  ;;  %v26_v13 = vld [vmem:[%s10078_s1 + $0x30] sm:$0xff]  ;;  %v29_v14 = vld [vmem:[%s10078_s1 + $0x48] sm:$0xff]  ;;  %v36_v20 = vld [vmem:[%s10078_s1 + $0x80] sm:$0xff] }
   0x4   :  { %v7182_v15 = vpack.c.bf16 %v72_v4, %v68_v3  ;;  %v78_v17 = vand.u32 4294901760, %v26_v13  ;;  %v82_v18 = vand.u32 4294901760, %v29_v14  ;;  %v33_v19 = vld [vmem:[%s10078_s1 + $0x68] sm:$0xff]  ;;  %v7194_v22 = vsub.f32 %v23_v5, %v74_v10  ;;  %v32_v25 = vld [vmem:[%s10078_s1 + $0x60] sm:$0xff]  ;;  %v35_v26 = vld [vmem:[%s10078_s1 + $0x78] sm:$0xff] }
   0x5   :  { %v7184_v16 = vsub.f32 %v20_v2, %v70_v6  ;;  %v7192_v21 = vpack.c.bf16 %v74_v10, %v70_v6  ;;  %v7196_v23 = vpack.c.bf16 %v80_v12, %v76_v11  ;;  %v7198_v24 = vsub.f32 %v27_v7, %v76_v11  ;;  %v39_v39 = vld [vmem:[%s10078_s1 + $0x98] sm:$0xff]  ;;  %v42_v44 = vld [vmem:[%s10078_s1 + $0xb0] sm:$0xff]  ;;  %v41_v58 = vld [vmem:[%s10078_s1 + $0xa8] sm:$0xff] }
   0x6   :  { %10352 = vst [vmem:[#allocation5_spill] sm:$0xff] %v7182_v15  ;;  %10355 = vst [vmem:[#allocation8_spill] sm:$0xff] %v7194_v22  ;;  %5948 = vmatprep.subr.bf16.mxu1 %v7182_v15  ;;  %v7207_v27 = vsub.f32 %v30_v8, %v80_v12  ;;  %v7209_v28 = vpack.c.bf16 %v82_v18, %v78_v17  ;;  %v7211_v29 = vsub.f32 %v26_v13, %v78_v17  ;;  %v38_v57 = vld [vmem:[%s10078_s1 + $0x90] sm:$0xff]  ;;  %v45_v7 = vld [vmem:[%s10078_s1 + $0xc8] sm:$0xff] }
   0x7   :  { %10353 = vst [vmem:[#allocation6_spill] sm:$0xff] %v7184_v16  ;;  %10354 = vst [vmem:[#allocation7_spill] sm:$0xff] %v7192_v21  ;;  %v7213_v30 = vsub.f32 %v29_v14, %v82_v18  ;;  %5950 = vmatpush1.bf16.msra.mxu1 %v7192_v21  ;;  %v84_v31 = vand.u32 4294901760, %v33_v19  ;;  %v88_v32 = vand.u32 4294901760, %v36_v20  ;;  %v7216_v33 = vsub.f32 %v21_v0, %v68_v3  ;;  %v48_v8 = vld [vmem:[%s10078_s1 + $0xe0] sm:$0xff] }
   0x8   :  { %10356 = vst [vmem:[#allocation9_spill] sm:$0xff] %v7196_v23  ;;  %10357 = vst [vmem:[#allocation10_spill] sm:$0xff] %v7198_v24  ;;  %v7218_v34 = vsub.f32 %v24_v1, %v72_v4  ;;  %5952 = vmatprep.subr.bf16.mxu1 %v7196_v23  ;;  %v86_v35 = vand.u32 4294901760, %v32_v25  ;;  %v90_v36 = vand.u32 4294901760, %v35_v26  ;;  %v10085_v37 = vand.u32 4294901760, %v7184_v16  ;;  %v44_v14 = vld [vmem:[%s10078_s1 + $0xc0] sm:$0xff] }
   0x9   :  { %10358 = vst [vmem:[#allocation11_spill] sm:$0xff] %v7207_v27  ;;  %10359 = vst [vmem:[#allocation12_spill] sm:$0xff] %v7209_v28  ;;  %v10084_v38 = vand.u32 4294901760, %v7194_v22  ;;  %v7226_v40 = vpack.c.bf16 %v88_v32, %v84_v31  ;;  %v7228_v41 = vsub.f32 %v33_v19, %v84_v31  ;;  %v7230_v42 = vsub.f32 %v36_v20, %v88_v32 }
   0xa   :  { %10360 = vst [vmem:[#allocation13_spill] sm:$0xff] %v7216_v33  ;;  %10361 = vst [vmem:[#allocation14_spill] sm:$0xff] %v7218_v34  ;;  %v10087_v43 = vand.u32 4294901760, %v7216_v33  ;;  %v10086_v45 = vand.u32 4294901760, %v7218_v34  ;;  %v7237_v46 = vpack.c.bf16 %v90_v36, %v86_v35  ;;  %v7239_v47 = vsub.f32 %v32_v25, %v86_v35  ;;  %v47_v35 = vld [vmem:[%s10078_s1 + $0xd8] sm:$0xff] }
   0xb   :  { %10362 = vst [vmem:[#allocation15_spill] sm:$0xff] %v7226_v40  ;;  %v7241_v48 = vsub.f32 %v35_v26, %v90_v36  ;;  %5954 = vmatpush1.bf16.msra.mxu1 %v7209_v28  ;;  %v196_v50 = vsub.f32 %v7184_v16, %v10085_v37  ;;  %v208_v51 = vsub.f32 %v7194_v22, %v10084_v38  ;;  %v92_v52 = vand.u32 4294901760, %v39_v39 }
   0xc   :  { %10363 = vst [vmem:[#allocation16_spill] sm:$0xff] %v7237_v46  ;;  %v190_v49 = vsub.f32 %v7216_v33, %v10087_v43  ;;  %5956 = vmatprep.subr.bf16.mxu1 %v7226_v40  ;;  %v202_v53 = vsub.f32 %v7218_v34, %v10086_v45  ;;  %v96_v54 = vand.u32 4294901760, %v42_v44  ;;  %v10083_v55 = vand.u32 4294901760, %v7198_v24 }
   0xd   :  { %v10082_v56 = vand.u32 4294901760, %v7207_v27  ;;  %v197_v60 = vand.u32 4294901760, %v196_v50  ;;  %v209_v61 = vand.u32 4294901760, %v208_v51  ;;  %v7265_v62 = vsub.f32 %v39_v39, %v92_v52 }
   0xe   :  { %v191_v59 = vand.u32 4294901760, %v190_v49  ;;  %v203_v63 = vand.u32 4294901760, %v202_v53  ;;  %v7267_v0 = vpack.c.bf16 %v96_v54, %v92_v52  ;;  %v7269_v1 = vsub.f32 %v42_v44, %v96_v54 }
   0xf   :  { %v214_v2 = vsub.f32 %v7198_v24, %v10083_v55  ;;  %5958 = vmatpush1.bf16.msra.mxu1 %v7237_v46  ;;  %v5981_v3 = vpack.c.bf16 %v209_v61, %v197_v60  ;;  %v226_v4 = vsub.f32 %v7207_v27, %v10082_v56  ;;  %v94_v5 = vand.u32 4294901760, %v38_v57 }
  0x10   :  { %10364 = vst [vmem:[#allocation17_spill] sm:$0xff] %v7267_v0  ;;  %v98_v6 = vand.u32 4294901760, %v41_v58  ;;  %v5979_v10 = vpack.c.bf16 %v203_v63, %v191_v59  ;;  %5960 = vmatprep.subr.bf16.mxu1 %v7267_v0  ;;  %v10101_v12 = vand.u32 4294901760, %v7211_v29  ;;  %v10100_v13 = vand.u32 4294901760, %v7213_v30 }
  0x11   :  { %v215_v11 = vand.u32 4294901760, %v214_v2  ;;  %v227_v17 = vand.u32 4294901760, %v226_v4  ;;  %v7292_v19 = vsub.f32 %v38_v57, %v94_v5  ;;  %v100_v31 = vand.u32 4294901760, %v45_v7 }
  0x12   :  { %v7290_v18 = vpack.c.bf16 %v98_v6, %v94_v5  ;;  %v7294_v20 = vsub.f32 %v41_v58, %v98_v6  ;;  %5980 = vmatprep.subr.bf16.mxu0 %v5979_v10  ;;  %v220_v25 = vsub.f32 %v7211_v29, %v10101_v12  ;;  %v232_v26 = vsub.f32 %v7213_v30, %v10100_v13 }
  0x13   :  { %v104_v32 = vand.u32 4294901760, %v48_v8 }
  0x14   :  { %10365 = vst [vmem:[#allocation18_spill] sm:$0xff] %v7290_v18 }
  0x15   :  { %9 = vsyncpa [#allocation3], 0  ;;  %5982 = vmatpush1.bf16.msra.mxu0 %v5981_v3  ;;  %v5983_v36 = vpack.c.bf16 %v227_v17, %v215_v11  ;;  %5962 = vmatpush1.bf16.msra.mxu1 %v7290_v18  ;;  %v10098_v39 = vand.u32 4294901760, %v7228_v41  ;;  %v10097_v44 = vand.u32 4294901760, %v7230_v42  ;;  %v102_v49 = vand.u32 4294901760, %v44_v14  ;;  %v51_v60 = vld [vmem:[%s10078_s1 + $0xf8] sm:$0xff] }
  0x16   :  { %v221_v50 = vand.u32 4294901760, %v220_v25  ;;  %v233_v51 = vand.u32 4294901760, %v232_v26  ;;  %v7308_v52 = vpack.c.bf16 %v104_v32, %v100_v31  ;;  %v7310_v53 = vsub.f32 %v45_v7, %v100_v31  ;;  %v54_v61 = vld [vmem:[%s10078_s1 + $0x110] sm:$0xff]  ;;  %v53_v26 = vld [vmem:[%s10078_s1 + $0x108] sm:$0xff] }
  0x17   :  { %5984 = vmatprep.subr.bf16.mxu0 %v5983_v36  ;;  %v7312_v54 = vsub.f32 %v48_v8, %v104_v32  ;;  %v238_v57 = vsub.f32 %v7228_v41, %v10098_v39  ;;  %v250_v58 = vsub.f32 %v7230_v42, %v10097_v44  ;;  %v106_v59 = vand.u32 4294901760, %v47_v35  ;;  %v50_v5 = vld [vmem:[%s10078_s1 + $0xf0] sm:$0xff] }
  0x18   :  { %10366 = vst [vmem:[#allocation19_spill] sm:$0xff] %v7308_v52  ;;  %v5985_v63 = vpack.c.bf16 %v233_v51, %v221_v50  ;;  %5964 = vmatprep.subr.bf16.mxu1 %v7308_v52  ;;  %v7327_v2 = vsub.f32 %v44_v14, %v102_v49  ;;  %v10095_v3 = vand.u32 4294901760, %v7239_v47  ;;  %v10094_v4 = vand.u32 4294901760, %v7241_v48 }
  0x19   :  { %v239_v6 = vand.u32 4294901760, %v238_v57  ;;  %v251_v7 = vand.u32 4294901760, %v250_v58  ;;  %v7334_v8 = vpack.c.bf16 %v106_v59, %v102_v49  ;;  %v7336_v10 = vsub.f32 %v47_v35, %v106_v59 }
  0x1a   :  { %5986 = vmatpush1.bf16.msra.mxu0 %v5985_v63  ;;  %v244_v11 = vsub.f32 %v7239_v47, %v10095_v3  ;;  %v256_v14 = vsub.f32 %v7241_v48, %v10094_v4  ;;  %v108_v17 = vand.u32 4294901760, %v51_v60  ;;  %v112_v25 = vand.u32 4294901760, %v54_v61 }
  0x1b   :  { %10367 = vst [vmem:[#allocation20_spill] sm:$0xff] %v7334_v8  ;;  %v5987_v31 = vpack.c.bf16 %v251_v7, %v239_v6  ;;  %5966 = vmatpush1.bf16.msra.mxu1 %v7334_v8  ;;  %v10093_v32 = vand.u32 4294901760, %v7265_v62  ;;  %v10090_v35 = vand.u32 4294901760, %v7269_v1  ;;  %v110_v36 = vand.u32 4294901760, %v50_v5  ;;  %v57_v7 = vld [vmem:[%s10078_s1 + $0x128] sm:$0xff] }
  0x1c   :  { %v245_v49 = vand.u32 4294901760, %v244_v11  ;;  %v257_v50 = vand.u32 4294901760, %v256_v14  ;;  %v7350_v51 = vpack.c.bf16 %v112_v25, %v108_v17  ;;  %v7352_v57 = vsub.f32 %v51_v60, %v108_v17  ;;  %v60_v60 = vld [vmem:[%s10078_s1 + $0x140] sm:$0xff] }
  0x1d   :  { %5988 = vmatprep.subr.bf16.mxu0 %v5987_v31  ;;  %v7354_v58 = vsub.f32 %v54_v61, %v112_v25  ;;  %v262_v59 = vsub.f32 %v7265_v62, %v10093_v32  ;;  %v274_v63 = vsub.f32 %v7269_v1, %v10090_v35  ;;  %v114_v6 = vand.u32 4294901760, %v53_v26  ;;  %v56_v25 = vld [vmem:[%s10078_s1 + $0x120] sm:$0xff] }
  0x1e   :  { %10368 = vst [vmem:[#allocation21_spill] sm:$0xff] %v7350_v51  ;;  %v5989_v11 = vpack.c.bf16 %v257_v50, %v245_v49  ;;  %5968 = vmatprep.subr.bf16.mxu1 %v7350_v51  ;;  %v7369_v61 = vsub.f32 %v50_v5, %v110_v36  ;;  %v10088_v14 = vand.u32 4294901760, %v7292_v19  ;;  %v10089_v17 = vand.u32 4294901760, %v7294_v20 }
  0x1f   :  { %v263_v31 = vand.u32 4294901760, %v262_v59  ;;  %v275_v56 = vand.u32 4294901760, %v274_v63  ;;  %v7376_v55 = vpack.c.bf16 %v114_v6, %v110_v36  ;;  %v7378_v38 = vsub.f32 %v53_v26, %v114_v6  ;;  %v59_v59 = vld [vmem:[%s10078_s1 + $0x138] sm:$0xff] }
  0x20   :  { %5990 = vmatpush1.bf16.msra.mxu0 %v5989_v11  ;;  %v268_v5 = vsub.f32 %v7292_v19, %v10088_v14  ;;  %v280_v49 = vsub.f32 %v7294_v20, %v10089_v17  ;;  %v116_v50 = vand.u32 4294901760, %v57_v7  ;;  %v120_v37 = vand.u32 4294901760, %v60_v60 }
  0x21   :  { %10369 = vst [vmem:[#allocation22_spill] sm:$0xff] %v7376_v55  ;;  %v5991_v63 = vpack.c.bf16 %v275_v56, %v263_v31  ;;  %5970 = vmatpush1.bf16.msra.mxu1 %v7376_v55  ;;  %v10092_v26 = vand.u32 4294901760, %v7310_v53  ;;  %v10091_v36 = vand.u32 4294901760, %v7312_v54  ;;  %v118_v6 = vand.u32 4294901760, %v56_v25 }
  0x22   :  { %v269_v11 = vand.u32 4294901760, %v268_v5  ;;  %v281_v45 = vand.u32 4294901760, %v280_v49  ;;  %v7392_v43 = vpack.c.bf16 %v120_v37, %v116_v50  ;;  %v7394_v14 = vsub.f32 %v57_v7, %v116_v50  ;;  %v63_v5 = vld [vmem:[%s10078_s1 + $0x158] sm:$0xff]  ;;  %v66_v7 = vld [vmem:[%s10078_s1 + $0x170] sm:$0xff] }
  0x23   :  { %5992 = vmatprep.subr.bf16.mxu0 %v5991_v63  ;;  %v7396_v17 = vsub.f32 %v60_v60, %v120_v37  ;;  %v286_v56 = vsub.f32 %v7310_v53, %v10092_v26  ;;  %v298_v31 = vsub.f32 %v7312_v54, %v10091_v36  ;;  %v122_v35 = vand.u32 4294901760, %v59_v59  ;;  %v62_v63 = vld [vmem:[%s10078_s1 + $0x150] sm:$0xff] }
  0x24   :  { %10370 = vst [vmem:[#allocation23_spill] sm:$0xff] %v7392_v43  ;;  %v5993_v49 = vpack.c.bf16 %v281_v45, %v269_v11  ;;  %5972 = vmatprep.subr.bf16.mxu1 %v7392_v43  ;;  %v7411_v37 = vsub.f32 %v56_v25, %v118_v6  ;;  %v10096_v60 = vand.u32 4294901760, %v7327_v2  ;;  %v10099_v50 = vand.u32 4294901760, %v7336_v10 }
  0x25   :  { %v287_v36 = vand.u32 4294901760, %v286_v56  ;;  %v299_v26 = vand.u32 4294901760, %v298_v31  ;;  %v7418_v32 = vpack.c.bf16 %v122_v35, %v118_v6  ;;  %v7420_v4 = vsub.f32 %v59_v59, %v122_v35  ;;  %v65_v56 = vld [vmem:[%s10078_s1 + $0x168] sm:$0xff] }
  0x26   :  { %5994 = vmatpush1.bf16.msra.mxu0 %v5993_v49  ;;  %v292_v45 = vsub.f32 %v7327_v2, %v10096_v60  ;;  %v304_v25 = vsub.f32 %v7336_v10, %v10099_v50  ;;  %v124_v11 = vand.u32 4294901760, %v63_v5  ;;  %v128_v3 = vand.u32 4294901760, %v66_v7 }
  0x27   :  { %10371 = vst [vmem:[#allocation24_spill] sm:$0xff] %v7418_v32  ;;  %v5995_v31 = vpack.c.bf16 %v299_v26, %v287_v36  ;;  %5974 = vmatpush1.bf16.msra.mxu1 %v7418_v32  ;;  %v10103_v35 = vand.u32 4294901760, %v7352_v57  ;;  %v10102_v59 = vand.u32 4294901760, %v7354_v58  ;;  %v126_v6 = vand.u32 4294901760, %v62_v63 }
  0x28   :  { %v293_v49 = vand.u32 4294901760, %v292_v45  ;;  %v305_v60 = vand.u32 4294901760, %v304_v25  ;;  %v7434_v44 = vpack.c.bf16 %v128_v3, %v124_v11  ;;  %v7436_v39 = vsub.f32 %v63_v5, %v124_v11 }
  0x29   :  { %5996 = vmatprep.subr.bf16.mxu0 %v5995_v31  ;;  %v7438_v50 = vsub.f32 %v66_v7, %v128_v3  ;;  %v310_v26 = vsub.f32 %v7352_v57, %v10103_v35  ;;  %v322_v36 = vsub.f32 %v7354_v58, %v10102_v59  ;;  %v130_v13 = vand.u32 4294901760, %v65_v56  ;;  %v7454_v3 = vld [vmem:[%s10078_s1 + $0x10] sm:$0xff]  ;;  %v7459_v7 = vld [vmem:[%s10078_s1 + $0x28] sm:$0xff] }
  0x2a   :  { %10372 = vst [vmem:[#allocation25_spill] sm:$0xff] %v7434_v44  ;;  %v5997_v12 = vpack.c.bf16 %v305_v60, %v293_v49  ;;  %5976 = vmatprep.subr.bf16.mxu1 %v7434_v44  ;;  %v7447_v45 = vsub.f32 %v62_v63, %v126_v6  ;;  %v10113_v5 = vand.u32 4294901760, %v7369_v61  ;;  %v10110_v25 = vand.u32 4294901760, %v7378_v38  ;;  %v18_v60 = vld [vmem:[%s10077_s0] sm:$0xff] }
  0x2b   :  { %v311_v63 = vand.u32 4294901760, %v310_v26  ;;  %v323_v11 = vand.u32 4294901760, %v322_v36  ;;  %v7464_v31 = vpack.c.bf16 %v130_v13, %v126_v6  ;;  %v7466_v49 = vsub.f32 %v65_v56, %v130_v13 }
  0x2c   :  { %5998 = vmatpush1.bf16.msra.mxu0 %v5997_v12  ;;  %v316_v59 = vsub.f32 %v7369_v61, %v10113_v5  ;;  %v328_v35 = vsub.f32 %v7378_v38, %v10110_v25  ;;  %v10111_v9 = vand.u32 4294901760, %v7394_v14  ;;  %v10112_v44 = vand.u32 4294901760, %v7396_v17 }
  0x2d   :  { %10373 = vst [vmem:[#allocation26_spill] sm:$0xff] %v7464_v31  ;;  %v5999_v32 = vpack.c.bf16 %v323_v11, %v311_v63  ;;  %5978 = vmatpush1.bf16.msra.mxu1 %v7464_v31  ;;  %v10115_v6 = vand.u32 4294901760, %v7454_v3  ;;  %v10114_v13 = vand.u32 4294901760, %v7459_v7  ;;  %v7479_v12 = vand.u32 4294901760, %v18_v60 }
  0x2e   :  { %v317_v56 = vand.u32 4294901760, %v316_v59  ;;  %v329_v26 = vand.u32 4294901760, %v328_v35  ;;  %v334_v36 = vsub.f32 %v7394_v14, %v10111_v9  ;;  %v346_v25 = vsub.f32 %v7396_v17, %v10112_v44  ;;  %v7501_v9 = vld [vmem:[%s10078_s1 + $0x40] sm:$0xff] }
  0x2f   :  { %6000 = vmatprep.subr.bf16.mxu0 %v5999_v32  ;;  %v7491_v63 = vpack.c.bf16 %v10114_v13, %v10115_v6  ;;  %v7494_v11 = vsub.f32 %v18_v60, %v7479_v12  ;;  %v10124_v35 = vand.u32 4294901760, %v7411_v37  ;;  %v7506_v32 = vld [vmem:[%s10078_s1 + $0x58] sm:$0xff]  ;;  %v10127_v60 = vand.u32 4294901760, %v7436_v39 }
  0x30   :  { %v6001_v44 = vpack.c.bf16 %v329_v26, %v317_v56  ;;  %v335_v5 = vand.u32 4294901760, %v334_v36  ;;  %v347_v13 = vand.u32 4294901760, %v346_v25  ;;  %v10377_v31 = vand.u32 4294901760, %v7420_v4 }
  0x31   :  { %10374 = vst [vmem:[#allocation27_spill] sm:$0xff] %v7491_v63  ;;  %10375 = vst [vmem:[#allocation28_spill] sm:$0xff] %v7494_v11  ;;  %6140 = vmatprep.subr.bf16.mxu1 %v7491_v63  ;;  %v7511_v6 = vand.u32 4294901760, %v7494_v11  ;;  %v340_v59 = vsub.f32 %v7411_v37, %v10124_v35  ;;  %v10128_v55 = vand.u32 4294901760, %v7438_v50  ;;  %v358_v25 = vsub.f32 %v7436_v39, %v10127_v60 }
  0x32   :  { %v352_v43 = vsub.f32 %v7420_v4, %v10377_v31  ;;  %6002 = vmatpush1.bf16.msra.mxu0 %v6001_v44  ;;  %v6003_v56 = vpack.c.bf16 %v347_v13, %v335_v5  ;;  %v10137_v26 = vand.u32 4294901760, %v7501_v9  ;;  %v7533_v44 = vld [vmem:[%s10078_s1 + $0x70] sm:$0xff]  ;;  %v7538_v5 = vld [vmem:[%s10078_s1 + $0x88] sm:$0xff]  ;;  %v10136_v60 = vand.u32 4294901760, %v7447_v45 }
  0x33   :  { %10376 = vst [vmem:[#allocation29_spill] sm:$0xff] %v7511_v6  ;;  %v168_v51 = vsub.f32 %v7494_v11, %v7511_v6  ;;  %v341_v35 = vand.u32 4294901760, %v340_v59  ;;  %v370_v31 = vsub.f32 %v7438_v50, %v10128_v55  ;;  %v359_v13 = vand.u32 4294901760, %v358_v25 }
  0x34   :  { %v353_v8 = vand.u32 4294901760, %v352_v43  ;;  %6004 = vmatprep.subr.bf16.mxu0 %v6003_v56  ;;  %v10135_v43 = vand.u32 4294901760, %v7466_v49  ;;  %v10379_v6 = vand.u32 4294901760, %v7506_v32  ;;  %v364_v18 = vsub.f32 %v7447_v45, %v10136_v60 }
  0x35   :  { %v7542_v59 = vand.u32 4294901760, %v168_v51  ;;  %v371_v55 = vand.u32 4294901760, %v370_v31  ;;  %v985_v25 = vand.u32 4294901760, %v7533_v44  ;;  %v988_v51 = vand.u32 4294901760, %v7538_v5 }
  0x36   :  { %v6005_v36 = vpack.c.bf16 %v353_v8, %v341_v35  ;;  %v7548_v52 = vpack.c.bf16 %v10379_v6, %v10137_v26  ;;  %v376_v56 = vsub.f32 %v7466_v49, %v10135_v43  ;;  %v7561_v8 = vld [vmem:[%s10078_s1 + $0xa0] sm:$0xff]  ;;  %v7566_v6 = vld [vmem:[%s10078_s1 + $0xb8] sm:$0xff]  ;;  %v365_v31 = vand.u32 4294901760, %v364_v18  ;;  %v7586_v18 = vld [vmem:[%s10078_s1 + $0xe8] sm:$0xff] }
  0x37   :  { %10378 = vst [vmem:[#allocation30_spill] sm:$0xff] %v7542_v59  ;;  %170 = vmatmul.mubr.f32.vlgmr.msra.gmra.mrb[0].mxu1 %v7542_v59  ;;  %v6007_v35 = vpack.c.bf16 %v371_v55, %v359_v13  ;;  %v10381_v60 = vmov 0.0   ;;  %v6011_v26 = vpack.c.bf16 %v7218_v34, %v7216_v33  ;;  %v7574_v0 = vpack.c.bf16 %v988_v51, %v985_v25  ;;  %v7581_v55 = vld [vmem:[%s10078_s1 + $0xd0] sm:$0xff]  ;;  %v19_v13 = vld [vmem:[%s10077_s0 + $0x8] sm:$0xff] }
  0x38   :  { %10380 = vst [vmem:[#allocation31_spill] sm:$0xff] %v7548_v52  ;;  %6006 = vmatpush1.bf16.msra.mxu0 %v6005_v36  ;;  %6142 = vmatpush3.bf16.msra.mxu1 %v7491_v63  ;;  %v377_v43 = vand.u32 4294901760, %v376_v56  ;;  %v10146_v46 = vand.u32 4294901760, %v7561_v8  ;;  %v6013_v56 = vpack.c.bf16 %v7194_v22, %v7184_v16  ;;  %v7615_v40 = vand.u32 4294901760, %v19_v13 }
  0x39   :  { %175 = vmatprep.mubr.f32.mxu1 %v10381_v60  ;;  %6008 = vmatprep.subr.bf16.mxu0 %v6007_v35  ;;  %10382 = vst [vmem:[#allocation32_spill] sm:$0xff] %v7574_v0  ;;  %v6017_v35 = vpack.c.bf16 %v7213_v30, %v7211_v29  ;;  %v10387_v63 = vand.u32 4294901760, %v7586_v18  ;;  %v10393_v16 = vand.u32 4294901760, %v7501_v9  ;;  %v10394_v33 = vand.u32 4294901760, %v7506_v32 }
  0x3a   :  { %6144 = vmatprep.subr.bf16.mxu1 %v7548_v52  ;;  %v6009_v36 = vpack.c.bf16 %v377_v43, %v365_v31  ;;  %v6015_v43 = vpack.c.bf16 %v7207_v27, %v7198_v24  ;;  %v10383_v31 = vand.u32 4294901760, %v7566_v6  ;;  %10385 = vst [vmem:[#allocation34_spill] sm:$0xff] %v7615_v40  ;;  %v7630_v24 = vsub.f32 %v19_v13, %v7615_v40 }
  0x3b   :  { %v7662_v34 = vsub.f32 %v7501_v9, %v10393_v16  ;;  %v6021_v9 = vpack.c.bf16 %v7241_v48, %v7239_v47  ;;  %v6025_v16 = vpack.c.bf16 %v7294_v20, %v7292_v19  ;;  %vm3380_vm0 = vcmask 523264  }
  0x3c   :  { %6010 = vmatpush1.bf16.msra.mxu0 %v6009_v36  ;;  %6146 = vmatpush3.bf16.msra.mxu1 %v7548_v52  ;;  %v7603_v36 = vpack.c.bf16 %v10383_v31, %v10146_v46  ;;  %v7608_v52 = vld [vmem:[%s10078_s1 + $0x100] sm:$0xff]  ;;  %v6019_v31 = vpack.c.bf16 %v7230_v42, %v7228_v41  ;;  %v10386_v46 = vand.u32 4294901760, %v7581_v55  ;;  %10389 = vst [vmem:[#allocation36_spill] sm:$0xff] %v7630_v24 }
  0x3d   :  { %6012 = vmatprep.subr.bf16.mxu0 %v6011_v26  ;;  %6148 = vmatprep.subr.bf16.mxu1 %v7574_v0  ;;  %v7613_v26 = vld [vmem:[%s10078_s1 + $0x118] sm:$0xff] }
  0x3e   :  { %10384 = vst [vmem:[#allocation33_spill] sm:$0xff] %v7603_v36  ;;  %v7627_v27 = vpack.c.bf16 %v10387_v63, %v10386_v46  ;;  %v7643_v46 = vld [vmem:[%s10078_s1 + $0x148] sm:$0xff]  ;;  %v10390_v63 = vand.u32 4294901760, %v7454_v3 }
  0x3f   :  { %413 = vmatmul.mubr.f32.vlgmr.msra.gmra.mrb[0].mxu0 %v7479_v12 }
  0x40   :  { %6014 = vmatpush1.bf16.msra.mxu0 %v6013_v56  ;;  %6150 = vmatpush3.bf16.msra.mxu1 %v7574_v0  ;;  %10388 = vst [vmem:[#allocation35_spill] sm:$0xff] %v7627_v27  ;;  %v7638_v0 = vld [vmem:[%s10078_s1 + $0x130] sm:$0xff]  ;;  %v7648_v13 = vsub.f32 %v7454_v3, %v10390_v63  ;;  %v7656_v56 = vand.u32 4294901760, %v7630_v24  ;;  %v7667_v3 = vsub.f32 %v7506_v32, %v10394_v33 }
  0x41   :  { %6016 = vmatprep.subr.bf16.mxu0 %v6015_v43  ;;  %6152 = vmatprep.subr.bf16.mxu1 %v7603_v36  ;;  %v10391_v43 = vand.u32 4294901760, %v7459_v7  ;;  %v7674_v63 = vsub.f32 %v7538_v5, %v988_v51  ;;  %v6023_v32 = vpack.c.bf16 %v7269_v1, %v7265_v62  ;;  %v10397_v5 = vand.u32 4294901760, %v7613_v26  ;;  %v7695_v51 = vld [vmem:[%s10078_s1 + $0x160] sm:$0xff] }
  0x42   :  { %10392 = vst [vmem:[#allocation37_spill] sm:$0xff] %v7656_v56  ;;  %418 = vmatprep.mubr.f32.mxu0 %v10381_v60  ;;  %v179_v33 = vsub.f32 %v7630_v24, %v7656_v56  ;;  %10399 = vst [vmem:[#allocation40_spill] sm:$0xff] %v7695_v51  ;;  %v10405_v24 = vand.u32 4294901760, %v7561_v8 }
  0x43   :  { %v7653_v22 = vsub.f32 %v7459_v7, %v10391_v43  ;;  %420 = vmatmul.mubr.f32.gmra.mrb[2].mxu0 %v7615_v40  ;;  %v7671_v7 = vsub.f32 %v7533_v44, %v985_v25  ;;  %10395 = vst [vmem:[#allocation38_spill] sm:$0xff] %v7674_v63  ;;  %v10396_v44 = vand.u32 4294901760, %v7608_v52  ;;  %v6027_v43 = vpack.c.bf16 %v7312_v54, %v7310_v53 }
  0x44   :  { %6018 = vmatpush1.bf16.msra.mxu0 %v6017_v35  ;;  %6154 = vmatpush3.bf16.msra.mxu1 %v7603_v36  ;;  %v7700_v35 = vld [vmem:[%s10078_s1 + $0x178] sm:$0xff]  ;;  %v7706_v36 = vand.u32 4294901760, %v179_v33  ;;  %v10402_v33 = vand.u32 4294901760, %v7643_v46 }
  0x45   :  { %6020 = vmatprep.subr.bf16.mxu0 %v6019_v31  ;;  %6156 = vmatprep.subr.bf16.mxu1 %v7627_v27  ;;  %v7690_v25 = vpack.c.bf16 %v10397_v5, %v10396_v44  ;;  %v10401_v31 = vand.u32 4294901760, %v7638_v0  ;;  %v10404_v56 = vand.u32 4294901760, %v7653_v22  ;;  %v10407_v5 = vand.u32 4294901760, %v7667_v3 }
  0x46   :  { %10400 = vst [vmem:[#allocation41_spill] sm:$0xff] %v7706_v36  ;;  %554 = vmatprep.mubr.f32.mxu0 %v10381_v60  ;;  %181 = vmatmul.mubr.f32.gmra.mrb[2].mxu1 %v7706_v36  ;;  %v10408_v44 = vand.u32 4294901760, %v7671_v7  ;;  %v10409_v60 = vand.u32 4294901760, %v7674_v63 }
  0x47   :  { %10398 = vst [vmem:[#allocation39_spill] sm:$0xff] %v7690_v25  ;;  %v7720_v28 = vpack.c.bf16 %v10402_v33, %v10401_v31  ;;  %v7734_v31 = vsub.f32 %v7561_v8, %v10405_v24  ;;  %5445 = vmatprep.mubr.f32.mxu1 %v7542_v59  ;;  %v6029_v8 = vpack.c.bf16 %v7336_v10, %v7327_v2  ;;  %v10410_v59 = vand.u32 4294901760, %v7695_v51 }
  0x48   :  { %6022 = vmatpush1.bf16.msra.mxu0 %v6021_v9  ;;  %6158 = vmatpush3.bf16.msra.mxu1 %v7627_v27  ;;  %v10403_v9 = vand.u32 4294901760, %v7648_v13  ;;  %v1084_v27 = vsub.f32 %v7653_v22, %v10404_v56  ;;  %v1105_v56 = vsub.f32 %v7671_v7, %v10408_v44  ;;  %v1112_v24 = vsub.f32 %v7674_v63, %v10409_v60 }
  0x49   :  { %6024 = vmatprep.subr.bf16.mxu0 %v6023_v32  ;;  %6160 = vmatprep.subr.bf16.mxu1 %v7690_v25  ;;  %v10406_v32 = vand.u32 4294901760, %v7662_v34 }
  0x4a   :  { %v1077_v40 = vsub.f32 %v7648_v13, %v10403_v9  ;;  %v1098_v9 = vsub.f32 %v7667_v3, %v10407_v5  ;;  %v10411_v5 = vand.u32 4294901760, %v7700_v35  ;;  %v1085_v60 = vand.u32 4294901760, %v1084_v27 }
  0x4b   :  { %v1091_v33 = vsub.f32 %v7662_v34, %v10406_v32  ;;  %v6031_v32 = vpack.c.bf16 %v7354_v58, %v7352_v57  ;;  %v1106_v63 = vand.u32 4294901760, %v1105_v56  ;;  %v1113_v51 = vand.u32 4294901760, %v1112_v24 }
  0x4c   :  { %6026 = vmatpush1.bf16.msra.mxu0 %v6025_v16  ;;  %6162 = vmatpush3.bf16.msra.mxu1 %v7690_v25  ;;  %v7759_v23 = vpack.c.bf16 %v10411_v5, %v10410_v59  ;;  %v1078_v44 = vand.u32 4294901760, %v1077_v40  ;;  %v10186_v16 = vand.u32 4294901760, %v7734_v31  ;;  %v10413_v25 = vand.u32 4294901760, %v7566_v6 }
  0x4d   :  { %6028 = vmatprep.subr.bf16.mxu0 %v6027_v43  ;;  %6164 = vmatprep.subr.bf16.mxu1 %v7720_v28  ;;  %v1092_v11 = vand.u32 4294901760, %v1091_v33  ;;  %v1099_v15 = vand.u32 4294901760, %v1098_v9  ;;  %v6033_v59 = vpack.c.bf16 %v7378_v38, %v7369_v61  ;;  %v10414_v40 = vand.u32 4294901760, %v7581_v55 }
  0x4e   :  { %10412 = vst [vmem:[#allocation42_spill] sm:$0xff] %v7759_v23  ;;  %v7766_v21 = vsub.f32 %v7566_v6, %v10413_v25  ;;  %v10415_v43 = vand.u32 4294901760, %v7586_v18  ;;  %v6035_v25 = vpack.c.bf16 %v7396_v17, %v7394_v14  ;;  %v6171_v33 = vpack.c.bf16 %v1085_v60, %v1078_v44 }
  0x4f   :  { %v7774_v27 = vsub.f32 %v7581_v55, %v10414_v40  ;;  %v1119_v9 = vsub.f32 %v7734_v31, %v10186_v16  ;;  %v6037_v55 = vpack.c.bf16 %v7420_v4, %v7411_v37  ;;  %v10416_v24 = vand.u32 4294901760, %v7608_v52 }
  0x50   :  { %6030 = vmatpush1.bf16.msra.mxu0 %v6029_v8  ;;  %6166 = vmatpush3.bf16.msra.mxu1 %v7720_v28  ;;  %v7779_v6 = vsub.f32 %v7586_v18, %v10415_v43  ;;  %v1125_v56 = vand.u32 4294901760, %v7766_v21  ;;  %v6039_v8 = vpack.c.bf16 %v7438_v50, %v7436_v39  ;;  %v6041_v5 = vpack.c.bf16 %v7466_v49, %v7447_v45 }
  0x51   :  { %6032 = vmatprep.subr.bf16.mxu0 %v6031_v32  ;;  %6168 = vmatprep.subr.bf16.mxu1 %v7759_v23  ;;  %v7793_v18 = vsub.f32 %v7608_v52, %v10416_v24  ;;  %v6175_v32 = vpack.c.bf16 %v1099_v15, %v1092_v11  ;;  %v6179_v44 = vpack.c.bf16 %v1113_v51, %v1106_v63  ;;  %v1132_v60 = vand.u32 4294901760, %v7774_v27 }
  0x52   :  { %v1139_v40 = vand.u32 4294901760, %v7779_v6  ;;  %v10417_v43 = vand.u32 4294901760, %v7613_v26  ;;  %v10418_v24 = vand.u32 4294901760, %v7211_v29  ;;  %v10419_v15 = vand.u32 4294901760, %v7213_v30 }
  0x53   :  { %v1120_v63 = vand.u32 4294901760, %v1119_v9  ;;  %v1126_v51 = vsub.f32 %v7766_v21, %v1125_v56  ;;  %v10421_v16 = vand.u32 4294901760, %v7230_v42  ;;  %v1146_v30 = vand.u32 4294901760, %v7793_v18 }
  0x54   :  { %6034 = vmatpush1.bf16.msra.mxu0 %v6033_v59  ;;  %6170 = vmatpush3.bf16.msra.mxu1 %v7759_v23  ;;  %v7805_v52 = vsub.f32 %v7613_v26, %v10417_v43  ;;  %v7811_v11 = vpack.c.bf16 %v10419_v15, %v10418_v24  ;;  %v10420_v59 = vand.u32 4294901760, %v7228_v41  ;;  %v10422_v26 = vand.u32 4294901760, %v7239_v47 }
  0x55   :  { %6036 = vmatprep.subr.bf16.mxu0 %v6035_v25  ;;  %6172 = vmatprep.subr.bf16.mxu1 %v6171_v33  ;;  %v10423_v43 = vand.u32 4294901760, %v7241_v48  ;;  %v10424_v25 = vand.u32 4294901760, %v7638_v0  ;;  %v10425_v24 = vand.u32 4294901760, %v7265_v62  ;;  %v10426_v41 = vand.u32 4294901760, %v7269_v1 }
  0x56   :  { %v7818_v23 = vpack.c.bf16 %v10421_v16, %v10420_v59  ;;  %v10427_v16 = vand.u32 4294901760, %v7292_v19  ;;  %v10428_v47 = vand.u32 4294901760, %v7294_v20  ;;  %v10429_v15 = vand.u32 4294901760, %v7643_v46 }
  0x57   :  { %v7824_v29 = vpack.c.bf16 %v10423_v43, %v10422_v26  ;;  %v7830_v9 = vsub.f32 %v7638_v0, %v10424_v25  ;;  %v7836_v42 = vpack.c.bf16 %v10426_v41, %v10425_v24  ;;  %5446 = vmatmul.mubr.f32.vlgmr.msra.gmra.mrb[4].mxu1 %v7706_v36  ;;  %v10430_v0 = vand.u32 4294901760, %v7310_v53  ;;  %v10472_v36 = vld [vmem:[#allocation18_spill] sm:$0xff] }
  0x58   :  { %v7842_v48 = vpack.c.bf16 %v10428_v47, %v10427_v16  ;;  %v7848_v59 = vsub.f32 %v7643_v46, %v10429_v15  ;;  %v10431_v62 = vand.u32 4294901760, %v7312_v54  ;;  %v10432_v26 = vand.u32 4294901760, %v7327_v2  ;;  %6038 = vmatpush1.bf16.msra.mxu0 %v6037_v55  ;;  %6174 = vmatpush3.bf16.msra.mxu1 %v6171_v33 }
  0x59   :  { %v10433_v19 = vand.u32 4294901760, %v7336_v10  ;;  %v10434_v43 = vand.u32 4294901760, %v7352_v57  ;;  %v10435_v25 = vand.u32 4294901760, %v7354_v58  ;;  %v1133_v53 = vsub.f32 %v7774_v27, %v1132_v60  ;;  %6040 = vmatprep.subr.bf16.mxu0 %v6039_v8  ;;  %6176 = vmatprep.subr.bf16.mxu1 %v6175_v32 }
  0x5a   :  { %v7854_v1 = vpack.c.bf16 %v10431_v62, %v10430_v0  ;;  %v1140_v54 = vsub.f32 %v7779_v6, %v1139_v40  ;;  %v1153_v46 = vand.u32 4294901760, %v7805_v52  ;;  %v10436_v2 = vand.u32 4294901760, %v7369_v61  ;;  %5480 = vmatprep.mubr.f32.mxu1 %v7479_v12 }
  0x5b   :  { %v7860_v20 = vpack.c.bf16 %v10433_v19, %v10432_v26  ;;  %v7866_v24 = vpack.c.bf16 %v10435_v25, %v10434_v43  ;;  %v10437_v10 = vand.u32 4294901760, %v7378_v38  ;;  %v1127_v57 = vand.u32 4294901760, %v1126_v51  ;;  %v10451_v19 = vld [vmem:[#allocation38_spill] sm:$0xff] }
  0x5c   :  { %v10438_v58 = vand.u32 4294901760, %v7394_v14  ;;  %v10439_v55 = vand.u32 4294901760, %v7396_v17  ;;  %v10440_v16 = vand.u32 4294901760, %v7411_v37  ;;  %v10441_v47 = vand.u32 4294901760, %v7420_v4  ;;  %6042 = vmatpush1.bf16.msra.mxu0 %v6041_v5  ;;  %6178 = vmatpush3.bf16.msra.mxu1 %v6175_v32  ;;  %v10460_v5 = vld [vmem:[#allocation28_spill] sm:$0xff] }
  0x5d   :  { %v7875_v41 = vpack.c.bf16 %v10437_v10, %v10436_v2  ;;  %v10442_v61 = vand.u32 4294901760, %v7436_v39  ;;  %v10443_v38 = vand.u32 4294901760, %v7438_v50  ;;  %v10444_v14 = vand.u32 4294901760, %v7447_v45  ;;  %v10453_v2 = vld [vmem:[#allocation40_spill] sm:$0xff]  ;;  %6180 = vmatprep.subr.bf16.mxu1 %v6179_v44 }
  0x5e   :  { %v7881_v33 = vpack.c.bf16 %v10439_v55, %v10438_v58  ;;  %v7887_v15 = vpack.c.bf16 %v10441_v47, %v10440_v16  ;;  %v10445_v17 = vand.u32 4294901760, %v7466_v49  ;;  %v10446_v37 = vand.u32 4294901760, %v7648_v13 }
  0x5f   :  { %v7893_v0 = vpack.c.bf16 %v10443_v38, %v10442_v61  ;;  %v10447_v4 = vand.u32 4294901760, %v7653_v22  ;;  %v10448_v39 = vand.u32 4294901760, %v7662_v34  ;;  %v10449_v50 = vand.u32 4294901760, %v7667_v3  ;;  %557 = vmatmul.mubr.f32.vlgmr.msra.gmra.mrb[0].mxu0 %v10460_v5 }
  0x60   :  { %v7900_v8 = vpack.c.bf16 %v10445_v17, %v10444_v14  ;;  %v10450_v26 = vand.u32 4294901760, %v7671_v7  ;;  %v10452_v45 = vand.u32 4294901760, %v10451_v19  ;;  %v1147_v49 = vsub.f32 %v7793_v18, %v1146_v30  ;;  %v10457_v14 = vld [vmem:[#allocation5_spill] sm:$0xff]  ;;  %6182 = vmatpush3.bf16.msra.mxu1 %v6179_v44 }
  0x61   :  { %v7906_v51 = vpack.c.bf16 %v10447_v4, %v10446_v37  ;;  %v7912_v62 = vpack.c.bf16 %v10449_v50, %v10448_v39  ;;  %v1160_v25 = vand.u32 4294901760, %v7830_v9  ;;  %v10454_v10 = vand.u32 4294901760, %v10453_v2  ;;  %6044 = vmatprep.subr.bf16.mxu0 %v10457_v14 }
  0x62   :  { %v7918_v43 = vpack.c.bf16 %v10452_v45, %v10450_v26  ;;  %v1134_v55 = vand.u32 4294901760, %v1133_v53  ;;  %v1154_v16 = vsub.f32 %v7805_v52, %v1153_v46  ;;  %v1167_v47 = vand.u32 4294901760, %v7848_v59  ;;  %v10461_v53 = vld [vmem:[#allocation7_spill] sm:$0xff] }
  0x63   :  { %v7925_v58 = vsub.f32 %v10453_v2, %v10454_v10  ;;  %v10455_v61 = vand.u32 4294901760, %v7734_v31  ;;  %v6183_v17 = vpack.c.bf16 %v1127_v57, %v1120_v63  ;;  %v1141_v37 = vand.u32 4294901760, %v1140_v54  ;;  %6046 = vmatpush1.bf16.msra.mxu0 %v10461_v53  ;;  %v10462_v54 = vld [vmem:[#allocation9_spill] sm:$0xff]  ;;  %v10465_v2 = vld [vmem:[#allocation36_spill] sm:$0xff] }
  0x64   :  { %v10458_v4 = vand.u32 4294901760, %v7700_v35  ;;  %v7939_v32 = vpack.c.bf16 %v1139_v40, %v1132_v60  ;;  %v1148_v50 = vand.u32 4294901760, %v1147_v49  ;;  %v1168_v26 = vsub.f32 %v7848_v59, %v1167_v47  ;;  %6048 = vmatprep.subr.bf16.mxu0 %v10462_v54  ;;  %v10467_v49 = vld [vmem:[#allocation12_spill] sm:$0xff] }
  0x65   :  { %v7931_v38 = vpack.c.bf16 %v1125_v56, %v10455_v61  ;;  %v1161_v56 = vsub.f32 %v7830_v9, %v1160_v25  ;;  %v1174_v63 = vand.u32 4294901760, %v7925_v58  ;;  %6184 = vmatprep.subr.bf16.mxu1 %v6183_v17  ;;  %v6187_v57 = vpack.c.bf16 %v1141_v37, %v1134_v55  ;;  %v10470_v37 = vld [vmem:[#allocation16_spill] sm:$0xff] }
  0x66   :  { %v7937_v39 = vsub.f32 %v7700_v35, %v10458_v4  ;;  %10459 = vst [vmem:[#allocation40_spill] sm:$0xff] %v7939_v32  ;;  %v1155_v35 = vand.u32 4294901760, %v1154_v16  ;;  %v7948_v40 = vpack.c.bf16 %v1153_v46, %v1146_v30  ;;  %v10464_v45 = vmov 0.0   ;;  %6186 = vmatpush3.bf16.msra.mxu1 %v6183_v17  ;;  %v10468_v4 = vld [vmem:[#allocation15_spill] sm:$0xff]  ;;  %v10490_v32 = vld [vmem:[#allocation10_spill] sm:$0xff] }
  0x67   :  { %10456 = vst [vmem:[#allocation38_spill] sm:$0xff] %v7931_v38  ;;  %562 = vmatprep.mubr.f32.mxu0 %v10464_v45  ;;  %v7952_v44 = vpack.c.bf16 %v1167_v47, %v1160_v25  ;;  %6050 = vmatpush1.bf16.msra.mxu0 %v10467_v49  ;;  %v1162_v10 = vand.u32 4294901760, %v1161_v56  ;;  %v1175_v61 = vsub.f32 %v7925_v58, %v1174_v63  ;;  %v1169_v16 = vand.u32 4294901760, %v1168_v26  ;;  %v10471_v25 = vld [vmem:[#allocation17_spill] sm:$0xff]  ;;  %v10492_v38 = vld [vmem:[#allocation11_spill] sm:$0xff] }
  0x68   :  { %v1181_v60 = vand.u32 4294901760, %v7937_v39  ;;  %10463 = vst [vmem:[#allocation5_spill] sm:$0xff] %v7948_v40  ;;  %565 = vmatmul.mubr.f32.gmra.mrb[2].mxu0 %v10465_v2  ;;  %6052 = vmatprep.subr.bf16.mxu0 %v10468_v4  ;;  %v6191_v55 = vpack.c.bf16 %v1155_v35, %v1148_v50  ;;  %v10473_v50 = vld [vmem:[#allocation19_spill] sm:$0xff]  ;;  %v10475_v35 = vld [vmem:[#allocation21_spill] sm:$0xff] }
  0x69   :  { %10466 = vst [vmem:[#allocation7_spill] sm:$0xff] %v7952_v44  ;;  %6188 = vmatprep.subr.bf16.mxu1 %v6187_v57  ;;  %667 = vmatprep.mubr.f32.mxu0 %v10464_v45  ;;  %v6195_v47 = vpack.c.bf16 %v1169_v16, %v1162_v10  ;;  %v1176_v17 = vand.u32 4294901760, %v1175_v61  ;;  %v10477_v10 = vld [vmem:[#allocation23_spill] sm:$0xff]  ;;  %v6207_v61 = vpack.c.bf16 %v7667_v3, %v7662_v34  ;;  %v10479_v16 = vld [vmem:[#allocation24_spill] sm:$0xff]  ;;  %v10486_v34 = vld [vmem:[#allocation6_spill] sm:$0xff] }
  0x6a   :  { %v1182_v30 = vsub.f32 %v7937_v39, %v1181_v60  ;;  %v7958_v46 = vpack.c.bf16 %v1181_v60, %v1174_v63  ;;  %6190 = vmatpush3.bf16.msra.mxu1 %v6187_v57  ;;  %v10474_v63 = vld [vmem:[#allocation20_spill] sm:$0xff]  ;;  %v6203_v57 = vpack.c.bf16 %v7653_v22, %v7648_v13  ;;  %v10476_v60 = vld [vmem:[#allocation22_spill] sm:$0xff]  ;;  %v10487_v3 = vand.u32 4294901760, %v10486_v34 }
  0x6b   :  { %6054 = vmatpush1.bf16.msra.mxu0 %v10470_v37  ;;  %6192 = vmatprep.subr.bf16.mxu1 %v6191_v55  ;;  %v10483_v22 = vld [vmem:[#allocation14_spill] sm:$0xff]  ;;  %v10488_v44 = vld [vmem:[#allocation8_spill] sm:$0xff] }
  0x6c   :  { %10469 = vst [vmem:[#allocation9_spill] sm:$0xff] %v7958_v46  ;;  %6056 = vmatprep.subr.bf16.mxu0 %v10471_v25  ;;  %v1183_v56 = vand.u32 4294901760, %v1182_v30  ;;  %v10480_v30 = vld [vmem:[#allocation25_spill] sm:$0xff]  ;;  %v10484_v13 = vand.u32 4294901760, %v10483_v22  ;;  %v10485_v46 = vld [vmem:[#allocation26_spill] sm:$0xff]  ;;  %v10493_v22 = vand.u32 4294901760, %v10492_v38 }
  0x6e   :  { %6194 = vmatpush3.bf16.msra.mxu1 %v6191_v55  ;;  %v6199_v26 = vpack.c.bf16 %v1183_v56, %v1176_v17  ;;  %v10478_v55 = vld [vmem:[#allocation34_spill] sm:$0xff] }
  0x6f   :  { %6058 = vmatpush1.bf16.msra.mxu0 %v10472_v36  ;;  %6196 = vmatprep.subr.bf16.mxu1 %v6195_v47 }
  0x70   :  { %6060 = vmatprep.subr.bf16.mxu0 %v10473_v50 }
  0x72   :  { %6198 = vmatpush3.bf16.msra.mxu1 %v6195_v47  ;;  %v10481_v47 = vld [vmem:[#allocation13_spill] sm:$0xff] }
  0x73   :  { %6062 = vmatpush1.bf16.msra.mxu0 %v10474_v63  ;;  %6200 = vmatprep.subr.bf16.mxu1 %v6199_v26  ;;  %v10482_v17 = vand.u32 4294901760, %v10481_v47  ;;  %v10491_v47 = vand.u32 4294901760, %v10490_v32 }
  0x74   :  { %6064 = vmatprep.subr.bf16.mxu0 %v10475_v35 }
  0x75   :  { %v6075_v56 = vpack.c.bf16 %v10484_v13, %v10482_v17  ;;  %v6079_v17 = vpack.c.bf16 %v10493_v22, %v10491_v47  ;;  %v1674_v13 = vld [vmem:[%s10079_s2 + $0x90] sm:$0xff]  ;;  %v10510_v47 = vld [vmem:[#allocation40_spill] sm:$0xff] }
  0x76   :  { %6202 = vmatpush3.bf16.msra.mxu1 %v6199_v26  ;;  %v6211_v26 = vpack.c.bf16 %v10451_v19, %v7671_v7  ;;  %v6215_v7 = vpack.c.bf16 %v7766_v21, %v7734_v31  ;;  %v10494_v19 = vld [vmem:[#allocation29_spill] sm:$0xff]  ;;  %v6223_v21 = vpack.c.bf16 %v7805_v52, %v7793_v18  ;;  %v6227_v31 = vpack.c.bf16 %v7848_v59, %v7830_v9  ;;  %v10498_v18 = vld [vmem:[#allocation32_spill] sm:$0xff]  ;;  %v10502_v9 = vld [vmem:[#allocation42_spill] sm:$0xff] }
  0x77   :  { %6066 = vmatpush1.bf16.msra.mxu0 %v10476_v60  ;;  %6204 = vmatprep.subr.bf16.mxu1 %v6203_v57  ;;  %v10499_v52 = vld [vmem:[#allocation33_spill] sm:$0xff] }
  0x78   :  { %6068 = vmatprep.subr.bf16.mxu0 %v10477_v10 }
  0x79   :  { %5481 = vmatmul.mubr.f32.vlgmr.msra.gmra.mrb[4].mxu1 %v10478_v55 }
  0x7a   :  { %6206 = vmatpush3.bf16.msra.mxu1 %v6203_v57  ;;  %5515 = vmatprep.mubr.f32.mxu1 %v10460_v5  ;;  %v10489_v57 = vand.u32 4294901760, %v10488_v44  ;;  %v6219_v44 = vpack.c.bf16 %v7779_v6, %v7774_v27  ;;  %v10496_v27 = vld [vmem:[#allocation27_spill] sm:$0xff] }
  0x7b   :  { %6070 = vmatpush1.bf16.msra.mxu0 %v10479_v16  ;;  %6208 = vmatprep.subr.bf16.mxu1 %v6207_v61  ;;  %v10497_v6 = vld [vmem:[#allocation31_spill] sm:$0xff] }
  0x7c   :  { %6072 = vmatprep.subr.bf16.mxu0 %v10480_v30  ;;  %v6077_v40 = vpack.c.bf16 %v10489_v57, %v10487_v3  ;;  %v1730_v3 = vand.u32 4294901760, %v1674_v13 }
  0x7e   :  { %6210 = vmatpush3.bf16.msra.mxu1 %v6207_v61  ;;  %v10495_v61 = vld [vmem:[#allocation37_spill] sm:$0xff] }
  0x7f   :  { %6074 = vmatpush1.bf16.msra.mxu0 %v10485_v46  ;;  %6212 = vmatprep.subr.bf16.mxu1 %v6211_v26 }
  0x80   :  { %6076 = vmatprep.subr.bf16.mxu0 %v6075_v56  ;;  %v1681_v56 = vld [vmem:[%s10079_s2 + $0xc8] sm:$0xff] }
  0x82   :  { %671 = vmatmul.mubr.f32.vlgmr.msra.gmra.mrb[0].mxu0 %v10494_v19  ;;  %6214 = vmatpush3.bf16.msra.mxu1 %v6211_v26  ;;  %v1684_v26 = vld [vmem:[%s10079_s2 + $0xe0] sm:$0xff] }
  0x83   :  { %6078 = vmatpush1.bf16.msra.mxu0 %v6077_v40  ;;  %6216 = vmatprep.subr.bf16.mxu1 %v6215_v7 }
  0x84   :  { %6080 = vmatprep.subr.bf16.mxu0 %v6079_v17  ;;  %676 = vmatprep.mubr.f32.mxu0 %v10464_v45  ;;  %v1736_v17 = vand.u32 4294901760, %v1681_v56 }
  0x86   :  { %680 = vmatmul.mubr.f32.gmra.mrb[2].mxu0 %v10495_v61  ;;  %6218 = vmatpush3.bf16.msra.mxu1 %v6215_v7  ;;  %v1740_v7 = vand.u32 4294901760, %v1684_v26 }
  0x87   :  { %6082 = vmatpush1.bf16.msra.mxu0 %v7811_v11  ;;  %6220 = vmatprep.subr.bf16.mxu1 %v6219_v44  ;;  %v10500_v11 = vld [vmem:[#allocation35_spill] sm:$0xff] }
  0x88   :  { %6084 = vmatprep.subr.bf16.mxu0 %v7818_v23  ;;  %846 = vmatprep.mubr.f32.mxu0 %v10464_v45  ;;  %v6231_v23 = vpack.c.bf16 %v7937_v39, %v7925_v58  ;;  %v8116_v39 = vld [vmem:[%s10079_s2 + $0x80] sm:$0xff] }
  0x8a   :  { %6222 = vmatpush3.bf16.msra.mxu1 %v6219_v44  ;;  %v1680_v44 = vld [vmem:[%s10079_s2 + $0xc0] sm:$0xff] }
  0x8b   :  { %6086 = vmatpush1.bf16.msra.mxu0 %v7824_v29  ;;  %6224 = vmatprep.subr.bf16.mxu1 %v6223_v21  ;;  %v10501_v29 = vld [vmem:[#allocation39_spill] sm:$0xff] }
  0x8c   :  { %6088 = vmatprep.subr.bf16.mxu0 %v7836_v42  ;;  %v8054_v42 = vld [vmem:[%s10079_s2 + $0x8] sm:$0xff] }
  0x8e   :  { %6226 = vmatpush3.bf16.msra.mxu1 %v6223_v21  ;;  %v1683_v21 = vld [vmem:[%s10079_s2 + $0xd8] sm:$0xff] }
  0x8f   :  { %6090 = vmatpush1.bf16.msra.mxu0 %v7842_v48  ;;  %6228 = vmatprep.subr.bf16.mxu1 %v6227_v31  ;;  %v1704_v48 = vand.u32 4294901760, %v8054_v42 }
  0x90   :  { %6092 = vmatprep.subr.bf16.mxu0 %v7854_v1  ;;  %v8070_v1 = vld [vmem:[%s10079_s2] sm:$0xff] }
  0x92   :  { %6230 = vmatpush3.bf16.msra.mxu1 %v6227_v31  ;;  %v8181_v31 = vsub.f32 %v8054_v42, %v1704_v48 }
  0x93   :  { %6094 = vmatpush1.bf16.msra.mxu0 %v7860_v20  ;;  %6232 = vmatprep.subr.bf16.mxu1 %v6231_v23  ;;  %v8075_v20 = vld [vmem:[%s10079_s2 + $0x18] sm:$0xff] }
  0x94   :  { %6096 = vmatprep.subr.bf16.mxu0 %v7866_v24  ;;  %v8081_v24 = vld [vmem:[%s10079_s2 + $0x38] sm:$0xff] }
  0x95   :  { %v1712_v58 = vand.u32 4294901760, %v8081_v24 }
  0x96   :  { %6234 = vmatpush3.bf16.msra.mxu1 %v6231_v23 }
  0x97   :  { %6098 = vmatpush1.bf16.msra.mxu0 %v7875_v41  ;;  %6236 = vmatprep.subr.bf16.mxu1 %v10496_v27  ;;  %v8086_v41 = vld [vmem:[%s10079_s2 + $0x50] sm:$0xff] }
  0x98   :  { %6100 = vmatprep.subr.bf16.mxu0 %v7881_v33  ;;  %v1706_v33 = vand.u32 4294901760, %v8070_v1  ;;  %v1716_v38 = vand.u32 4294901760, %v8086_v41 }
  0x99   :  { %5516 = vmatmul.mubr.f32.vlgmr.msra.gmra.mrb[4].mxu1 %v10465_v2 }
  0x9a   :  { %6238 = vmatpush3.bf16.msra.mxu1 %v10496_v27  ;;  %5550 = vmatprep.mubr.f32.mxu1 %v10494_v19  ;;  %v8199_v19 = vld [vmem:[%s10079_s2 + $0x110] sm:$0xff] }
  0x9b   :  { %6102 = vmatpush1.bf16.msra.mxu0 %v7887_v15  ;;  %6240 = vmatprep.subr.bf16.mxu1 %v10497_v6  ;;  %v1710_v15 = vand.u32 4294901760, %v8075_v20 }
  0x9c   :  { %6104 = vmatprep.subr.bf16.mxu0 %v7893_v0 }
  0x9d   :  { %v8121_v32 = vpack.c.bf16 %v1710_v15, %v1706_v33  ;;  %v8203_v42 = vsub.f32 %v8075_v20, %v1710_v15  ;;  %v8222_v20 = vld [vmem:[%s10079_s2 + $0xf0] sm:$0xff] }
  0x9e   :  { %6242 = vmatpush3.bf16.msra.mxu1 %v10497_v6  ;;  %v10513_v15 = vld [vmem:[#allocation5_spill] sm:$0xff] }
  0x9f   :  { %6106 = vmatpush1.bf16.msra.mxu0 %v7900_v8  ;;  %6244 = vmatprep.subr.bf16.mxu1 %v10498_v18  ;;  %v1662_v8 = vld [vmem:[%s10079_s2 + $0x30] sm:$0xff]  ;;  %10504 = vst [vmem:[#allocation15_spill] sm:$0xff] %v8121_v32 }
  0xa0   :  { %6108 = vmatprep.subr.bf16.mxu0 %v10457_v14  ;;  %v8111_v14 = vld [vmem:[%s10079_s2 + $0x68] sm:$0xff] }
  0xa1   :  { %v1720_v40 = vand.u32 4294901760, %v8111_v14 }
  0xa2   :  { %848 = vmatmul.mubr.f32.vlgmr.msra.gmra.mrb[0].mxu0 %v7479_v12  ;;  %6246 = vmatpush3.bf16.msra.mxu1 %v10498_v18 }
  0xa3   :  { %6110 = vmatpush1.bf16.msra.mxu0 %v10461_v53  ;;  %6248 = vmatprep.subr.bf16.mxu1 %v10499_v52  ;;  %v1714_v53 = vand.u32 4294901760, %v1662_v8 }
  0xa4   :  { %6112 = vmatprep.subr.bf16.mxu0 %v10462_v54  ;;  %853 = vmatprep.mubr.f32.mxu0 %v10464_v45 }
  0xa6   :  { %855 = vmatmul.mubr.f32.gmra.mrb[2].mxu0 %v10478_v55  ;;  %6250 = vmatpush3.bf16.msra.mxu1 %v10499_v52 }
  0xa7   :  { %6114 = vmatpush1.bf16.msra.mxu0 %v10467_v49  ;;  %6252 = vmatprep.subr.bf16.mxu1 %v10500_v11  ;;  %v1724_v49 = vand.u32 4294901760, %v8116_v39 }
  0xa8   :  { %6116 = vmatprep.subr.bf16.mxu0 %v10468_v4  ;;  %957 = vmatprep.mubr.f32.mxu0 %v10464_v45  ;;  %v1668_v4 = vld [vmem:[%s10079_s2 + $0x60] sm:$0xff] }
  0xaa   :  { %6254 = vmatpush3.bf16.msra.mxu1 %v10500_v11 }
  0xab   :  { %6118 = vmatpush1.bf16.msra.mxu0 %v10470_v37  ;;  %6256 = vmatprep.subr.bf16.mxu1 %v10501_v29  ;;  %v1675_v37 = vld [vmem:[%s10079_s2 + $0x98] sm:$0xff] }
  0xac   :  { %6120 = vmatprep.subr.bf16.mxu0 %v10471_v25  ;;  %v1678_v25 = vld [vmem:[%s10079_s2 + $0xb0] sm:$0xff] }
  0xae   :  { %6258 = vmatpush3.bf16.msra.mxu1 %v10501_v29 }
  0xaf   :  { %6122 = vmatpush1.bf16.msra.mxu0 %v10472_v36  ;;  %6260 = vmatprep.subr.bf16.mxu1 %v7720_v28  ;;  %v8059_v36 = vld [vmem:[%s10079_s2 + $0x20] sm:$0xff] }
  0xb0   :  { %6124 = vmatprep.subr.bf16.mxu0 %v10473_v50  ;;  %v1708_v59 = vand.u32 4294901760, %v8059_v36 }
  0xb2   :  { %6262 = vmatpush3.bf16.msra.mxu1 %v7720_v28  ;;  %v8098_v0 = vpack.c.bf16 %v1708_v59, %v1704_v48  ;;  %v8186_v23 = vsub.f32 %v8059_v36, %v1708_v59  ;;  %v8206_v36 = vsub.f32 %v8081_v24, %v1712_v58  ;;  %v8209_v48 = vsub.f32 %v8086_v41, %v1716_v38  ;;  %v8227_v24 = vld [vmem:[%s10079_s2 + $0x108] sm:$0xff] }
  0xb3   :  { %6126 = vmatpush1.bf16.msra.mxu0 %v10474_v63  ;;  %6264 = vmatprep.subr.bf16.mxu1 %v10502_v9  ;;  %v1722_v63 = vand.u32 4294901760, %v1668_v4  ;;  %v8211_v59 = vsub.f32 %v1662_v8, %v1714_v53  ;;  %v8230_v41 = vsub.f32 %v8111_v14, %v1720_v40  ;;  %v8234_v8 = vpack.c.bf16 %v1740_v7, %v1736_v17  ;;  %v8250_v14 = vld [vmem:[%s10079_s2 + $0x128] sm:$0xff] }
  0xb4   :  { %6128 = vmatprep.subr.bf16.mxu0 %v10475_v35  ;;  %10503 = vst [vmem:[#allocation12_spill] sm:$0xff] %v8098_v0 }
  0xb5   :  { %10514 = vst [vmem:[#allocation22_spill] sm:$0xff] %v8234_v8 }
  0xb6   :  { %6266 = vmatpush3.bf16.msra.mxu1 %v10502_v9 }
  0xb7   :  { %6130 = vmatpush1.bf16.msra.mxu0 %v10476_v60  ;;  %6268 = vmatprep.subr.bf16.mxu1 %v7906_v51  ;;  %v10507_v60 = vld [vmem:[#allocation38_spill] sm:$0xff] }
  0xb8   :  { %6132 = vmatprep.subr.bf16.mxu0 %v10477_v10  ;;  %v8148_v10 = vpack.c.bf16 %v1724_v49, %v1720_v40  ;;  %v8255_v40 = vld [vmem:[%s10079_s2 + $0x140] sm:$0xff] }
  0xb9   :  { %5551 = vmatmul.mubr.f32.vlgmr.msra.gmra.mrb[4].mxu1 %v10495_v61  ;;  %v8194_v61 = vld [vmem:[%s10079_s2 + $0xf8] sm:$0xff] }
  0xba   :  { %6270 = vmatpush3.bf16.msra.mxu1 %v7906_v51  ;;  %v1665_v51 = vld [vmem:[%s10079_s2 + $0x48] sm:$0xff]  ;;  %5585 = vmatprep.mubr.f32.mxu1 %v7479_v12  ;;  %10508 = vst [vmem:[#allocation18_spill] sm:$0xff] %v8148_v10 }
  0xbb   :  { %6134 = vmatpush1.bf16.msra.mxu0 %v10479_v16  ;;  %6272 = vmatprep.subr.bf16.mxu1 %v7912_v62  ;;  %v1718_v54 = vand.u32 4294901760, %v1665_v51  ;;  %v1728_v16 = vand.u32 4294901760, %v1675_v37 }
  0xbc   :  { %6136 = vmatprep.subr.bf16.mxu0 %v10480_v30  ;;  %v1732_v30 = vand.u32 4294901760, %v1678_v25 }
  0xbd   :  { %v8144_v50 = vpack.c.bf16 %v1718_v54, %v1714_v53  ;;  %v8241_v53 = vsub.f32 %v1668_v4, %v1722_v63  ;;  %v1750_v4 = vand.u32 4294901760, %v8227_v24 }
  0xbe   :  { %6274 = vmatpush3.bf16.msra.mxu1 %v7912_v62  ;;  %v1671_v62 = vld [vmem:[%s10079_s2 + $0x78] sm:$0xff]  ;;  %v8170_v22 = vpack.c.bf16 %v1732_v30, %v1728_v16 }
  0xbf   :  { %6138 = vmatpush1.bf16.msra.mxu0 %v10485_v46  ;;  %6276 = vmatprep.subr.bf16.mxu1 %v7918_v43  ;;  %v8133_v46 = vpack.c.bf16 %v1716_v38, %v1712_v58  ;;  %10506 = vst [vmem:[#allocation17_spill] sm:$0xff] %v8144_v50  ;;  %v1726_v35 = vand.u32 4294901760, %v1671_v62  ;;  %v1748_v58 = vand.u32 4294901760, %v8199_v19  ;;  %v8239_v38 = vsub.f32 %v8116_v39, %v1724_v49 }
  0xc0   :  { %6332 = vmatprep.subr.bf16.mxu0 %v8098_v0  ;;  %10511 = vst [vmem:[#allocation20_spill] sm:$0xff] %v8170_v22  ;;  %v8259_v39 = vsub.f32 %v1674_v13, %v1730_v3  ;;  %v1746_v49 = vand.u32 4294901760, %v8222_v20  ;;  %v8283_v13 = vsub.f32 %v1681_v56, %v1736_v17  ;;  %v8303_v56 = vld [vmem:[%s10079_s2 + $0x170] sm:$0xff] }
  0xc1   :  { %10505 = vst [vmem:[#allocation16_spill] sm:$0xff] %v8133_v46  ;;  %v8166_v34 = vpack.c.bf16 %v1726_v35, %v1722_v63 }
  0xc2   :  { %959 = vmatmul.mubr.f32.vlgmr.msra.gmra.mrb[0].mxu0 %v7479_v12  ;;  %6278 = vmatpush3.bf16.msra.mxu1 %v7918_v43  ;;  %v1677_v43 = vld [vmem:[%s10079_s2 + $0xa8] sm:$0xff]  ;;  %10515 = vst [vmem:[#allocation23_spill] sm:$0xff] %v8259_v39 }
  0xc3   :  { %6334 = vmatpush1.bf16.msra.mxu0 %v8121_v32  ;;  %964 = vmatprep.mubr.f32.mxu0 %v10464_v45  ;;  %10509 = vst [vmem:[#allocation19_spill] sm:$0xff] %v8166_v34  ;;  %v1734_v57 = vand.u32 4294901760, %v1677_v43 }
  0xc4   :  { %6280 = vmatprep.subr.bf16.mxu1 %v10507_v60  ;;  %6336 = vmatprep.subr.bf16.mxu0 %v8133_v46 }
  0xc6   :  { %966 = vmatmul.mubr.f32.gmra.mrb[2].mxu0 %v10478_v55  ;;  %6282 = vmatpush3.bf16.msra.mxu1 %v10507_v60  ;;  %v8189_v60 = vsub.f32 %v8070_v1, %v1706_v33  ;;  %v8213_v1 = vsub.f32 %v1665_v51, %v1718_v54  ;;  %v8217_v33 = vpack.c.bf16 %v1734_v57, %v1730_v3  ;;  %v1744_v51 = vand.u32 4294901760, %v8194_v61 }
  0xc7   :  { %6338 = vmatpush1.bf16.msra.mxu0 %v8144_v50  ;;  %6284 = vmatprep.subr.bf16.mxu1 %v10510_v47  ;;  %v1742_v50 = vand.u32 4294901760, %v1683_v21  ;;  %v8243_v54 = vsub.f32 %v1671_v62, %v1726_v35  ;;  %v8266_v62 = vld [vmem:[%s10079_s2 + $0x120] sm:$0xff] }
  0xc8   :  { %6340 = vmatprep.subr.bf16.mxu0 %v8148_v10  ;;  %1800 = vmatprep.mubr.f32.mxu0 %v10464_v45  ;;  %10512 = vst [vmem:[#allocation21_spill] sm:$0xff] %v8217_v33  ;;  %v1738_v10 = vand.u32 4294901760, %v1680_v44  ;;  %v8285_v3 = vpack.c.bf16 %v1748_v58, %v1744_v51  ;;  %v10529_v35 = vand.u32 4294901760, %v8266_v62 }
  0xc9   :  { %v8305_v17 = vsub.f32 %v1683_v21, %v1742_v50  ;;  %v10523_v21 = vand.u32 4294901760, %v8181_v31 }
  0xca   :  { %6286 = vmatpush3.bf16.msra.mxu1 %v10510_v47  ;;  %v8245_v47 = vsub.f32 %v1675_v37, %v1728_v16  ;;  %v8271_v37 = vld [vmem:[%s10079_s2 + $0x138] sm:$0xff]  ;;  %v8277_v63 = vpack.c.bf16 %v1742_v50, %v1738_v10  ;;  %10519 = vst [vmem:[#allocation25_spill] sm:$0xff] %v8285_v3  ;;  %v8321_v50 = vld [vmem:[%s10079_s2 + $0x168] sm:$0xff] }
  0xcb   :  { %6342 = vmatpush1.bf16.msra.mxu0 %v8166_v34  ;;  %6288 = vmatprep.subr.bf16.mxu1 %v10513_v15  ;;  %10521 = vst [vmem:[#allocation14_spill] sm:$0xff] %v8305_v17  ;;  %v10526_v34 = vand.u32 4294901760, %v8255_v40  ;;  %v10530_v16 = vand.u32 4294901760, %v8271_v37 }
  0xcc   :  { %6344 = vmatprep.subr.bf16.mxu0 %v8170_v22  ;;  %v8257_v22 = vsub.f32 %v1678_v25, %v1732_v30  ;;  %v8275_v25 = vsub.f32 %v1677_v43, %v1734_v57  ;;  %10517 = vst [vmem:[#allocation24_spill] sm:$0xff] %v8277_v63  ;;  %v10518_v30 = vld [vmem:[#allocation7_spill] sm:$0xff]  ;;  %v8289_v43 = vsub.f32 %v1684_v26, %v1740_v7  ;;  %v10524_v7 = vand.u32 4294901760, %v8186_v23 }
  0xcd   :  { %v8291_v57 = vsub.f32 %v1680_v44, %v1738_v10  ;;  %v8307_v26 = vpack.c.bf16 %v1750_v4, %v1746_v49  ;;  %v8316_v44 = vld [vmem:[%s10079_s2 + $0x150] sm:$0xff]  ;;  %v1826_v10 = vsub.f32 %v8181_v31, %v10523_v21  ;;  %v8349_v32 = vpack.c.bf16 %v10530_v16, %v10529_v35 }
  0xce   :  { %6290 = vmatpush3.bf16.msra.mxu1 %v10513_v15  ;;  %10516 = vst [vmem:[#allocation34_spill] sm:$0xff] %v8275_v25  ;;  %v1752_v15 = vand.u32 4294901760, %v8250_v14  ;;  %10520 = vst [vmem:[#allocation13_spill] sm:$0xff] %v8289_v43  ;;  %v10532_v21 = vand.u32 4294901760, %v8189_v60 }
  0xcf   :  { %6346 = vmatpush1.bf16.msra.mxu0 %v8217_v33  ;;  %6292 = vmatprep.subr.bf16.mxu1 %v10518_v30  ;;  %10522 = vst [vmem:[#allocation26_spill] sm:$0xff] %v8307_v26  ;;  %v10525_v33 = vld [vmem:[#allocation9_spill] sm:$0xff]  ;;  %10531 = vst [vmem:[#allocation10_spill] sm:$0xff] %v8349_v32  ;;  %v1827_v35 = vand.u32 4294901760, %v1826_v10  ;;  %v10537_v10 = vand.u32 4294901760, %v8303_v56 }
  0xd0   :  { %6348 = vmatprep.subr.bf16.mxu0 %v8234_v8  ;;  %v8298_v8 = vld [vmem:[%s10079_s2 + $0x158] sm:$0xff]  ;;  %v8338_v2 = vpack.c.bf16 %v10526_v34, %v1752_v15  ;;  %v1832_v46 = vsub.f32 %v8189_v60, %v10532_v21  ;;  %v8370_v21 = vsub.f32 %v8222_v20, %v1746_v49  ;;  %v10539_v20 = vand.u32 4294901760, %v8211_v59 }
  0xd2   :  { %6294 = vmatpush3.bf16.msra.mxu1 %v10518_v30  ;;  %v1838_v30 = vsub.f32 %v8186_v23, %v10524_v7  ;;  %10527 = vst [vmem:[#allocation6_spill] sm:$0xff] %v8338_v2  ;;  %v8343_v7 = vsub.f32 %v8199_v19, %v1748_v58  ;;  %v10533_v19 = vand.u32 4294901760, %v8203_v42  ;;  %v1856_v49 = vsub.f32 %v8211_v59, %v10539_v20 }
  0xd3   :  { %6350 = vmatpush1.bf16.msra.mxu0 %v8277_v63  ;;  %6296 = vmatprep.subr.bf16.mxu1 %v10525_v33  ;;  %v8334_v63 = vsub.f32 %v8194_v61, %v1744_v51  ;;  %v10534_v51 = vand.u32 4294901760, %v8206_v36  ;;  %v10542_v20 = vand.u32 4294901760, %v8321_v50 }
  0xd4   :  { %6352 = vmatprep.subr.bf16.mxu0 %v8285_v3  ;;  %10528 = vst [vmem:[#allocation8_spill] sm:$0xff] %v8343_v7  ;;  %v1844_v58 = vsub.f32 %v8203_v42, %v10533_v19  ;;  %v1839_v16 = vand.u32 4294901760, %v1838_v30  ;;  %v10535_v3 = vand.u32 4294901760, %v8209_v48 }
  0xd5   :  { %v1850_v34 = vsub.f32 %v8206_v36, %v10534_v51 }
  0xd6   :  { %6298 = vmatpush3.bf16.msra.mxu1 %v10525_v33  ;;  %v1862_v61 = vsub.f32 %v8209_v48, %v10535_v3  ;;  %v10536_v33 = vand.u32 4294901760, %v8298_v8  ;;  %v10540_v3 = vand.u32 4294901760, %v8213_v1  ;;  %v1845_v51 = vand.u32 4294901760, %v1844_v58 }
  0xd7   :  { %6354 = vmatpush1.bf16.msra.mxu0 %v8307_v26  ;;  %6300 = vmatprep.subr.bf16.mxu1 %v10496_v27  ;;  %v8383_v26 = vsub.f32 %v8227_v24, %v1750_v4  ;;  %v10541_v4 = vand.u32 4294901760, %v8316_v44  ;;  %v6363_v5 = vpack.c.bf16 %v1839_v16, %v1827_v35  ;;  %v1851_v19 = vand.u32 4294901760, %v1850_v34 }
  0xd8   :  { %6356 = vmatprep.subr.bf16.mxu0 %v8338_v2  ;;  %v8378_v30 = vpack.c.bf16 %v10537_v10, %v10536_v33  ;;  %v1868_v2 = vsub.f32 %v8213_v1, %v10540_v3  ;;  %v8393_v33 = vsub.f32 %v8250_v14, %v1752_v15  ;;  %v1833_v10 = vand.u32 4294901760, %v1832_v46 }
  0xd9   :  { %5586 = vmatmul.mubr.f32.vlgmr.msra.gmra.mrb[4].mxu1 %v10478_v55  ;;  %v8403_v3 = vpack.c.bf16 %v10542_v20, %v10541_v4  ;;  %v1863_v14 = vand.u32 4294901760, %v1862_v61  ;;  %v10544_v46 = vand.u32 4294901760, %v8230_v41  ;;  %v10546_v35 = vand.u32 4294901760, %v8255_v40 }
  0xda   :  { %10538 = vst [vmem:[#allocation11_spill] sm:$0xff] %v8378_v30  ;;  %6302 = vmatpush3.bf16.msra.mxu1 %v10496_v27  ;;  %v10545_v27 = vand.u32 4294901760, %v8239_v38  ;;  %v1857_v34 = vand.u32 4294901760, %v1856_v49  ;;  %v1869_v16 = vand.u32 4294901760, %v1868_v2  ;;  %v10548_v20 = vand.u32 4294901760, %v8241_v53  ;;  %5620 = vmatprep.mubr.f32.mxu1 %v7479_v12 }
  0xdb   :  { %6358 = vmatpush1.bf16.msra.mxu0 %v8349_v32  ;;  %10543 = vst [vmem:[#allocation27_spill] sm:$0xff] %v8403_v3  ;;  %6304 = vmatprep.subr.bf16.mxu1 %v10497_v6  ;;  %v1874_v15 = vsub.f32 %v8230_v41, %v10544_v46  ;;  %v8418_v61 = vsub.f32 %v8255_v40, %v10546_v35  ;;  %v10549_v46 = vand.u32 4294901760, %v8266_v62  ;;  %v10550_v4 = vand.u32 4294901760, %v8243_v54 }
  0xdc   :  { %6360 = vmatprep.subr.bf16.mxu0 %v8378_v30  ;;  %v1886_v58 = vsub.f32 %v8239_v38, %v10545_v27  ;;  %v1880_v30 = vsub.f32 %v8241_v53, %v10548_v20  ;;  %v6365_v24 = vpack.c.bf16 %v1845_v51, %v1833_v10  ;;  %v6367_v2 = vpack.c.bf16 %v1863_v14, %v1851_v19  ;;  %v10553_v20 = vld [vmem:[#allocation30_spill] sm:$0xff] }
  0xdd   :  { %10547 = vst [vmem:[#allocation31_spill] sm:$0xff] %v8418_v61  ;;  %v8427_v27 = vsub.f32 %v8266_v62, %v10549_v46  ;;  %v1892_v32 = vsub.f32 %v8243_v54, %v10550_v4  ;;  %v1875_v62 = vand.u32 4294901760, %v1874_v15  ;;  %v10551_v10 = vand.u32 4294901760, %v8245_v47 }
  0xde   :  { %6306 = vmatpush3.bf16.msra.mxu1 %v10497_v6  ;;  %v1887_v51 = vand.u32 4294901760, %v1886_v58  ;;  %v10552_v6 = vand.u32 4294901760, %v8257_v22  ;;  %v6369_v19 = vpack.c.bf16 %v1869_v16, %v1857_v34  ;;  %v1881_v14 = vand.u32 4294901760, %v1880_v30 }
  0xdf   :  { %6362 = vmatpush1.bf16.msra.mxu0 %v8403_v3  ;;  %6308 = vmatprep.subr.bf16.mxu1 %v10498_v18  ;;  %v1898_v4 = vsub.f32 %v8245_v47, %v10551_v10  ;;  %v1893_v40 = vand.u32 4294901760, %v1892_v32  ;;  %v10555_v30 = vand.u32 4294901760, %v8275_v25  ;;  %v10556_v16 = vand.u32 4294901760, %v8283_v13 }
  0xe0   :  { %6364 = vmatprep.subr.bf16.mxu0 %v6363_v5  ;;  %v1910_v46 = vsub.f32 %v8257_v22, %v10552_v6  ;;  %v10554_v5 = vand.u32 4294901760, %v8259_v39  ;;  %v10557_v32 = vand.u32 4294901760, %v8289_v43  ;;  %v10561_v3 = vand.u32 4294901760, %v8305_v17 }
  0xe1   :  { %v1916_v34 = vsub.f32 %v8275_v25, %v10555_v30  ;;  %v1922_v6 = vsub.f32 %v8283_v13, %v10556_v16  ;;  %v10559_v30 = vand.u32 4294901760, %v8298_v8  ;;  %v10560_v16 = vand.u32 4294901760, %v8291_v57 }
  0xe2   :  { %1806 = vmatmul.mubr.f32.vlgmr.msra.gmra.mrb[4].mxu0 %v10553_v20  ;;  %v1904_v15 = vsub.f32 %v8259_v39, %v10554_v5  ;;  %6310 = vmatpush3.bf16.msra.mxu1 %v10498_v18  ;;  %v1934_v35 = vsub.f32 %v8289_v43, %v10557_v32  ;;  %v10558_v5 = vand.u32 4294901760, %v8271_v37  ;;  %v6371_v18 = vpack.c.bf16 %v1887_v51, %v1875_v62 }
  0xe3   :  { %6366 = vmatpush1.bf16.msra.mxu0 %v6365_v24  ;;  %6312 = vmatprep.subr.bf16.mxu1 %v10499_v52  ;;  %v1899_v24 = vand.u32 4294901760, %v1898_v4  ;;  %v1911_v10 = vand.u32 4294901760, %v1910_v46  ;;  %v8472_v49 = vsub.f32 %v8298_v8, %v10559_v30  ;;  %v1928_v32 = vsub.f32 %v8291_v57, %v10560_v16  ;;  %v10564_v30 = vld [vmem:[#allocation41_spill] sm:$0xff] }
  0xe4   :  { %v8466_v58 = vsub.f32 %v8271_v37, %v10558_v5  ;;  %6368 = vmatprep.subr.bf16.mxu0 %v6367_v2  ;;  %v1940_v37 = vsub.f32 %v8305_v17, %v10561_v3  ;;  %1811 = vmatprep.mubr.f32.mxu0 %v10464_v45  ;;  %v6373_v2 = vpack.c.bf16 %v1893_v40, %v1881_v14  ;;  %v10562_v62 = vand.u32 4294901760, %v8334_v63 }
  0xe5   :  { %v10563_v8 = vand.u32 4294901760, %v8343_v7  ;;  %v1905_v3 = vand.u32 4294901760, %v1904_v15  ;;  %v1917_v16 = vand.u32 4294901760, %v1916_v34  ;;  %v1923_v5 = vand.u32 4294901760, %v1922_v6 }
  0xe6   :  { %v1946_v51 = vsub.f32 %v8334_v63, %v10562_v62  ;;  %1817 = vmatmul.mubr.f32.gmra.mrb[6].mxu0 %v10564_v30  ;;  %6314 = vmatpush3.bf16.msra.mxu1 %v10499_v52  ;;  %v1935_v0 = vand.u32 4294901760, %v1934_v35  ;;  %v10565_v40 = vand.u32 4294901760, %v8303_v56  ;;  %v6375_v62 = vpack.c.bf16 %v1911_v10, %v1899_v24 }
  0xe7   :  { %v1958_v4 = vsub.f32 %v8343_v7, %v10563_v8  ;;  %6370 = vmatpush1.bf16.msra.mxu0 %v6369_v19  ;;  %6316 = vmatprep.subr.bf16.mxu1 %v10500_v11  ;;  %v10232_v8 = vand.u32 4294901760, %v8393_v33  ;;  %v10233_v46 = vand.u32 4294901760, %v8418_v61  ;;  %v10567_v52 = vand.u32 4294901760, %v8316_v44 }
  0xe8   :  { %v8494_v14 = vsub.f32 %v8303_v56, %v10565_v40  ;;  %6372 = vmatprep.subr.bf16.mxu0 %v6371_v18  ;;  %v1929_v15 = vand.u32 4294901760, %v1928_v32  ;;  %v1941_v35 = vand.u32 4294901760, %v1940_v37  ;;  %v10568_v34 = vand.u32 4294901760, %v8370_v21  ;;  %2047 = vmatprep.mubr.f32.mxu0 %v10464_v45 }
  0xe9   :  { %v8502_v19 = vsub.f32 %v8316_v44, %v10567_v52  ;;  %v10569_v6 = vand.u32 4294901760, %v8321_v50  ;;  %v1947_v18 = vand.u32 4294901760, %v1946_v51  ;;  %v1959_v24 = vand.u32 4294901760, %v1958_v4  ;;  %v8520_v52 = vld [vmem:[%s10079_s2 + $0x10] sm:$0xff] }
  0xea   :  { %10566 = vst [vmem:[#allocation32_spill] sm:$0xff] %v8494_v14  ;;  %v1952_v56 = vsub.f32 %v8370_v21, %v10568_v34  ;;  %v10570_v40 = vand.u32 4294901760, %v8383_v26  ;;  %6318 = vmatpush3.bf16.msra.mxu1 %v10500_v11  ;;  %v6377_v32 = vpack.c.bf16 %v1917_v16, %v1905_v3  ;;  %v6379_v37 = vpack.c.bf16 %v1935_v0, %v1923_v5 }
  0xeb   :  { %v8511_v10 = vsub.f32 %v8321_v50, %v10569_v6  ;;  %6374 = vmatpush1.bf16.msra.mxu0 %v6373_v2  ;;  %v8525_v50 = vld [vmem:[%s10079_s2 + $0x28] sm:$0xff]  ;;  %v10237_v51 = vand.u32 4294901760, %v8427_v27  ;;  %v10234_v4 = vand.u32 4294901760, %v8466_v58  ;;  %6320 = vmatprep.subr.bf16.mxu1 %v10501_v29  ;;  %v1970_v11 = vsub.f32 %v8393_v33, %v10232_v8 }
  0xec   :  { %v1964_v44 = vsub.f32 %v8383_v26, %v10570_v40  ;;  %6376 = vmatprep.subr.bf16.mxu0 %v6375_v62  ;;  %v1982_v0 = vsub.f32 %v8418_v61, %v10233_v46  ;;  %v10235_v5 = vand.u32 4294901760, %v8472_v49  ;;  %v10236_v2 = vand.u32 4294901760, %v8494_v14 }
  0xed   :  { %v6381_v3 = vpack.c.bf16 %v1941_v35, %v1929_v15  ;;  %v1953_v16 = vand.u32 4294901760, %v1952_v56  ;;  %v6383_v34 = vpack.c.bf16 %v1959_v24, %v1947_v18  ;;  %v10239_v40 = vand.u32 4294901760, %v8520_v52  ;;  %v8550_v15 = vld [vmem:[%s10079_s2 + $0x40] sm:$0xff] }
  0xee   :  { %v1965_v6 = vand.u32 4294901760, %v1964_v44  ;;  %v10238_v62 = vand.u32 4294901760, %v8525_v50  ;;  %6322 = vmatpush3.bf16.msra.mxu1 %v10501_v29  ;;  %v1976_v8 = vsub.f32 %v8427_v27, %v10237_v51  ;;  %v1988_v46 = vsub.f32 %v8466_v58, %v10234_v4 }
  0xef   :  { %6378 = vmatpush1.bf16.msra.mxu0 %v6377_v32  ;;  %v10241_v35 = vand.u32 4294901760, %v8502_v19  ;;  %v10240_v56 = vand.u32 4294901760, %v8511_v10  ;;  %6324 = vmatprep.subr.bf16.mxu1 %v7720_v28  ;;  %v1971_v29 = vand.u32 4294901760, %v1970_v11  ;;  %v1983_v18 = vand.u32 4294901760, %v1982_v0  ;;  %v8564_v32 = vld [vmem:[%s10079_s2 + $0x58] sm:$0xff] }
  0xf0   :  { %6380 = vmatprep.subr.bf16.mxu0 %v6379_v37  ;;  %v1994_v24 = vsub.f32 %v8472_v49, %v10235_v5  ;;  %v2006_v44 = vsub.f32 %v8494_v14, %v10236_v2  ;;  %v6385_v4 = vpack.c.bf16 %v1965_v6, %v1953_v16  ;;  %v8570_v37 = vpack.c.bf16 %v10238_v62, %v10239_v40 }
  0xf1   :  { %v2615_v11 = vand.u32 4294901760, %v8550_v15  ;;  %v1977_v0 = vand.u32 4294901760, %v1976_v8  ;;  %v1989_v5 = vand.u32 4294901760, %v1988_v46  ;;  %v2000_v2 = vsub.f32 %v8502_v19, %v10241_v35  ;;  %v8590_v46 = vld [vmem:[%s10079_s2 + $0x88] sm:$0xff] }
  0xf2   :  { %10571 = vst [vmem:[#allocation33_spill] sm:$0xff] %v8570_v37  ;;  %6326 = vmatpush3.bf16.msra.mxu1 %v7720_v28  ;;  %v2012_v16 = vsub.f32 %v8511_v10, %v10240_v56  ;;  %v6387_v6 = vpack.c.bf16 %v1983_v18, %v1971_v29  ;;  %v1995_v51 = vand.u32 4294901760, %v1994_v24  ;;  %v2007_v62 = vand.u32 4294901760, %v2006_v44  ;;  %v8585_v28 = vld [vmem:[%s10079_s2 + $0x70] sm:$0xff] }
  0xf3   :  { %6382 = vmatpush1.bf16.msra.mxu0 %v6381_v3  ;;  %6328 = vmatprep.subr.bf16.mxu1 %v10502_v9  ;;  %v10246_v40 = vand.u32 4294901760, %v8564_v32  ;;  %v6389_v8 = vpack.c.bf16 %v1989_v5, %v1977_v0  ;;  %v2001_v3 = vand.u32 4294901760, %v2000_v2  ;;  %v10245_v24 = vand.u32 4294901760, %v8585_v28 }
  0xf4   :  { %6384 = vmatprep.subr.bf16.mxu0 %v6383_v34  ;;  %v2013_v34 = vand.u32 4294901760, %v2012_v16  ;;  %v6391_v29 = vpack.c.bf16 %v2007_v62, %v1995_v51  ;;  %v10244_v44 = vand.u32 4294901760, %v8590_v46  ;;  %v6395_v5 = vpack.c.bf16 %v8186_v23, %v8181_v31  ;;  %v8628_v16 = vld [vmem:[%s10079_s2 + $0xd0] sm:$0xff] }
  0xf5   :  { %v8598_v18 = vpack.c.bf16 %v10246_v40, %v2615_v11  ;;  %v6401_v56 = vpack.c.bf16 %v8213_v1, %v8211_v59  ;;  %v6403_v35 = vpack.c.bf16 %v8239_v38, %v8230_v41 }
  0xf6   :  { %6330 = vmatpush3.bf16.msra.mxu1 %v10502_v9  ;;  %v8605_v9 = vld [vmem:[%s10079_s2 + $0xa0] sm:$0xff]  ;;  %v6393_v51 = vpack.c.bf16 %v2013_v34, %v2001_v3  ;;  %v8621_v2 = vpack.c.bf16 %v10244_v44, %v10245_v24  ;;  %v6399_v3 = vpack.c.bf16 %v8209_v48, %v8206_v36  ;;  %v8678_v44 = vld [vmem:[%s10079_s2 + $0x130] sm:$0xff]  ;;  %v8683_v24 = vld [vmem:[%s10079_s2 + $0x148] sm:$0xff] }
  0xf7   :  { %6386 = vmatpush1.bf16.msra.mxu0 %v6385_v4  ;;  %6524 = vmatprep.subr.bf16.mxu1 %v8570_v37  ;;  %10572 = vst [vmem:[#allocation35_spill] sm:$0xff] %v8598_v18  ;;  %v8610_v4 = vld [vmem:[%s10079_s2 + $0xb8] sm:$0xff]  ;;  %v10243_v62 = vand.u32 4294901760, %v8605_v9 }
  0xf8   :  { %6388 = vmatprep.subr.bf16.mxu0 %v6387_v6  ;;  %10573 = vst [vmem:[#allocation39_spill] sm:$0xff] %v8621_v2  ;;  %v10242_v0 = vand.u32 4294901760, %v8610_v4  ;;  %v8633_v6 = vld [vmem:[%s10079_s2 + $0xe8] sm:$0xff] }
  0xf9   :  { %5621 = vmatmul.mubr.f32.vlgmr.msra.gmra.mrb[4].mxu1 %v10478_v55 }
  0xfa   :  { %6526 = vmatpush3.bf16.msra.mxu1 %v8570_v37  ;;  %5655 = vmatprep.mubr.f32.mxu1 %v10553_v20  ;;  %v8646_v34 = vpack.c.bf16 %v10242_v0, %v10243_v62  ;;  %v10248_v20 = vand.u32 4294901760, %v8628_v16  ;;  %v6407_v0 = vpack.c.bf16 %v8257_v22, %v8245_v47 }
  0xfb   :  { %6390 = vmatpush1.bf16.msra.mxu0 %v6389_v8  ;;  %6528 = vmatprep.subr.bf16.mxu1 %v8598_v18  ;;  %v6397_v8 = vpack.c.bf16 %v8203_v42, %v8189_v60 }
  0xfc   :  { %6392 = vmatprep.subr.bf16.mxu0 %v6391_v29  ;;  %10574 = vst [vmem:[#allocation42_spill] sm:$0xff] %v8646_v34  ;;  %v10247_v29 = vand.u32 4294901760, %v8633_v6 }
  0xfe   :  { %6530 = vmatpush3.bf16.msra.mxu1 %v8598_v18  ;;  %v8672_v62 = vpack.c.bf16 %v10247_v29, %v10248_v20  ;;  %v10577_v29 = vand.u32 4294901760, %v8525_v50  ;;  %v10583_v18 = vand.u32 4294901760, %v8678_v44 }
  0xff   :  { %6394 = vmatpush1.bf16.msra.mxu0 %v6393_v51  ;;  %6532 = vmatprep.subr.bf16.mxu1 %v8621_v2  ;;  %v8653_v51 = vld [vmem:[%s10079_s2 + $0x100] sm:$0xff] }
 0x100   :  { %6396 = vmatprep.subr.bf16.mxu0 %v6395_v5  ;;  %v8658_v5 = vld [vmem:[%s10079_s2 + $0x118] sm:$0xff]  ;;  %10575 = vst [vmem:[#allocation38_spill] sm:$0xff] %v8672_v62  ;;  %v8693_v20 = vsub.f32 %v8525_v50, %v10577_v29  ;;  %v8707_v50 = vld [vmem:[%s10079_s2 + $0x160] sm:$0xff]  ;;  %v8712_v29 = vsub.f32 %v8550_v15, %v2615_v11  ;;  %v10581_v15 = vand.u32 4294901760, %v8564_v32  ;;  %v6409_v11 = vpack.c.bf16 %v8275_v25, %v8259_v39 }
 0x101   :  { %v10586_v25 = vand.u32 4294901760, %v8585_v28 }
 0x102   :  { %2049 = vmatmul.mubr.f32.vlgmr.msra.gmra.mrb[4].mxu0 %v7479_v12  ;;  %6534 = vmatpush3.bf16.msra.mxu1 %v8621_v2  ;;  %v10584_v2 = vand.u32 4294901760, %v8683_v24 }
 0x103   :  { %6398 = vmatpush1.bf16.msra.mxu0 %v6397_v8  ;;  %6536 = vmatprep.subr.bf16.mxu1 %v8646_v34  ;;  %v6405_v8 = vpack.c.bf16 %v8243_v54, %v8241_v53  ;;  %v8751_v39 = vsub.f32 %v8585_v28, %v10586_v25  ;;  %v6413_v28 = vpack.c.bf16 %v8305_v17, %v8291_v57 }
 0x104   :  { %6400 = vmatprep.subr.bf16.mxu0 %v6399_v3  ;;  %v10576_v3 = vand.u32 4294901760, %v8520_v52  ;;  %2054 = vmatprep.mubr.f32.mxu0 %v10464_v45  ;;  %v8744_v37 = vpack.c.bf16 %v10584_v2, %v10583_v18 }
 0x106   :  { %v8688_v40 = vsub.f32 %v8520_v52, %v10576_v3  ;;  %2056 = vmatmul.mubr.f32.gmra.mrb[6].mxu0 %v10478_v55  ;;  %6538 = vmatpush3.bf16.msra.mxu1 %v8646_v34  ;;  %v10579_v34 = vand.u32 4294901760, %v8658_v5  ;;  %v8724_v3 = vld [vmem:[%s10079_s2 + $0x178] sm:$0xff]  ;;  %10585 = vst [vmem:[#allocation7_spill] sm:$0xff] %v8744_v37 }
 0x107   :  { %6402 = vmatpush1.bf16.msra.mxu0 %v6401_v56  ;;  %6540 = vmatprep.subr.bf16.mxu1 %v8672_v62  ;;  %v10578_v56 = vand.u32 4294901760, %v8653_v51 }
 0x108   :  { %6404 = vmatprep.subr.bf16.mxu0 %v6403_v35  ;;  %v8731_v35 = vsub.f32 %v8564_v32, %v10581_v15  ;;  %2190 = vmatprep.mubr.f32.mxu0 %v10464_v45  ;;  %v10589_v15 = vand.u32 4294901760, %v8590_v46 }
 0x109   :  { %v8719_v52 = vpack.c.bf16 %v10579_v34, %v10578_v56  ;;  %v6411_v34 = vpack.c.bf16 %v8289_v43, %v8283_v13  ;;  %v10593_v43 = vand.u32 4294901760, %v8610_v4 }
 0x10a   :  { %10582 = vst [vmem:[#allocation5_spill] sm:$0xff] %v8731_v35  ;;  %6542 = vmatpush3.bf16.msra.mxu1 %v8672_v62  ;;  %v10588_v62 = vand.u32 4294901760, %v8693_v20  ;;  %v8764_v32 = vsub.f32 %v8590_v46, %v10589_v15  ;;  %v8766_v25 = vpop.f32.mrb[0].mxu1  ;;  %v6415_v46 = vpack.c.bf16 %v8343_v7, %v8334_v63  ;;  %v10595_v15 = vand.u32 4294901760, %v8707_v50 }
 0x10b   :  { %10580 = vst [vmem:[#allocation40_spill] sm:$0xff] %v8719_v52  ;;  %6406 = vmatpush1.bf16.msra.mxu0 %v6405_v8  ;;  %6544 = vmatprep.subr.bf16.mxu1 %v8719_v52  ;;  %v10587_v8 = vand.u32 4294901760, %v8688_v40  ;;  %10591 = vst [vmem:[#allocation30_spill] sm:$0xff] %v8766_v25  ;;  %v8780_v2 = vpop.f32.mrb[1].mxu1  ;;  %v10596_v25 = vand.u32 4294901760, %v8724_v3  ;;  %v10601_v7 = vand.u32 4294901760, %v8633_v6 }
 0x10c   :  { %6408 = vmatprep.subr.bf16.mxu0 %v6407_v0  ;;  %v2720_v18 = vsub.f32 %v8693_v20, %v10588_v62  ;;  %10590 = vst [vmem:[#allocation9_spill] sm:$0xff] %v8764_v32  ;;  %v10592_v0 = vand.u32 4294901760, %v8605_v9  ;;  %v8778_v62 = vsub.f32 %v8610_v4, %v10593_v43  ;;  %10594 = vst [vmem:[#allocation41_spill] sm:$0xff] %v8780_v2  ;;  %v10599_v2 = vand.u32 4294901760, %v8731_v35 }
 0x10d   :  { %v2713_v56 = vsub.f32 %v8688_v40, %v10587_v8  ;;  %v8789_v17 = vpack.c.bf16 %v10596_v25, %v10595_v15  ;;  %v6417_v25 = vpack.c.bf16 %v8383_v26, %v8370_v21  ;;  %v8815_v43 = vsub.f32 %v8633_v6, %v10601_v7 }
 0x10e   :  { %v8773_v8 = vsub.f32 %v8605_v9, %v10592_v0  ;;  %6546 = vmatpush3.bf16.msra.mxu1 %v8719_v52  ;;  %v10598_v9 = vand.u32 4294901760, %v8712_v29  ;;  %v2734_v52 = vsub.f32 %v8731_v35, %v10599_v2  ;;  %v10602_v15 = vand.u32 4294901760, %v8751_v39 }
 0x10f   :  { %6410 = vmatpush1.bf16.msra.mxu0 %v6409_v11  ;;  %10597 = vst [vmem:[#allocation43_spill] sm:$0xff] %v8789_v17  ;;  %6548 = vmatprep.subr.bf16.mxu1 %v8744_v37  ;;  %v2714_v4 = vand.u32 4294901760, %v2713_v56  ;;  %v2721_v11 = vand.u32 4294901760, %v2720_v18  ;;  %v10600_v18 = vand.u32 4294901760, %v8628_v16  ;;  %v10605_v6 = vand.u32 4294901760, %v8778_v62 }
 0x110   :  { %v2727_v0 = vsub.f32 %v8712_v29, %v10598_v9  ;;  %6412 = vmatprep.subr.bf16.mxu0 %v6411_v34  ;;  %v6419_v34 = vpack.c.bf16 %v8418_v61, %v8393_v33  ;;  %v2735_v9 = vand.u32 4294901760, %v2734_v52 }
 0x111   :  { %v8810_v2 = vsub.f32 %v8628_v16, %v10600_v18  ;;  %v6421_v16 = vpack.c.bf16 %v8466_v58, %v8427_v27  ;;  %v10604_v18 = vand.u32 4294901760, %v8773_v8 }
 0x112   :  { %6550 = vmatpush3.bf16.msra.mxu1 %v8744_v37  ;;  %v2728_v56 = vand.u32 4294901760, %v2727_v0  ;;  %v2741_v37 = vsub.f32 %v8751_v39, %v10602_v15  ;;  %v10603_v0 = vand.u32 4294901760, %v8764_v32 }
 0x113   :  { %6414 = vmatpush1.bf16.msra.mxu0 %v6413_v28  ;;  %6552 = vmatprep.subr.bf16.mxu1 %v8789_v17  ;;  %v6555_v28 = vpack.c.bf16 %v2721_v11, %v2714_v4  ;;  %v2755_v7 = vsub.f32 %v8773_v8, %v10604_v18  ;;  %v10606_v11 = vand.u32 4294901760, %v8653_v51  ;;  %v6425_v4 = vpack.c.bf16 %v8511_v10, %v8502_v19 }
 0x114   :  { %6416 = vmatprep.subr.bf16.mxu0 %v6415_v46  ;;  %v2748_v61 = vsub.f32 %v8764_v32, %v10603_v0  ;;  %v2762_v46 = vsub.f32 %v8778_v62, %v10605_v6  ;;  %v10607_v0 = vand.u32 4294901760, %v8658_v5  ;;  %v6559_v6 = vpack.c.bf16 %v2735_v9, %v2728_v56 }
 0x115   :  { %v8838_v15 = vsub.f32 %v8653_v51, %v10606_v11  ;;  %v2756_v51 = vand.u32 4294901760, %v2755_v7  ;;  %v10610_v9 = vand.u32 4294901760, %v8678_v44 }
 0x116   :  { %6554 = vmatpush3.bf16.msra.mxu1 %v8789_v17  ;;  %v8843_v18 = vsub.f32 %v8658_v5, %v10607_v0  ;;  %v2742_v17 = vand.u32 4294901760, %v2741_v37  ;;  %v2749_v52 = vand.u32 4294901760, %v2748_v61  ;;  %v2763_v11 = vand.u32 4294901760, %v2762_v46 }
 0x117   :  { %6418 = vmatpush1.bf16.msra.mxu0 %v6417_v25  ;;  %6556 = vmatprep.subr.bf16.mxu1 %v6555_v28  ;;  %v6423_v25 = vpack.c.bf16 %v8494_v14, %v8472_v49  ;;  %v10608_v5 = vand.u32 4294901760, %v8810_v2  ;;  %v10609_v0 = vand.u32 4294901760, %v8815_v43  ;;  %v10273_v37 = vand.u32 4294901760, %v8838_v15 }
 0x118   :  { %6420 = vmatprep.subr.bf16.mxu0 %v6419_v34  ;;  %v10272_v61 = vand.u32 4294901760, %v8843_v18  ;;  %v8861_v56 = vsub.f32 %v8678_v44, %v10610_v9  ;;  %v6567_v7 = vpack.c.bf16 %v2763_v11, %v2756_v51  ;;  %v10618_v9 = vld [vmem:[#allocation15_spill] sm:$0xff] }
 0x119   :  { %5656 = vmatmul.mubr.f32.vlgmr.msra.gmra.mrb[6].mxu1 %v10564_v30  ;;  %v2769_v34 = vsub.f32 %v8810_v2, %v10608_v5  ;;  %v2776_v14 = vsub.f32 %v8815_v43, %v10609_v0  ;;  %v6563_v30 = vpack.c.bf16 %v2749_v52, %v2742_v17  ;;  %v2783_v17 = vsub.f32 %v8838_v15, %v10273_v37  ;;  %v10612_v52 = vld [vmem:[#allocation12_spill] sm:$0xff]  ;;  %v8888_v11 = vpop.f32.mrb[2].mxu1 }
 0x11a   :  { %6558 = vmatpush3.bf16.msra.mxu1 %v6555_v28  ;;  %v10611_v28 = vand.u32 4294901760, %v8683_v24  ;;  %5690 = vmatprep.mubr.f32.mxu1 %v7479_v12  ;;  %v2790_v44 = vsub.f32 %v8843_v18, %v10272_v61  ;;  %10615 = vst [vmem:[#allocation12_spill] sm:$0xff] %v8888_v11  ;;  %v10617_v0 = vld [vmem:[#allocation28_spill] sm:$0xff] }
 0x11b   :  { %6422 = vmatpush1.bf16.msra.mxu0 %v6421_v16  ;;  %6560 = vmatprep.subr.bf16.mxu1 %v6559_v6  ;;  %v2770_v46 = vand.u32 4294901760, %v2769_v34  ;;  %v2777_v5 = vand.u32 4294901760, %v2776_v14  ;;  %v10614_v14 = vand.u32 4294901760, %v8724_v3  ;;  %v8890_v34 = vpop.f32.mrb[3].mxu1  ;;  %v2784_v61 = vand.u32 4294901760, %v2783_v17  ;;  %v10623_v17 = vld [vmem:[#allocation18_spill] sm:$0xff] }
 0x11c   :  { %6424 = vmatprep.subr.bf16.mxu0 %v6423_v25  ;;  %v8866_v16 = vsub.f32 %v8683_v24, %v10611_v28  ;;  %v10274_v24 = vand.u32 4294901760, %v8861_v56  ;;  %10616 = vst [vmem:[#allocation44_spill] sm:$0xff] %v8890_v34  ;;  %v2791_v37 = vand.u32 4294901760, %v2790_v44  ;;  %v10619_v25 = vld [vmem:[#allocation16_spill] sm:$0xff] }
 0x11d   :  { %v8886_v51 = vsub.f32 %v8724_v3, %v10614_v14  ;;  %v6571_v28 = vpack.c.bf16 %v2777_v5, %v2770_v46  ;;  %v10622_v46 = vld [vmem:[#allocation17_spill] sm:$0xff] }
 0x11e   :  { %6562 = vmatpush3.bf16.msra.mxu1 %v6559_v6  ;;  %v2797_v3 = vsub.f32 %v8861_v56, %v10274_v24  ;;  %v6575_v5 = vpack.c.bf16 %v2791_v37, %v2784_v61 }
 0x11f   :  { %6426 = vmatpush1.bf16.msra.mxu0 %v6425_v4  ;;  %6564 = vmatprep.subr.bf16.mxu1 %v6563_v30  ;;  %v10613_v4 = vand.u32 4294901760, %v8707_v50  ;;  %v10276_v34 = vand.u32 4294901760, %v8886_v51 }
 0x120   :  { %6428 = vmatprep.subr.bf16.mxu0 %v10612_v52  ;;  %v2798_v44 = vand.u32 4294901760, %v2797_v3 }
 0x121   :  { %v8881_v6 = vsub.f32 %v8707_v50, %v10613_v4  ;;  %v10620_v50 = vand.u32 4294901760, %v8866_v16  ;;  %v2818_v11 = vsub.f32 %v8886_v51, %v10276_v34  ;;  %v10629_v34 = vld [vmem:[#allocation25_spill] sm:$0xff] }
 0x122   :  { %2193 = vmatmul.mubr.f32.vlgmr.msra.gmra.mrb[4].mxu0 %v10617_v0  ;;  %6566 = vmatpush3.bf16.msra.mxu1 %v6563_v30  ;;  %v10621_v30 = vld [vmem:[#allocation36_spill] sm:$0xff] }
 0x123   :  { %6430 = vmatpush1.bf16.msra.mxu0 %v10618_v9  ;;  %6568 = vmatprep.subr.bf16.mxu1 %v6567_v7  ;;  %v2804_v4 = vsub.f32 %v8866_v16, %v10620_v50  ;;  %v10275_v14 = vand.u32 4294901760, %v8881_v6  ;;  %v2819_v3 = vand.u32 4294901760, %v2818_v11  ;;  %v6591_v11 = vpack.c.bf16 %v8731_v35, %v8712_v29 }
 0x124   :  { %6432 = vmatprep.subr.bf16.mxu0 %v10619_v25  ;;  %2198 = vmatprep.mubr.f32.mxu0 %v10464_v45  ;;  %v10624_v25 = vld [vmem:[#allocation19_spill] sm:$0xff]  ;;  %v10637_v35 = vand.u32 4294901760, %v8189_v60  ;;  %v10643_v60 = vand.u32 4294901760, %v8213_v1  ;;  %v10648_v1 = vand.u32 4294901760, %v8243_v54 }
 0x125   :  { %v2805_v24 = vand.u32 4294901760, %v2804_v4  ;;  %v2811_v50 = vsub.f32 %v8881_v6, %v10275_v14  ;;  %v10626_v4 = vld [vmem:[#allocation21_spill] sm:$0xff] }
 0x126   :  { %2201 = vmatmul.mubr.f32.gmra.mrb[6].mxu0 %v10621_v30  ;;  %6570 = vmatpush3.bf16.msra.mxu1 %v6567_v7  ;;  %v10625_v7 = vld [vmem:[#allocation20_spill] sm:$0xff] }
 0x127   :  { %6434 = vmatpush1.bf16.msra.mxu0 %v10622_v46  ;;  %6572 = vmatprep.subr.bf16.mxu1 %v6571_v28  ;;  %v6579_v37 = vpack.c.bf16 %v2805_v24, %v2798_v44  ;;  %v2812_v61 = vand.u32 4294901760, %v2811_v50  ;;  %v10628_v46 = vld [vmem:[#allocation24_spill] sm:$0xff]  ;;  %v10631_v24 = vld [vmem:[#allocation6_spill] sm:$0xff]  ;;  %v10633_v44 = vld [vmem:[#allocation11_spill] sm:$0xff]  ;;  %v10634_v50 = vand.u32 4294901760, %v8181_v31  ;;  %v10639_v31 = vand.u32 4294901760, %v8206_v36 }
 0x128   :  { %6436 = vmatprep.subr.bf16.mxu0 %v10623_v17  ;;  %2303 = vmatprep.mubr.f32.mxu0 %v10464_v45  ;;  %v10627_v17 = vld [vmem:[#allocation22_spill] sm:$0xff]  ;;  %v10645_v36 = vand.u32 4294901760, %v8239_v38  ;;  %v10650_v38 = vand.u32 4294901760, %v8257_v22 }
 0x129   :  { %v6583_v14 = vpack.c.bf16 %v2819_v3, %v2812_v61  ;;  %v10636_v3 = vld [vmem:[#allocation27_spill] sm:$0xff] }
 0x12a   :  { %6574 = vmatpush3.bf16.msra.mxu1 %v6571_v28  ;;  %v6587_v28 = vpack.c.bf16 %v8693_v20, %v8688_v40 }
 0x12b   :  { %6438 = vmatpush1.bf16.msra.mxu0 %v10624_v25  ;;  %6576 = vmatprep.subr.bf16.mxu1 %v6575_v5 }
 0x12c   :  { %6440 = vmatprep.subr.bf16.mxu0 %v10625_v7  ;;  %v10630_v7 = vld [vmem:[#allocation26_spill] sm:$0xff] }
 0x12e   :  { %6578 = vmatpush3.bf16.msra.mxu1 %v6575_v5  ;;  %v10632_v5 = vld [vmem:[#allocation10_spill] sm:$0xff] }
 0x12f   :  { %6442 = vmatpush1.bf16.msra.mxu0 %v10626_v4  ;;  %6580 = vmatprep.subr.bf16.mxu1 %v6579_v37 }
 0x130   :  { %6444 = vmatprep.subr.bf16.mxu0 %v10627_v17 }
 0x132   :  { %6582 = vmatpush3.bf16.msra.mxu1 %v6579_v37  ;;  %v10635_v37 = vand.u32 4294901760, %v8186_v23  ;;  %v10640_v23 = vand.u32 4294901760, %v8209_v48 }
 0x133   :  { %6446 = vmatpush1.bf16.msra.mxu0 %v10628_v46  ;;  %6584 = vmatprep.subr.bf16.mxu1 %v6583_v14 }
 0x134   :  { %6448 = vmatprep.subr.bf16.mxu0 %v10629_v34  ;;  %v6459_v61 = vpack.c.bf16 %v10635_v37, %v10634_v50  ;;  %v6463_v50 = vpack.c.bf16 %v10640_v23, %v10639_v31  ;;  %v6599_v37 = vpack.c.bf16 %v8778_v62, %v8773_v8  ;;  %v10651_v31 = vld [vmem:[#allocation23_spill] sm:$0xff] }
 0x135   :  { %v10652_v23 = vand.u32 4294901760, %v10651_v31 }
 0x136   :  { %6586 = vmatpush3.bf16.msra.mxu1 %v6583_v14  ;;  %v6595_v14 = vpack.c.bf16 %v8764_v32, %v8751_v39  ;;  %v10641_v32 = vld [vmem:[#allocation29_spill] sm:$0xff] }
 0x137   :  { %6450 = vmatpush1.bf16.msra.mxu0 %v10630_v7  ;;  %6588 = vmatprep.subr.bf16.mxu1 %v6587_v28 }
 0x138   :  { %6452 = vmatprep.subr.bf16.mxu0 %v10631_v24 }
 0x139   :  { %5691 = vmatmul.mubr.f32.vlgmr.msra.gmra.mrb[6].mxu1 %v10478_v55 }
 0x13a   :  { %6590 = vmatpush3.bf16.msra.mxu1 %v6587_v28  ;;  %5725 = vmatprep.mubr.f32.mxu1 %v10617_v0  ;;  %v10638_v28 = vand.u32 4294901760, %v8203_v42  ;;  %v10642_v0 = vand.u32 4294901760, %v8211_v59  ;;  %v10647_v59 = vand.u32 4294901760, %v8241_v53  ;;  %v10653_v53 = vld [vmem:[#allocation34_spill] sm:$0xff] }
 0x13b   :  { %6454 = vmatpush1.bf16.msra.mxu0 %v10632_v5  ;;  %6592 = vmatprep.subr.bf16.mxu1 %v6591_v11 }
 0x13c   :  { %6456 = vmatprep.subr.bf16.mxu0 %v10633_v44  ;;  %v6461_v5 = vpack.c.bf16 %v10638_v28, %v10637_v35  ;;  %v6465_v42 = vpack.c.bf16 %v10643_v60, %v10642_v0  ;;  %v10644_v35 = vand.u32 4294901760, %v8230_v41  ;;  %v10649_v41 = vand.u32 4294901760, %v8245_v47  ;;  %v10656_v47 = vld [vmem:[#allocation13_spill] sm:$0xff] }
 0x13d   :  { %v6607_v28 = vpack.c.bf16 %v8843_v18, %v8838_v15  ;;  %v10657_v0 = vand.u32 4294901760, %v10656_v47  ;;  %v6611_v60 = vpack.c.bf16 %v8866_v16, %v8861_v56 }
 0x13e   :  { %6594 = vmatpush3.bf16.msra.mxu1 %v6591_v11  ;;  %v6467_v48 = vpack.c.bf16 %v10645_v36, %v10644_v35  ;;  %v6603_v11 = vpack.c.bf16 %v8815_v43, %v8810_v2  ;;  %v10659_v35 = vld [vmem:[#allocation14_spill] sm:$0xff] }
 0x13f   :  { %6458 = vmatpush1.bf16.msra.mxu0 %v10636_v3  ;;  %6596 = vmatprep.subr.bf16.mxu1 %v6595_v14  ;;  %v10660_v36 = vand.u32 4294901760, %v10659_v35  ;;  %v10689_v35 = vand.u32 4294901760, %v8693_v20  ;;  %v10691_v20 = vld [vmem:[#allocation5_spill] sm:$0xff] }
 0x140   :  { %6460 = vmatprep.subr.bf16.mxu0 %v6459_v61  ;;  %v10646_v61 = vld [vmem:[#allocation37_spill] sm:$0xff] }
 0x142   :  { %2307 = vmatmul.mubr.f32.vlgmr.msra.gmra.mrb[4].mxu0 %v10641_v32  ;;  %6598 = vmatpush3.bf16.msra.mxu1 %v6595_v14  ;;  %v6471_v14 = vpack.c.bf16 %v10650_v38, %v10649_v41  ;;  %v10664_v41 = vand.u32 4294901760, %v8370_v21  ;;  %v10665_v38 = vand.u32 4294901760, %v8383_v26  ;;  %v10672_v26 = vand.u32 4294901760, %v8472_v49  ;;  %v10673_v21 = vld [vmem:[#allocation32_spill] sm:$0xff]  ;;  %v10678_v49 = vld [vmem:[#allocation39_spill] sm:$0xff] }
 0x143   :  { %6462 = vmatpush1.bf16.msra.mxu0 %v6461_v5  ;;  %6600 = vmatprep.subr.bf16.mxu1 %v6599_v37  ;;  %v6469_v5 = vpack.c.bf16 %v10648_v1, %v10647_v59  ;;  %v10662_v59 = vld [vmem:[#allocation8_spill] sm:$0xff] }
 0x144   :  { %6464 = vmatprep.subr.bf16.mxu0 %v6463_v50  ;;  %2312 = vmatprep.mubr.f32.mxu0 %v10464_v45  ;;  %v10654_v50 = vand.u32 4294901760, %v10653_v53  ;;  %v10663_v1 = vand.u32 4294901760, %v10662_v59  ;;  %v10670_v53 = vand.u32 4294901760, %v8466_v58  ;;  %v10677_v58 = vld [vmem:[#allocation35_spill] sm:$0xff] }
 0x145   :  { %v9071_v59 = vld [vmem:[%s10080_s3] sm:$0xff] }
 0x146   :  { %2316 = vmatmul.mubr.f32.gmra.mrb[6].mxu0 %v10646_v61  ;;  %6602 = vmatpush3.bf16.msra.mxu1 %v6599_v37  ;;  %v6473_v54 = vpack.c.bf16 %v10654_v50, %v10652_v23  ;;  %v10655_v37 = vand.u32 4294901760, %v8283_v13  ;;  %v10669_v23 = vand.u32 4294901760, %v8427_v27  ;;  %v10676_v27 = vand.u32 4294901760, %v8511_v10  ;;  %v10680_v10 = vld [vmem:[#allocation42_spill] sm:$0xff] }
 0x147   :  { %6466 = vmatpush1.bf16.msra.mxu0 %v6465_v42  ;;  %6604 = vmatprep.subr.bf16.mxu1 %v6603_v11  ;;  %v10658_v42 = vand.u32 4294901760, %v8291_v57  ;;  %v6481_v57 = vpack.c.bf16 %v10665_v38, %v10664_v41  ;;  %v9091_v41 = vld [vmem:[%s10080_s3 + $0x98] sm:$0xff] }
 0x148   :  { %6468 = vmatprep.subr.bf16.mxu0 %v6467_v48  ;;  %2482 = vmatprep.mubr.f32.mxu0 %v10464_v45  ;;  %v6475_v22 = vpack.c.bf16 %v10657_v0, %v10655_v37  ;;  %v6485_v50 = vpack.c.bf16 %v10670_v53, %v10669_v23  ;;  %v10674_v37 = vand.u32 4294901760, %v10673_v21  ;;  %v9123_v53 = vld [vmem:[%s10080_s3 + $0xa0] sm:$0xff] }
 0x149   :  { %v6477_v48 = vpack.c.bf16 %v10660_v36, %v10658_v42  ;;  %v10688_v42 = vand.u32 4294901760, %v8688_v40  ;;  %v10690_v40 = vand.u32 4294901760, %v8712_v29  ;;  %v9076_v29 = vld [vmem:[%s10080_s3 + $0x8] sm:$0xff] }
 0x14a   :  { %6606 = vmatpush3.bf16.msra.mxu1 %v6603_v11  ;;  %v10661_v11 = vand.u32 4294901760, %v8334_v63  ;;  %v6487_v47 = vpack.c.bf16 %v10674_v37, %v10672_v26  ;;  %v3391_v38 = vand.u32 4294901760, %v9076_v29  ;;  %v3448_v37 = vand.u32 4294901760, %v9123_v53 }
 0x14b   :  { %6470 = vmatpush1.bf16.msra.mxu0 %v6469_v5  ;;  %6608 = vmatprep.subr.bf16.mxu1 %v6607_v28  ;;  %v6615_v5 = vpack.c.bf16 %v8886_v51, %v8881_v6  ;;  %v6651_v36 = vpack.c.bf16 %v10689_v35, %v10688_v42 }
 0x14c   :  { %6472 = vmatprep.subr.bf16.mxu0 %v6471_v14  ;;  %v6479_v13 = vpack.c.bf16 %v10663_v1, %v10661_v11  ;;  %v10666_v14 = vand.u32 4294901760, %v8393_v33  ;;  %v10675_v33 = vand.u32 4294901760, %v8502_v19  ;;  %v10679_v19 = vld [vmem:[#allocation16_spill] sm:$0xff]  ;;  %v10693_v11 = vld [vmem:[#allocation10_spill] sm:$0xff] }
 0x14e   :  { %6610 = vmatpush3.bf16.msra.mxu1 %v6607_v28  ;;  %v10667_v28 = vld [vmem:[#allocation31_spill] sm:$0xff]  ;;  %v6489_v0 = vpack.c.bf16 %v10676_v27, %v10675_v33  ;;  %v9156_v27 = vld [vmem:[%s10080_s3 + $0x28] sm:$0xff] }
 0x14f   :  { %6474 = vmatpush1.bf16.msra.mxu0 %v6473_v54  ;;  %6612 = vmatprep.subr.bf16.mxu1 %v6611_v60  ;;  %v10668_v31 = vand.u32 4294901760, %v10667_v28  ;;  %v10671_v54 = vld [vmem:[#allocation33_spill] sm:$0xff]  ;;  %v9151_v33 = vld [vmem:[%s10080_s3 + $0x20] sm:$0xff]  ;;  %v10287_v42 = vand.u32 4294901760, %v9156_v27 }
 0x150   :  { %6476 = vmatprep.subr.bf16.mxu0 %v6475_v22  ;;  %v10685_v22 = vld [vmem:[#allocation40_spill] sm:$0xff]  ;;  %v9108_v28 = vld [vmem:[%s10080_s3 + $0x10] sm:$0xff] }
 0x151   :  { %v6483_v63 = vpack.c.bf16 %v10668_v31, %v10666_v14  ;;  %v3445_v14 = vand.u32 4294901760, %v9091_v41  ;;  %v9113_v31 = vld [vmem:[%s10080_s3 + $0x18] sm:$0xff]  ;;  %v3394_v26 = vand.u32 4294901760, %v9108_v28 }
 0x152   :  { %6614 = vmatpush3.bf16.msra.mxu1 %v6611_v60  ;;  %v10686_v60 = vld [vmem:[#allocation7_spill] sm:$0xff]  ;;  %v3397_v21 = vand.u32 4294901760, %v9113_v31 }
 0x153   :  { %6478 = vmatpush1.bf16.msra.mxu0 %v6477_v48  ;;  %6616 = vmatprep.subr.bf16.mxu1 %v6615_v5 }
 0x154   :  { %6480 = vmatprep.subr.bf16.mxu0 %v6479_v13 }
 0x156   :  { %6618 = vmatpush3.bf16.msra.mxu1 %v6615_v5  ;;  %v9086_v5 = vld [vmem:[%s10080_s3 + $0x90] sm:$0xff] }
 0x157   :  { %6482 = vmatpush1.bf16.msra.mxu0 %v6481_v57  ;;  %6620 = vmatprep.subr.bf16.mxu1 %v10671_v54  ;;  %v3442_v57 = vand.u32 4294901760, %v9086_v5 }
 0x158   :  { %6484 = vmatprep.subr.bf16.mxu0 %v6483_v63  ;;  %v10697_v63 = vand.u32 4294901760, %v8773_v8 }
 0x159   :  { %5726 = vmatmul.mubr.f32.vlgmr.msra.gmra.mrb[6].mxu1 %v10621_v30  ;;  %v10683_v30 = vld [vmem:[#allocation38_spill] sm:$0xff] }
 0x15a   :  { %6622 = vmatpush3.bf16.msra.mxu1 %v10671_v54  ;;  %5760 = vmatprep.mubr.f32.mxu1 %v10641_v32  ;;  %v10681_v32 = vld [vmem:[#allocation17_spill] sm:$0xff] }
 0x15b   :  { %6486 = vmatpush1.bf16.msra.mxu0 %v6485_v50  ;;  %6624 = vmatprep.subr.bf16.mxu1 %v10677_v58  ;;  %v9128_v50 = vld [vmem:[%s10080_s3 + $0xa8] sm:$0xff] }
 0x15c   :  { %6488 = vmatprep.subr.bf16.mxu0 %v6487_v47  ;;  %v3451_v47 = vand.u32 4294901760, %v9128_v50 }
 0x15e   :  { %6626 = vmatpush3.bf16.msra.mxu1 %v10677_v58 }
 0x15f   :  { %6490 = vmatpush1.bf16.msra.mxu0 %v6489_v0  ;;  %6628 = vmatprep.subr.bf16.mxu1 %v10678_v49  ;;  %v10699_v0 = vand.u32 4294901760, %v8810_v2  ;;  %v9177_v2 = vpack.c.bf16 %v3397_v21, %v3394_v26 }
 0x160   :  { %6492 = vmatprep.subr.bf16.mxu0 %v10612_v52  ;;  %v10682_v52 = vld [vmem:[#allocation18_spill] sm:$0xff] }
 0x162   :  { %2484 = vmatmul.mubr.f32.vlgmr.msra.gmra.mrb[4].mxu0 %v7479_v12  ;;  %6630 = vmatpush3.bf16.msra.mxu1 %v10678_v49 }
 0x163   :  { %6494 = vmatpush1.bf16.msra.mxu0 %v10618_v9  ;;  %6632 = vmatprep.subr.bf16.mxu1 %v10680_v10  ;;  %v10684_v9 = vld [vmem:[#allocation20_spill] sm:$0xff] }
 0x164   :  { %6496 = vmatprep.subr.bf16.mxu0 %v10679_v19  ;;  %2489 = vmatprep.mubr.f32.mxu0 %v10464_v45  ;;  %v10700_v19 = vand.u32 4294901760, %v8815_v43  ;;  %v9184_v43 = vpack.c.bf16 %v3451_v47, %v3448_v37 }
 0x166   :  { %2491 = vmatmul.mubr.f32.gmra.mrb[6].mxu0 %v10478_v55  ;;  %6634 = vmatpush3.bf16.msra.mxu1 %v10680_v10 }
 0x167   :  { %6498 = vmatpush1.bf16.msra.mxu0 %v10681_v32  ;;  %6636 = vmatprep.subr.bf16.mxu1 %v10683_v30  ;;  %v9166_v32 = vld [vmem:[%s10080_s3 + $0xb0] sm:$0xff] }
 0x168   :  { %6500 = vmatprep.subr.bf16.mxu0 %v10682_v52  ;;  %2593 = vmatprep.mubr.f32.mxu0 %v10464_v45  ;;  %v9171_v52 = vld [vmem:[%s10080_s3 + $0xb8] sm:$0xff]  ;;  %v10286_v35 = vand.u32 4294901760, %v9166_v32 }
 0x16a   :  { %6638 = vmatpush3.bf16.msra.mxu1 %v10683_v30 }
 0x16b   :  { %6502 = vmatpush1.bf16.msra.mxu0 %v10624_v25  ;;  %6640 = vmatprep.subr.bf16.mxu1 %v10685_v22  ;;  %v10687_v25 = vld [vmem:[#allocation43_spill] sm:$0xff] }
 0x16c   :  { %6504 = vmatprep.subr.bf16.mxu0 %v10684_v9  ;;  %v3400_v9 = vand.u32 4294901760, %v9151_v33 }
 0x16e   :  { %6642 = vmatpush3.bf16.msra.mxu1 %v10685_v22 }
 0x16f   :  { %6506 = vmatpush1.bf16.msra.mxu0 %v10626_v4  ;;  %6644 = vmatprep.subr.bf16.mxu1 %v10686_v60 }
 0x170   :  { %6508 = vmatprep.subr.bf16.mxu0 %v10627_v17  ;;  %v9052_v17 = vld [vmem:[%s10080_s3 + $0x80] sm:$0xff] }
 0x171   :  { %v3436_v4 = vand.u32 4294901760, %v9052_v17 }
 0x172   :  { %6646 = vmatpush3.bf16.msra.mxu1 %v10686_v60 }
 0x173   :  { %6510 = vmatpush1.bf16.msra.mxu0 %v10628_v46  ;;  %6648 = vmatprep.subr.bf16.mxu1 %v10687_v25  ;;  %v10692_v46 = vand.u32 4294901760, %v10691_v20  ;;  %v9199_v20 = vld [vmem:[%s10080_s3 + $0x38] sm:$0xff] }
 0x174   :  { %6512 = vmatprep.subr.bf16.mxu0 %v10629_v34  ;;  %v9057_v34 = vld [vmem:[%s10080_s3 + $0x88] sm:$0xff] }
 0x175   :  { %v3439_v48 = vand.u32 4294901760, %v9057_v34 }
 0x176   :  { %6650 = vmatpush3.bf16.msra.mxu1 %v10687_v25 }
 0x177   :  { %6514 = vmatpush1.bf16.msra.mxu0 %v10630_v7  ;;  %6652 = vmatprep.subr.bf16.mxu1 %v6651_v36  ;;  %v6655_v7 = vpack.c.bf16 %v10692_v46, %v10690_v40  ;;  %v9194_v40 = vld [vmem:[%s10080_s3 + $0x30] sm:$0xff]  ;;  %v10701_v46 = vand.u32 4294901760, %v8838_v15  ;;  %v9220_v15 = vpack.c.bf16 %v10287_v42, %v3400_v9 }
 0x178   :  { %6516 = vmatprep.subr.bf16.mxu0 %v10631_v24  ;;  %v10694_v24 = vand.u32 4294901760, %v8751_v39  ;;  %v3388_v39 = vand.u32 4294901760, %v9071_v59 }
 0x179   :  { %5761 = vmatmul.mubr.f32.vlgmr.msra.gmra.mrb[6].mxu1 %v10646_v61  ;;  %v10695_v61 = vld [vmem:[#allocation9_spill] sm:$0xff] }
 0x17a   :  { %6654 = vmatpush3.bf16.msra.mxu1 %v6651_v36  ;;  %v10696_v1 = vand.u32 4294901760, %v10695_v61  ;;  %5795 = vmatprep.mubr.f32.mxu1 %v7479_v12  ;;  %v9134_v8 = vpack.c.bf16 %v3391_v38, %v3388_v39  ;;  %v10279_v36 = vand.u32 4294901760, %v9171_v52  ;;  %v9214_v61 = vld [vmem:[%s10080_s3 + $0xc8] sm:$0xff] }
 0x17b   :  { %6518 = vmatpush1.bf16.msra.mxu0 %v10693_v11  ;;  %6656 = vmatprep.subr.bf16.mxu1 %v6655_v7 }
 0x17c   :  { %6520 = vmatprep.subr.bf16.mxu0 %v10633_v44  ;;  %v6659_v13 = vpack.c.bf16 %v10696_v1, %v10694_v24  ;;  %v9097_v44 = vpack.c.bf16 %v3439_v48, %v3436_v4  ;;  %v9209_v24 = vld [vmem:[%s10080_s3 + $0xc0] sm:$0xff]  ;;  %v10281_v1 = vand.u32 4294901760, %v9194_v40 }
 0x17e   :  { %6658 = vmatpush3.bf16.msra.mxu1 %v6655_v7  ;;  %v10702_v7 = vand.u32 4294901760, %v8843_v18  ;;  %v9227_v18 = vpack.c.bf16 %v10279_v36, %v10286_v35 }
 0x17f   :  { %6522 = vmatpush1.bf16.msra.mxu0 %v10636_v3  ;;  %6660 = vmatprep.subr.bf16.mxu1 %v6659_v13  ;;  %v10698_v3 = vand.u32 4294901760, %v8778_v62  ;;  %v9140_v62 = vpack.c.bf16 %v3445_v14, %v3442_v57 }
 0x180   :  { %6716 = vmatprep.subr.bf16.mxu0 %v9097_v44  ;;  %v6671_v11 = vpack.c.bf16 %v10702_v7, %v10701_v46  ;;  %v10704_v46 = vand.u32 4294901760, %v8866_v16 }
 0x181   :  { %v6663_v23 = vpack.c.bf16 %v10698_v3, %v10697_v63  ;;  %v10283_v63 = vand.u32 4294901760, %v9209_v24  ;;  %v10282_v3 = vand.u32 4294901760, %v9214_v61 }
 0x182   :  { %2595 = vmatmul.mubr.f32.vlgmr.msra.gmra.mrb[4].mxu0 %v7479_v12  ;;  %6662 = vmatpush3.bf16.msra.mxu1 %v6659_v13  ;;  %v10280_v13 = vand.u32 4294901760, %v9199_v20 }
 0x183   :  { %2600 = vmatprep.mubr.f32.mxu0 %v10464_v45  ;;  %6664 = vmatprep.subr.bf16.mxu1 %v6663_v23  ;;  %v6667_v45 = vpack.c.bf16 %v10700_v19, %v10699_v0  ;;  %v9241_v0 = vld [vmem:[%s10080_s3 + $0x48] sm:$0xff]  ;;  %v10703_v19 = vand.u32 4294901760, %v8861_v56  ;;  %v9259_v36 = vpack.c.bf16 %v10282_v3, %v10283_v63  ;;  %v10709_v3 = vld [vmem:[#allocation30_spill] sm:$0xff] }
 0x184   :  { %6718 = vmatpush3.bf16.msra.mxu0 %v9134_v8  ;;  %v9252_v7 = vpack.c.bf16 %v10280_v13, %v10281_v1  ;;  %v10284_v16 = vand.u32 4294901760, %v9241_v0 }
 0x185   :  { %6720 = vmatprep.subr.bf16.mxu0 %v9140_v62  ;;  %10705 = vst [vmem:[#allocation28_spill] sm:$0xff] %v9259_v36 }
 0x186   :  { %2602 = vmatmul.mubr.f32.gmra.mrb[6].mxu0 %v10478_v55  ;;  %6666 = vmatpush3.bf16.msra.mxu1 %v6663_v23  ;;  %v9236_v23 = vld [vmem:[%s10080_s3 + $0x40] sm:$0xff] }
 0x187   :  { %6668 = vmatprep.subr.bf16.mxu1 %v6667_v45  ;;  %v10285_v56 = vand.u32 4294901760, %v9236_v23 }
 0x188   :  { %6722 = vmatpush3.bf16.msra.mxu0 %v9177_v2 }
 0x189   :  { %6724 = vmatprep.subr.bf16.mxu0 %v9184_v43  ;;  %v9272_v1 = vpack.c.bf16 %v10284_v16, %v10285_v56  ;;  %v10711_v16 = vld [vmem:[#allocation12_spill] sm:$0xff] }
 0x18a   :  { %6670 = vmatpush3.bf16.msra.mxu1 %v6667_v45  ;;  %v6675_v45 = vpack.c.bf16 %v10704_v46, %v10703_v19  ;;  %v10706_v19 = vand.u32 4294901760, %v8881_v6  ;;  %v10707_v46 = vand.u32 4294901760, %v8886_v51 }
 0x18b   :  { %6672 = vmatprep.subr.bf16.mxu1 %v6671_v11  ;;  %10708 = vst [vmem:[#allocation15_spill] sm:$0xff] %v9272_v1 }
 0x18c   :  { %6726 = vmatpush3.bf16.msra.mxu0 %v9220_v15  ;;  %v6679_v13 = vpack.c.bf16 %v10707_v46, %v10706_v19  ;;  %v10710_v19 = vld [vmem:[#allocation41_spill] sm:$0xff] }
 0x18d   :  { %6728 = vmatprep.subr.bf16.mxu0 %v9227_v18 }
 0x18e   :  { %6674 = vmatpush3.bf16.msra.mxu1 %v6671_v11 }
 0x18f   :  { %6676 = vmatprep.subr.bf16.mxu1 %v6675_v45 }
 0x190   :  { %6730 = vmatpush3.bf16.msra.mxu0 %v9252_v7 }
 0x191   :  { %6732 = vmatprep.subr.bf16.mxu0 %v9259_v36 }
 0x192   :  { %6678 = vmatpush3.bf16.msra.mxu1 %v6675_v45  ;;  %v10712_v45 = vld [vmem:[#allocation44_spill] sm:$0xff] }
 0x193   :  { %6680 = vmatprep.subr.bf16.mxu1 %v6679_v13 }
 0x194   :  { %6734 = vmatpush3.bf16.msra.mxu0 %v9272_v1 }
 0x195   :  { %v960_v11 = vpop.f32.mrb[0].mxu0 }
 0x196   :  { %v9277_v6 = vadd.f32 %v960_v11, %v10709_v3  ;;  %v962_v51 = vpop.f32.mrb[1].mxu0  ;;  %6682 = vmatpush3.bf16.msra.mxu1 %v6679_v13  ;;  %v9298_v13 = vsub.f32 %v9052_v17, %v3436_v4  ;;  %v9323_v17 = vsub.f32 %v9091_v41, %v3445_v14  ;;  %v9335_v4 = vsub.f32 %v9113_v31, %v3397_v21 }
 0x197   :  { %v9280_v46 = vadd.f32 %v962_v51, %v10710_v19  ;;  %6684 = vmatprep.subr.bf16.mxu1 %v10671_v54  ;;  %v9366_v31 = vsub.f32 %v9151_v33, %v3400_v9  ;;  %v10713_v33 = vand.u32 4294901760, %v9156_v27  ;;  %v10715_v19 = vand.u32 4294901760, %v9171_v52 }
 0x198   :  { %v10289_v41 = vand.u32 4294901760, %v9323_v17  ;;  %v10294_v14 = vand.u32 4294901760, %v9335_v4 }
 0x199   :  { %v967_v63 = vpop.f32.mrb[2].mxu0  ;;  %5796 = vmatmul.mubr.f32.vlgmr.msra.gmra.mrb[6].mxu1 %v10478_v55  ;;  %v9386_v9 = vsub.f32 %v9156_v27, %v10713_v33  ;;  %v10292_v27 = vand.u32 4294901760, %v9366_v31 }
 0x19a   :  { %v9284_v56 = vadd.f32 %v967_v63, %v10711_v16  ;;  %v969_v35 = vpop.f32.mrb[3].mxu0  ;;  %6686 = vmatpush3.bf16.msra.mxu1 %v10671_v54  ;;  %5830 = vmatprep.mubr.f32.mxu1 %v7479_v12  ;;  %v9308_v12 = vsub.f32 %v9071_v59, %v3388_v39  ;;  %v9313_v54 = vsub.f32 %v9076_v29, %v3391_v38 }
 0x19b   :  { %v9288_v42 = vadd.f32 %v969_v35, %v10712_v45  ;;  %6688 = vmatprep.subr.bf16.mxu1 %v10677_v58  ;;  %v9303_v35 = vsub.f32 %v9057_v34, %v3439_v48  ;;  %v9330_v34 = vsub.f32 %v9108_v28, %v3394_v26  ;;  %v10301_v48 = vand.u32 4294901760, %v9298_v13 }
 0x19c   :  { %v10296_v29 = vand.u32 4294901760, %v9308_v12  ;;  %v9347_v39 = vsub.f32 %v9123_v53, %v3448_v37  ;;  %v9352_v38 = vsub.f32 %v9128_v50, %v3451_v47  ;;  %v3651_v21 = vsub.f32 %v9323_v17, %v10289_v41 }
 0x19d   :  { %v10297_v59 = vand.u32 4294901760, %v9303_v35  ;;  %v3539_v3 = vsub.f32 %v9335_v4, %v10294_v14  ;;  %v9404_v45 = vsub.f32 %v9171_v52, %v10715_v19  ;;  %v10718_v19 = vand.u32 4294901760, %v9199_v20 }
 0x19e   :  { %6690 = vmatpush3.bf16.msra.mxu1 %v10677_v58  ;;  %v9318_v58 = vsub.f32 %v9086_v5, %v3442_v57  ;;  %v10288_v57 = vand.u32 4294901760, %v9330_v34  ;;  %v3518_v53 = vsub.f32 %v9308_v12, %v10296_v29  ;;  %v10293_v37 = vand.u32 4294901760, %v9347_v39 }
 0x19f   :  { %6692 = vmatprep.subr.bf16.mxu1 %v10678_v49  ;;  %v3637_v28 = vsub.f32 %v9303_v35, %v10297_v59  ;;  %v10291_v47 = vand.u32 4294901760, %v9352_v38  ;;  %v10722_v29 = vand.u32 4294901760, %v9214_v61 }
 0x1a0   :  { %v10290_v5 = vand.u32 4294901760, %v9318_v58  ;;  %v3532_v63 = vsub.f32 %v9330_v34, %v10288_v57  ;;  %v3519_v33 = vand.u32 4294901760, %v3518_v53 }
 0x1a1   :  { %v3638_v51 = vand.u32 4294901760, %v3637_v28  ;;  %v10300_v28 = vand.u32 4294901760, %v9386_v9  ;;  %v9454_v59 = vsub.f32 %v9214_v61, %v10722_v29 }
 0x1a2   :  { %6694 = vmatpush3.bf16.msra.mxu1 %v10678_v49  ;;  %v10295_v49 = vand.u32 4294901760, %v9313_v54  ;;  %v3644_v26 = vsub.f32 %v9318_v58, %v10290_v5  ;;  %v3652_v5 = vand.u32 4294901760, %v3651_v21  ;;  %v3533_v52 = vand.u32 4294901760, %v3532_v63  ;;  %v9435_v63 = vld [vmem:[%s10080_s3 + $0xd0] sm:$0xff] }
 0x1a3   :  { %6696 = vmatprep.subr.bf16.mxu1 %v10680_v10  ;;  %10723 = vst [vmem:[#allocation22_spill] sm:$0xff] %v9454_v59  ;;  %v10303_v61 = vand.u32 4294901760, %v9435_v63 }
 0x1a4   :  { %v3525_v50 = vsub.f32 %v9313_v54, %v10295_v49  ;;  %v3645_v41 = vand.u32 4294901760, %v3644_v26  ;;  %v10716_v26 = vand.u32 4294901760, %v9194_v40  ;;  %v3553_v49 = vsub.f32 %v9386_v9, %v10300_v28 }
 0x1a6   :  { %6698 = vmatpush3.bf16.msra.mxu1 %v10680_v10  ;;  %v3630_v10 = vsub.f32 %v9298_v13, %v10301_v48  ;;  %v3526_v57 = vand.u32 4294901760, %v3525_v50  ;;  %v10298_v50 = vand.u32 4294901760, %v9404_v45  ;;  %v9425_v21 = vsub.f32 %v9194_v40, %v10716_v26 }
 0x1a7   :  { %6700 = vmatprep.subr.bf16.mxu1 %v10683_v30  ;;  %v6751_v14 = vpack.c.bf16 %v3652_v5, %v3645_v41  ;;  %v10720_v40 = vand.u32 4294901760, %v9209_v24  ;;  %v9459_v5 = vld [vmem:[%s10080_s3 + $0x50] sm:$0xff]  ;;  %v3554_v28 = vand.u32 4294901760, %v3553_v49 }
 0x1a8   :  { %v3631_v11 = vand.u32 4294901760, %v3630_v10  ;;  %v3665_v10 = vsub.f32 %v9352_v38, %v10291_v47  ;;  %10717 = vst [vmem:[#allocation36_spill] sm:$0xff] %v9425_v21  ;;  %v9430_v47 = vsub.f32 %v9199_v20, %v10718_v19 }
 0x1a9   :  { %v9445_v26 = vsub.f32 %v9209_v24, %v10720_v40  ;;  %v10305_v40 = vand.u32 4294901760, %v9459_v5 }
 0x1aa   :  { %6702 = vmatpush3.bf16.msra.mxu1 %v10683_v30  ;;  %v10714_v30 = vand.u32 4294901760, %v9166_v32  ;;  %10719 = vst [vmem:[#allocation19_spill] sm:$0xff] %v9430_v47  ;;  %v3666_v19 = vand.u32 4294901760, %v3665_v10  ;;  %v9486_v10 = vld [vmem:[%s10080_s3 + $0xe8] sm:$0xff] }
 0x1ab   :  { %6704 = vmatprep.subr.bf16.mxu1 %v10685_v22  ;;  %10721 = vst [vmem:[#allocation21_spill] sm:$0xff] %v9445_v26 }
 0x1ac   :  { %v9398_v16 = vsub.f32 %v9166_v32, %v10714_v30  ;;  %v3658_v32 = vsub.f32 %v9347_v39, %v10293_v37  ;;  %v3540_v30 = vand.u32 4294901760, %v3539_v3  ;;  %v9440_v3 = vld [vmem:[%s10080_s3 + $0xd8] sm:$0xff]  ;;  %v6749_v37 = vpack.c.bf16 %v3526_v57, %v3519_v33 }
 0x1ad   :  { %v10302_v29 = vand.u32 4294901760, %v9440_v3  ;;  %v10725_v33 = vand.u32 4294901760, %v9241_v0 }
 0x1ae   :  { %6706 = vmatpush3.bf16.msra.mxu1 %v10685_v22  ;;  %v10299_v53 = vand.u32 4294901760, %v9398_v16  ;;  %v9419_v22 = vsub.f32 %v9366_v31, %v10292_v27  ;;  %v6747_v27 = vpack.c.bf16 %v3638_v51, %v3631_v11  ;;  %v3659_v20 = vand.u32 4294901760, %v3658_v32  ;;  %v9481_v32 = vld [vmem:[%s10080_s3 + $0xe0] sm:$0xff] }
 0x1af   :  { %6708 = vmatprep.subr.bf16.mxu1 %v10686_v60  ;;  %v6753_v24 = vpack.c.bf16 %v3540_v30, %v3533_v52  ;;  %v3679_v11 = vsub.f32 %v9404_v45, %v10298_v50  ;;  %v10304_v52 = vand.u32 4294901760, %v9445_v26  ;;  %v10724_v30 = vand.u32 4294901760, %v9236_v23 }
 0x1b0   :  { %v3672_v41 = vsub.f32 %v9398_v16, %v10299_v53  ;;  %v3547_v57 = vand.u32 4294901760, %v9419_v22  ;;  %v6755_v53 = vpack.c.bf16 %v3666_v19, %v3659_v20  ;;  %v9501_v51 = vsub.f32 %v9241_v0, %v10725_v33  ;;  %v9518_v0 = vld [vmem:[%s10080_s3 + $0x60] sm:$0xff] }
 0x1b1   :  { %v9492_v22 = vsub.f32 %v9236_v23, %v10724_v30  ;;  %v9506_v23 = vsub.f32 %v9435_v63, %v10303_v61  ;;  %v9511_v30 = vsub.f32 %v9440_v3, %v10302_v29  ;;  %v3680_v19 = vand.u32 4294901760, %v3679_v11 }
 0x1b2   :  { %6710 = vmatpush3.bf16.msra.mxu1 %v10686_v60  ;;  %v9464_v60 = vld [vmem:[%s10080_s3 + $0x58] sm:$0xff]  ;;  %10726 = vst [vmem:[#allocation24_spill] sm:$0xff] %v9501_v51  ;;  %v3673_v20 = vand.u32 4294901760, %v3672_v41  ;;  %v10728_v33 = vand.u32 4294901760, %v9425_v21  ;;  %v10729_v61 = vand.u32 4294901760, %v9430_v47  ;;  %v9539_v41 = vsub.f32 %v9459_v5, %v10305_v40 }
 0x1b3   :  { %6712 = vmatprep.subr.bf16.mxu1 %v10687_v25  ;;  %v10310_v50 = vand.u32 4294901760, %v9464_v60  ;;  %10727 = vst [vmem:[#allocation25_spill] sm:$0xff] %v9506_v23  ;;  %v10738_v36 = vand.u32 4294901760, %v9501_v51 }
 0x1b4   :  { %v3560_v29 = vsub.f32 %v9425_v21, %v10728_v33  ;;  %v3567_v49 = vsub.f32 %v9430_v47, %v10729_v61  ;;  %10730 = vst [vmem:[#allocation26_spill] sm:$0xff] %v9539_v41  ;;  %v10732_v61 = vand.u32 4294901760, %v9454_v59  ;;  %v10733_v47 = vand.u32 4294901760, %v9481_v32 }
 0x1b5   :  { %v9544_v11 = vsub.f32 %v9464_v60, %v10310_v50  ;;  %v6757_v33 = vpack.c.bf16 %v3554_v28, %v3547_v57  ;;  %v10739_v28 = vand.u32 4294901760, %v9518_v0 }
 0x1b6   :  { %6714 = vmatpush3.bf16.msra.mxu1 %v10687_v25  ;;  %v3686_v25 = vsub.f32 %v9445_v26, %v10304_v52  ;;  %v9557_v50 = vsub.f32 %v9481_v32, %v10733_v47  ;;  %v3561_v52 = vand.u32 4294901760, %v3560_v29  ;;  %v3568_v21 = vand.u32 4294901760, %v3567_v49 }
 0x1b7   :  { %6748 = vmatprep.subr.bf16.mxu1 %v6747_v27  ;;  %v9523_v27 = vld [vmem:[%s10080_s3 + $0x68] sm:$0xff]  ;;  %10731 = vst [vmem:[#allocation6_spill] sm:$0xff] %v9544_v11  ;;  %v10323_v26 = vand.u32 4294901760, %v9539_v41  ;;  %v10326_v1 = vand.u32 4294901760, %v9544_v11  ;;  %v9575_v29 = vsub.f32 %v9518_v0, %v10739_v28  ;;  %v10743_v49 = vand.u32 4294901760, %v9506_v23 }
 0x1b8   :  { %10734 = vst [vmem:[#allocation11_spill] sm:$0xff] %v9557_v50  ;;  %v3687_v48 = vand.u32 4294901760, %v3686_v25  ;;  %v10741_v57 = vand.u32 4294901760, %v9523_v27 }
 0x1b9   :  { %5831 = vmatmul.mubr.f32.vlgmr.msra.gmra.mrb[6].mxu1 %v10478_v55  ;;  %v3693_v55 = vsub.f32 %v9454_v59, %v10732_v61  ;;  %v6759_v59 = vpack.c.bf16 %v3680_v19, %v3673_v20  ;;  %10740 = vst [vmem:[#allocation29_spill] sm:$0xff] %v9575_v29  ;;  %v10744_v20 = vand.u32 4294901760, %v9511_v30 }
 0x1ba   :  { %6750 = vmatpush3.bf16.msra.mxu1 %v6749_v37  ;;  %v10735_v37 = vand.u32 4294901760, %v9486_v10  ;;  %v9580_v25 = vsub.f32 %v9523_v27, %v10741_v57  ;;  %v3588_v57 = vsub.f32 %v9539_v41, %v10323_v26 }
 0x1bb   :  { %6752 = vmatprep.subr.bf16.mxu1 %v6751_v14  ;;  %v10737_v14 = vand.u32 4294901760, %v9492_v22  ;;  %v3694_v47 = vand.u32 4294901760, %v3693_v55  ;;  %v3707_v19 = vsub.f32 %v9511_v30, %v10744_v20 }
 0x1bc   :  { %v9562_v61 = vsub.f32 %v9486_v10, %v10735_v37  ;;  %v3581_v37 = vsub.f32 %v9501_v51, %v10738_v36  ;;  %10742 = vst [vmem:[#allocation37_spill] sm:$0xff] %v9580_v25  ;;  %v10328_v51 = vand.u32 4294901760, %v9575_v29  ;;  %v10327_v20 = vand.u32 4294901760, %v9580_v25 }
 0x1bd   :  { %v3574_v40 = vsub.f32 %v9492_v22, %v10737_v14  ;;  %v6761_v14 = vpack.c.bf16 %v3568_v21, %v3561_v52  ;;  %v3708_v55 = vand.u32 4294901760, %v3707_v19  ;;  %v10745_v21 = vand.u32 4294901760, %v9557_v50 }
 0x1be   :  { %10736 = vst [vmem:[#allocation27_spill] sm:$0xff] %v9562_v61  ;;  %6754 = vmatpush3.bf16.msra.mxu1 %v6753_v24  ;;  %v3700_v24 = vsub.f32 %v9506_v23, %v10743_v49  ;;  %v6763_v49 = vpack.c.bf16 %v3694_v47, %v3687_v48  ;;  %v3582_v23 = vand.u32 4294901760, %v3581_v37  ;;  %v3589_v41 = vand.u32 4294901760, %v3588_v57  ;;  %v3370_v57 = vld [vmem:[%s10080_s3 + $0xf0] sm:$0xff] }
 0x1bf   :  { %6756 = vmatprep.subr.bf16.mxu1 %v6755_v53  ;;  %v3575_v28 = vand.u32 4294901760, %v3574_v40  ;;  %v3595_v53 = vsub.f32 %v9544_v11, %v10326_v1  ;;  %v3714_v52 = vsub.f32 %v9557_v50, %v10745_v21  ;;  %v10746_v40 = vand.u32 4294901760, %v9562_v61 }
 0x1c0   :  { %v3701_v36 = vand.u32 4294901760, %v3700_v24 }
 0x1c1   :  { %v3721_v26 = vsub.f32 %v9562_v61, %v10746_v40  ;;  %v3596_v1 = vand.u32 4294901760, %v3595_v53  ;;  %v6765_v48 = vpack.c.bf16 %v3582_v23, %v3575_v28  ;;  %v3715_v37 = vand.u32 4294901760, %v3714_v52  ;;  %v3371_v23 = vld [vmem:[%s10080_s3 + $0xf8] sm:$0xff] }
 0x1c2   :  { %6758 = vmatpush3.bf16.msra.mxu1 %v6757_v33  ;;  %v3602_v33 = vsub.f32 %v9575_v29, %v10328_v51  ;;  %v6767_v47 = vpack.c.bf16 %v3708_v55, %v3701_v36  ;;  %v3478_v53 = vand.u32 4294901760, %v3370_v57  ;;  %v3481_v21 = vand.u32 4294901760, %v3371_v23  ;;  %v3354_v36 = vld [vmem:[%s10080_s3 + $0x70] sm:$0xff] }
 0x1c3   :  { %6760 = vmatprep.subr.bf16.mxu1 %v6759_v59  ;;  %v3609_v59 = vsub.f32 %v9580_v25, %v10327_v20  ;;  %v3722_v24 = vand.u32 4294901760, %v3721_v26  ;;  %v6769_v19 = vpack.c.bf16 %v3596_v1, %v3589_v41  ;;  %v3355_v1 = vld [vmem:[%s10080_s3 + $0x78] sm:$0xff]  ;;  %v3430_v41 = vand.u32 4294901760, %v3354_v36 }
 0x1c4   :  { %v3433_v55 = vand.u32 4294901760, %v3355_v1  ;;  %v9624_v52 = vsub.f32 %v3370_v57, %v3478_v53  ;;  %v9626_v40 = vsub.f32 %v3371_v23, %v3481_v21  ;;  %v10747_v25 = vand.u32 4294901760, %v9435_v63 }
 0x1c5   :  { %v3610_v28 = vand.u32 4294901760, %v3609_v59  ;;  %v6771_v26 = vpack.c.bf16 %v3722_v24, %v3715_v37  ;;  %v10749_v61 = vand.u32 4294901760, %v9459_v5  ;;  %v10751_v63 = vand.u32 4294901760, %v9481_v32 }
 0x1c6   :  { %6762 = vmatpush3.bf16.msra.mxu1 %v6761_v14  ;;  %v3603_v14 = vand.u32 4294901760, %v3602_v33  ;;  %v9630_v33 = vsub.f32 %v3354_v36, %v3430_v41  ;;  %v9632_v59 = vsub.f32 %v3355_v1, %v3433_v55  ;;  %v10331_v51 = vand.u32 4294901760, %v9624_v52 }
 0x1c7   :  { %6764 = vmatprep.subr.bf16.mxu1 %v6763_v49  ;;  %v10753_v5 = vand.u32 4294901760, %v9518_v0  ;;  %v6779_v32 = vpack.c.bf16 %v9303_v35, %v9298_v13 }
 0x1c8   :  { %v6773_v20 = vpack.c.bf16 %v3610_v28, %v3603_v14  ;;  %v10337_v37 = vand.u32 4294901760, %v9630_v33  ;;  %v10342_v24 = vand.u32 4294901760, %v9632_v59  ;;  %v3728_v57 = vsub.f32 %v9624_v52, %v10331_v51 }
 0x1c9   :  { %v10748_v51 = vand.u32 4294901760, %v9440_v3  ;;  %v10752_v3 = vand.u32 4294901760, %v9486_v10 }
 0x1ca   :  { %6766 = vmatpush3.bf16.msra.mxu1 %v6765_v48  ;;  %v3623_v14 = vsub.f32 %v9632_v59, %v10342_v24  ;;  %v3729_v28 = vand.u32 4294901760, %v3728_v57 }
 0x1cb   :  { %6768 = vmatprep.subr.bf16.mxu1 %v6767_v47  ;;  %v10334_v47 = vand.u32 4294901760, %v9626_v40  ;;  %v9654_v29 = vpack.c.bf16 %v10748_v51, %v10747_v25  ;;  %v9668_v51 = vpack.c.bf16 %v10752_v3, %v10751_v63  ;;  %v9679_v25 = vpack.c.bf16 %v3481_v21, %v3478_v53 }
 0x1cc   :  { %v9622_v49 = vpop.f32.mrb[4].mxu1  ;;  %v4906_v53 = vmul.f32 -1.442695, %v9284_v56  ;;  %v4907_v21 = vmul.f32 -1.442695, %v9288_v42 }
 0x1cd   :  { %v9628_v48 = vpop.f32.mrb[5].mxu1  ;;  %v3735_v23 = vsub.f32 %v9626_v40, %v10334_v47  ;;  %6736 = vmatprep.subr.bf16.mxu0 %v9654_v29 }
 0x1ce   :  { %6770 = vmatpush3.bf16.msra.mxu1 %v6769_v19  ;;  %v3616_v19 = vsub.f32 %v9630_v33, %v10337_v37  ;;  %v10750_v37 = vand.u32 4294901760, %v9464_v60  ;;  %v10754_v60 = vand.u32 4294901760, %v9523_v27  ;;  %v4903_v27 = vmul.f32 -1.442695, %v9277_v6 }
 0x1cf   :  { %6772 = vmatprep.subr.bf16.mxu1 %v6771_v26  ;;  %v3736_v36 = vand.u32 4294901760, %v3735_v23  ;;  %v3624_v26 = vand.u32 4294901760, %v3623_v14 }
 0x1d0   :  { %v3617_v1 = vand.u32 4294901760, %v3616_v19  ;;  %v9660_v50 = vpack.c.bf16 %v10750_v37, %v10749_v61  ;;  %v9675_v61 = vpack.c.bf16 %v10754_v60, %v10753_v5  ;;  %7079 = vpow2.f32 %v4903_v27 }
 0x1d1   :  { %v6775_v47 = vpack.c.bf16 %v3736_v36, %v3729_v28 }
 0x1d2   :  { %6774 = vmatpush3.bf16.msra.mxu1 %v6773_v20  ;;  %v6777_v11 = vpack.c.bf16 %v3624_v26, %v3617_v1  ;;  %6738 = vmatpush3.bf16.msra.mxu0 %v9660_v50  ;;  %v4904_v20 = vmul.f32 -1.442695, %v9280_v46 }
 0x1d3   :  { %6776 = vmatprep.subr.bf16.mxu1 %v6775_v47  ;;  %6740 = vmatprep.subr.bf16.mxu0 %v9668_v51 }
 0x1d4   :  { %7081 = vpow2.f32 %v4904_v20 }
 0x1d5   :  { %7083 = vpow2.f32 %v4906_v53 }
 0x1d6   :  { %6778 = vmatpush3.bf16.msra.mxu1 %v6777_v11  ;;  %6742 = vmatpush3.bf16.msra.mxu0 %v9675_v61  ;;  %v9681_v11 = vpack.c.bf16 %v3433_v55, %v3430_v41  ;;  %7085 = vpow2.f32 %v4907_v21 }
 0x1d7   :  { %6812 = vmatprep.subr.bf16.mxu1 %v9097_v44  ;;  %6744 = vmatprep.subr.bf16.mxu0 %v9679_v25 }
 0x1d8   :  { %10755 = vst [vmem:[#allocation23_spill] sm:$0xff] %v9681_v11 }
 0x1da   :  { %6746 = vmatpush3.bf16.msra.mxu0 %v9681_v11  ;;  %v7080_v41 = vpop.eup %7079 }
 0x1db   :  { %6780 = vmatprep.subr.bf16.mxu0 %v6779_v32  ;;  %v3310_v47 = vadd.f32 1.0, %v7080_v41 }
 0x1dd   :  { %7087 = vrcp.f32 %v3310_v47 }
 0x1de   :  { %v7082_v55 = vpop.eup %7081 }
 0x1df   :  { %v7084_v37 = vpop.eup %7083  ;;  %v3311_v57 = vadd.f32 1.0, %v7082_v55 }
 0x1e0   :  { %v7086_v23 = vpop.eup %7085  ;;  %v3313_v19 = vadd.f32 1.0, %v7084_v37 }
 0x1e1   :  { %7089 = vrcp.f32 %v3311_v57  ;;  %v3314_v14 = vadd.f32 1.0, %v7086_v23 }
 0x1e2   :  { %7091 = vrcp.f32 %v3313_v19 }
 0x1e3   :  { %7093 = vrcp.f32 %v3314_v14 }
 0x1e7   :  { %v7088_v28 = vpop.eup %7087 }
 0x1e8   :  { %v3328_v1 = vmul.f32 %v7088_v28, %v9277_v6 }
 0x1eb   :  { %v7090_v36 = vpop.eup %7089 }
 0x1ec   :  { %v7092_v26 = vpop.eup %7091  ;;  %v3329_v3 = vmul.f32 %v7090_v36, %v9280_v46 }
 0x1ed   :  { %v7094_v5 = vpop.eup %7093  ;;  %v3331_v53 = vmul.f32 %v7092_v26, %v9284_v56 }
 0x1ee   :  { %v3332_v55 = vmul.f32 %v7094_v5, %v9288_v42 }
 0x255   :  { %v2596_v63 = vpop.f32.mrb[4].mxu0 }
 0x256   :  { %v3334_v60 = vmul.f32 %v3328_v1, %v2596_v63  ;;  %v2598_v32 = vpop.f32.mrb[5].mxu0 }
 0x257   :  { %v3335_v27 = vmul.f32 %v3329_v3, %v2598_v32  ;;  %v6781_v3 = vpack.c.bf16 %v9313_v54, %v9308_v12  ;;  %v6783_v32 = vpack.c.bf16 %v9323_v17, %v9318_v58 }
 0x258   :  { %v9697_v20 = vand.u32 4294901760, %v3334_v60 }
 0x259   :  { %v9700_v21 = vand.u32 4294901760, %v3335_v27  ;;  %v2603_v41 = vpop.f32.mrb[6].mxu0 }
 0x25a   :  { %10756 = vst [vmem:[#allocation34_spill] sm:$0xff] %v9697_v20  ;;  %v9704_v47 = vsub.f32 %v3334_v60, %v9697_v20  ;;  %v3337_v6 = vmul.f32 %v3331_v53, %v2603_v41  ;;  %v2605_v37 = vpop.f32.mrb[7].mxu0 }
 0x25b   :  { %v3484_v46 = vsub.f32 %v3335_v27, %v9700_v21  ;;  %v3338_v57 = vmul.f32 %v3332_v55, %v2605_v37  ;;  %3739 = vmatprep.mubr.f32.mxu1 %v9700_v21  ;;  %v6785_v55 = vpack.c.bf16 %v9335_v4, %v9330_v34  ;;  %v6787_v37 = vpack.c.bf16 %v9352_v38, %v9347_v39 }
 0x25c   :  { %v10344_v23 = vand.u32 4294901760, %v9704_v47  ;;  %v9709_v19 = vand.u32 4294901760, %v3337_v6  ;;  %3741 = vmatmul.mubr.f32.vlgmr.msra.gmra.mrb[8].mxu1 %v9697_v20  ;;  %v10775_v20 = vand.u32 4294901760, %v9298_v13  ;;  %v10780_v13 = vand.u32 4294901760, %v9313_v54 }
 0x25d   :  { %v9712_v56 = vand.u32 4294901760, %v3338_v57  ;;  %6814 = vmatpush3.bf16.msra.mxu1 %v9134_v8  ;;  %v3485_v42 = vand.u32 4294901760, %v3484_v46  ;;  %v10784_v54 = vand.u32 4294901760, %v9335_v4  ;;  %v10787_v4 = vand.u32 4294901760, %v9366_v31 }
 0x25e   :  { %10757 = vst [vmem:[#allocation13_spill] sm:$0xff] %v9709_v19  ;;  %v3492_v14 = vsub.f32 %v9704_v47, %v10344_v23  ;;  %v9719_v28 = vsub.f32 %v3337_v6, %v9709_v19  ;;  %6816 = vmatprep.subr.bf16.mxu1 %v9140_v62  ;;  %v10772_v23 = vld [vmem:[#allocation37_spill] sm:$0xff] }
 0x25f   :  { %10758 = vst [vmem:[#allocation14_spill] sm:$0xff] %v9712_v56  ;;  %v9723_v36 = vsub.f32 %v3338_v57, %v9712_v56  ;;  %3746 = vmatprep.mubr.f32.mxu1 %v9712_v56  ;;  %v3486_v1 = vsub.f32 %v3484_v46, %v3485_v42  ;;  %v6789_v57 = vpack.c.bf16 %v9386_v9, %v9366_v31  ;;  %v9843_v31 = vld [vmem:[%s10080_s3 + $0x118] sm:$0xff] }
 0x260   :  { %3748 = vmatmul.mubr.f32.gmra.mrb[10].mxu1 %v9709_v19  ;;  %v10343_v26 = vand.u32 4294901760, %v9719_v28  ;;  %v3493_v60 = vand.u32 4294901760, %v3492_v14  ;;  %v6791_v14 = vpack.c.bf16 %v9404_v45, %v9398_v16 }
 0x261   :  { %6818 = vmatpush3.bf16.msra.mxu1 %v9177_v2  ;;  %3999 = vmatprep.mubr.f32.mxu1 %v3485_v42  ;;  %v3487_v63 = vand.u32 4294901760, %v3486_v1  ;;  %v3500_v5 = vand.u32 4294901760, %v9723_v36  ;;  %v4908_v42 = vmul.f32 -1.442695, %v9622_v49  ;;  %v4905_v1 = vmul.f32 -1.442695, %v9628_v48 }
 0x262   :  { %6820 = vmatprep.subr.bf16.mxu1 %v9184_v43  ;;  %v3507_v27 = vsub.f32 %v9719_v28, %v10343_v26 }
 0x263   :  { %3488 = vmatprep.mubr.f32.mxu0 %v3487_v63  ;;  %v3501_v53 = vsub.f32 %v9723_v36, %v3500_v5  ;;  %v10759_v63 = vld [vmem:[#allocation28_spill] sm:$0xff]  ;;  %7095 = vpow2.f32 %v4908_v42  ;;  %v10767_v42 = vld [vmem:[#allocation26_spill] sm:$0xff] }
 0x264   :  { %3494 = vmatmul.mubr.f32.vlgmr.msra.gmra.mrb[8].mxu0 %v3493_v60  ;;  %v3508_v6 = vand.u32 4294901760, %v3507_v27  ;;  %v10761_v60 = vld [vmem:[#allocation36_spill] sm:$0xff]  ;;  %7097 = vpow2.f32 %v4905_v1  ;;  %v10769_v1 = vld [vmem:[#allocation11_spill] sm:$0xff] }
 0x265   :  { %6782 = vmatpush3.bf16.msra.mxu0 %v6781_v3  ;;  %6822 = vmatpush3.bf16.msra.mxu1 %v9220_v15  ;;  %v3502_v41 = vand.u32 4294901760, %v3501_v53  ;;  %v10760_v3 = vld [vmem:[#allocation15_spill] sm:$0xff]  ;;  %v10763_v53 = vld [vmem:[#allocation21_spill] sm:$0xff] }
 0x266   :  { %6784 = vmatprep.subr.bf16.mxu0 %v6783_v32  ;;  %6824 = vmatprep.subr.bf16.mxu1 %v9227_v18  ;;  %v10762_v32 = vld [vmem:[#allocation19_spill] sm:$0xff] }
 0x267   :  { %3503 = vmatprep.mubr.f32.mxu0 %v3502_v41  ;;  %v6793_v27 = vpack.c.bf16 %v10762_v32, %v10761_v60 }
 0x268   :  { %3509 = vmatmul.mubr.f32.gmra.mrb[10].mxu0 %v3508_v6 }
 0x269   :  { %6786 = vmatpush3.bf16.msra.mxu0 %v6785_v55  ;;  %6826 = vmatpush3.bf16.msra.mxu1 %v9252_v7  ;;  %v10765_v55 = vld [vmem:[#allocation24_spill] sm:$0xff] }
 0x26a   :  { %3883 = vmatprep.mubr.f32.mxu0 %v3484_v46  ;;  %6788 = vmatprep.subr.bf16.mxu0 %v6787_v37  ;;  %v10764_v46 = vld [vmem:[#allocation22_spill] sm:$0xff]  ;;  %v6797_v6 = vpack.c.bf16 %v10765_v55, %v9492_v22  ;;  %v10766_v37 = vld [vmem:[#allocation25_spill] sm:$0xff] }
 0x26b   :  { %6828 = vmatprep.subr.bf16.mxu1 %v10759_v63  ;;  %v6795_v41 = vpack.c.bf16 %v10764_v46, %v10763_v53 }
 0x26d   :  { %6790 = vmatpush3.bf16.msra.mxu0 %v6789_v57  ;;  %6830 = vmatpush3.bf16.msra.mxu1 %v10760_v3  ;;  %v6799_v57 = vpack.c.bf16 %v9511_v30, %v10766_v37  ;;  %v7096_v26 = vpop.eup %7095 }
 0x26e   :  { %6792 = vmatprep.subr.bf16.mxu0 %v6791_v14  ;;  %6832 = vmatprep.subr.bf16.mxu1 %v9654_v29  ;;  %v10768_v14 = vld [vmem:[#allocation6_spill] sm:$0xff]  ;;  %v7098_v10 = vpop.eup %7097 }
 0x26f   :  { %v6801_v24 = vpack.c.bf16 %v10768_v14, %v10767_v42  ;;  %v3312_v56 = vadd.f32 1.0, %v7098_v10  ;;  %v10778_v10 = vpack.c.bf16 %v9632_v59, %v9630_v33 }
 0x271   :  { %6794 = vmatpush3.bf16.msra.mxu0 %v6793_v27  ;;  %6834 = vmatpush3.bf16.msra.mxu1 %v9660_v50  ;;  %v10770_v27 = vld [vmem:[#allocation27_spill] sm:$0xff] }
 0x272   :  { %6796 = vmatprep.subr.bf16.mxu0 %v6795_v41  ;;  %6836 = vmatprep.subr.bf16.mxu1 %v9668_v51  ;;  %v6803_v0 = vpack.c.bf16 %v10770_v27, %v10769_v1  ;;  %v10771_v41 = vld [vmem:[#allocation29_spill] sm:$0xff] }
 0x273   :  { %v6805_v19 = vpack.c.bf16 %v10772_v23, %v10771_v41 }
 0x275   :  { %6798 = vmatpush3.bf16.msra.mxu0 %v6797_v6  ;;  %6838 = vmatpush3.bf16.msra.mxu1 %v9675_v61  ;;  %v3315_v6 = vadd.f32 1.0, %v7096_v26  ;;  %v10791_v26 = vand.u32 4294901760, %v10761_v60  ;;  %v9865_v60 = vld [vmem:[%s10080_s3 + $0x120] sm:$0xff] }
 0x276   :  { %6800 = vmatprep.subr.bf16.mxu0 %v6799_v57  ;;  %6840 = vmatprep.subr.bf16.mxu1 %v9679_v25  ;;  %v10773_v57 = vand.u32 4294901760, %v9704_v47 }
 0x277   :  { %7099 = vrcp.f32 %v3315_v6 }
 0x278   :  { %7101 = vrcp.f32 %v3312_v56  ;;  %v10790_v56 = vand.u32 4294901760, %v9404_v45 }
 0x279   :  { %6802 = vmatpush3.bf16.msra.mxu0 %v6801_v24  ;;  %6842 = vmatpush3.bf16.msra.mxu1 %v9681_v11  ;;  %v10774_v24 = vpack.c.bf16 %v9626_v40, %v9624_v52  ;;  %v10776_v11 = vand.u32 4294901760, %v9303_v35  ;;  %v10782_v35 = vand.u32 4294901760, %v9323_v17 }
 0x27a   :  { %6804 = vmatprep.subr.bf16.mxu0 %v6803_v0  ;;  %6876 = vmatprep.subr.bf16.mxu1 %v9097_v44  ;;  %v10777_v44 = vand.u32 4294901760, %v9719_v28 }
 0x27b   :  { %v6843_v0 = vpack.c.bf16 %v10776_v11, %v10775_v20 }
 0x27c   :  { %4003 = vmatmul.mubr.f32.vlgmr.msra.gmra.mrb[12].mxu1 %v10773_v57 }
 0x27d   :  { %6806 = vmatpush3.bf16.msra.mxu0 %v6805_v19  ;;  %4010 = vmatprep.mubr.f32.mxu1 %v3500_v5  ;;  %v10792_v5 = vand.u32 4294901760, %v10762_v32 }
 0x27e   :  { %6878 = vmatpush3.bf16.msra.mxu1 %v9134_v8  ;;  %6808 = vmatprep.subr.bf16.mxu0 %v10774_v24  ;;  %v10779_v8 = vand.u32 4294901760, %v9308_v12  ;;  %v10783_v12 = vand.u32 4294901760, %v9330_v34  ;;  %v9823_v34 = vld [vmem:[%s10080_s3 + $0x108] sm:$0xff]  ;;  %v4315_v24 = vand.u32 4294901760, %v9843_v31 }
 0x27f   :  { %6880 = vmatprep.subr.bf16.mxu1 %v9140_v62  ;;  %v10781_v62 = vand.u32 4294901760, %v9318_v58  ;;  %v10786_v58 = vand.u32 4294901760, %v9352_v38  ;;  %v6857_v6 = vpack.c.bf16 %v10792_v5, %v10791_v26 }
 0x280   :  { %4014 = vmatmul.mubr.f32.gmra.mrb[14].mxu1 %v10777_v44  ;;  %v6845_v19 = vpack.c.bf16 %v10780_v13, %v10779_v8  ;;  %v6849_v20 = vpack.c.bf16 %v10784_v54, %v10783_v12  ;;  %v10796_v8 = vand.u32 4294901760, %v10765_v55  ;;  %v10798_v12 = vand.u32 4294901760, %v9511_v30  ;;  %v9909_v30 = vld [vmem:[%s10080_s3 + $0x138] sm:$0xff] }
 0x281   :  { %6810 = vmatpush3.bf16.msra.mxu0 %v10778_v10  ;;  %4291 = vmatprep.mubr.f32.mxu1 %v9700_v21  ;;  %v6847_v11 = vpack.c.bf16 %v10782_v35, %v10781_v62  ;;  %v9887_v62 = vsub.f32 %v9843_v31, %v4315_v24  ;;  %v10805_v31 = vand.u32 4294901760, %v9624_v52 }
 0x282   :  { %6882 = vmatpush3.bf16.msra.mxu1 %v9177_v2  ;;  %6844 = vmatprep.subr.bf16.mxu0 %v6843_v0  ;;  %v10785_v2 = vand.u32 4294901760, %v9347_v39 }
 0x283   :  { %6884 = vmatprep.subr.bf16.mxu1 %v9184_v43  ;;  %v9818_v43 = vld [vmem:[%s10080_s3 + $0x100] sm:$0xff] }
 0x284   :  { %3886 = vmatmul.mubr.f32.vlgmr.msra.gmra.mrb[12].mxu0 %v9704_v47  ;;  %v6851_v17 = vpack.c.bf16 %v10786_v58, %v10785_v2  ;;  %v10789_v47 = vand.u32 4294901760, %v9398_v16  ;;  %v10800_v58 = vand.u32 4294901760, %v10768_v14 }
 0x285   :  { %3892 = vmatprep.mubr.f32.mxu0 %v9723_v36  ;;  %6846 = vmatpush3.bf16.msra.mxu0 %v6845_v19  ;;  %v9838_v36 = vld [vmem:[%s10080_s3 + $0x110] sm:$0xff] }
 0x286   :  { %6886 = vmatpush3.bf16.msra.mxu1 %v9220_v15  ;;  %6848 = vmatprep.subr.bf16.mxu0 %v6847_v11  ;;  %v7100_v15 = vpop.eup %7099  ;;  %v4312_v57 = vand.u32 4294901760, %v9838_v36  ;;  %v10797_v11 = vand.u32 4294901760, %v10766_v37 }
 0x287   :  { %6888 = vmatprep.subr.bf16.mxu1 %v9227_v18  ;;  %v10788_v18 = vand.u32 4294901760, %v9386_v9  ;;  %v7102_v38 = vpop.eup %7101  ;;  %v4309_v9 = vand.u32 4294901760, %v9823_v34  ;;  %v3333_v16 = vmul.f32 %v7100_v15, %v9622_v49  ;;  %v10793_v49 = vand.u32 4294901760, %v10763_v53 }
 0x288   :  { %3895 = vmatmul.mubr.f32.gmra.mrb[14].mxu0 %v9719_v28  ;;  %v6855_v28 = vpack.c.bf16 %v10790_v56, %v10789_v47  ;;  %v3330_v45 = vmul.f32 %v7102_v38, %v9628_v48  ;;  %v10794_v48 = vand.u32 4294901760, %v10764_v46  ;;  %v9884_v19 = vsub.f32 %v9838_v36, %v4312_v57 }
 0x289   :  { %6850 = vmatpush3.bf16.msra.mxu0 %v6849_v20  ;;  %4180 = vmatprep.mubr.f32.mxu0 %v9700_v21  ;;  %v6853_v39 = vpack.c.bf16 %v10788_v18, %v10787_v4  ;;  %v9876_v53 = vsub.f32 %v9823_v34, %v4309_v9  ;;  %v6863_v54 = vpack.c.bf16 %v10798_v12, %v10797_v11  ;;  %v10802_v34 = vand.u32 4294901760, %v10770_v27  ;;  %v10812_v12 = vld [vmem:[#allocation13_spill] sm:$0xff] }
 0x28a   :  { %6890 = vmatpush3.bf16.msra.mxu1 %v9252_v7  ;;  %6852 = vmatprep.subr.bf16.mxu0 %v6851_v17  ;;  %v4306_v7 = vand.u32 4294901760, %v9818_v43  ;;  %v6859_v44 = vpack.c.bf16 %v10794_v48, %v10793_v49  ;;  %v4415_v4 = vand.u32 4294901760, %v9884_v19  ;;  %v4422_v18 = vand.u32 4294901760, %v9887_v62  ;;  %v10808_v49 = vld [vmem:[#allocation34_spill] sm:$0xff] }
 0x28b   :  { %6892 = vmatprep.subr.bf16.mxu1 %v10759_v63  ;;  %v4408_v2 = vand.u32 4294901760, %v9876_v53  ;;  %v4327_v38 = vand.u32 4294901760, %v9909_v30  ;;  %v10804_v36 = vand.u32 4294901760, %v10772_v23  ;;  %v9970_v5 = vpack.c.bf16 %v4315_v24, %v4312_v57 }
 0x28c   :  { %v5832_v21 = vpop.f32.mrb[6].mxu1  ;;  %v9873_v32 = vsub.f32 %v9818_v43, %v4306_v7  ;;  %v10801_v43 = vand.u32 4294901760, %v10769_v1  ;;  %v9934_v1 = vpack.c.bf16 %v4309_v9, %v4306_v7  ;;  %v10806_v7 = vand.u32 4294901760, %v9626_v40 }
 0x28d   :  { %6854 = vmatpush3.bf16.msra.mxu0 %v6853_v39  ;;  %v3339_v63 = vmul.f32 %v5832_v21, %v3333_v16  ;;  %v3282_v0 = vpop.f32.mrb[7].mxu1  ;;  %v4416_v16 = vsub.f32 %v9884_v19, %v4415_v4  ;;  %v10807_v21 = vld [vmem:[#allocation23_spill] sm:$0xff]  ;;  %v9965_v40 = vsub.f32 %v9909_v30, %v4327_v38  ;;  %v10809_v48 = vand.u32 4294901760, %v9630_v33 }
 0x28e   :  { %6894 = vmatpush3.bf16.msra.mxu1 %v10760_v3  ;;  %6856 = vmatprep.subr.bf16.mxu0 %v6855_v28  ;;  %v3336_v10 = vmul.f32 %v3330_v45, %v3282_v0  ;;  %v9870_v3 = vld [vmem:[%s10080_s3 + $0x128] sm:$0xff]  ;;  %v4401_v20 = vand.u32 4294901760, %v9873_v32  ;;  %v6867_v15 = vpack.c.bf16 %v10802_v34, %v10801_v43  ;;  %v10803_v28 = vand.u32 4294901760, %v10771_v41 }
 0x28f   :  { %6896 = vmatprep.subr.bf16.mxu1 %v9654_v29  ;;  %v10795_v29 = vand.u32 4294901760, %v9492_v22  ;;  %v4318_v22 = vand.u32 4294901760, %v9865_v60  ;;  %v4321_v55 = vand.u32 4294901760, %v9870_v3  ;;  %v3385_v47 = vsel %vm3380_vm0, %v3339_v63, 0 }
 0x290   :  { %v3382_v46 = vsel %vm3380_vm0, %v3336_v10, 0  ;;  %v4402_v27 = vsub.f32 %v9873_v32, %v4401_v20  ;;  %v6871_v9 = vpack.c.bf16 %v10806_v7, %v10805_v31  ;;  %v4423_v45 = vsub.f32 %v9887_v62, %v4422_v18 }
 0x291   :  { %6858 = vmatpush3.bf16.msra.mxu0 %v6857_v6  ;;  %v6861_v13 = vpack.c.bf16 %v10796_v8, %v10795_v29  ;;  %v9889_v35 = vand.u32 4294901760, %v3382_v46  ;;  %v9931_v14 = vsub.f32 %v9870_v3, %v4321_v55  ;;  %v9967_v26 = vand.u32 4294901760, %v3385_v47 }
 0x292   :  { %6898 = vmatpush3.bf16.msra.mxu1 %v9660_v50  ;;  %6860 = vmatprep.subr.bf16.mxu0 %v6859_v44  ;;  %v9904_v50 = vld [vmem:[%s10080_s3 + $0x130] sm:$0xff]  ;;  %v4403_v6 = vand.u32 4294901760, %v4402_v27  ;;  %v10810_v44 = vand.u32 4294901760, %v9632_v59  ;;  %v4424_v3 = vand.u32 4294901760, %v4423_v45  ;;  %v4450_v33 = vand.u32 4294901760, %v9965_v40  ;;  %s7128_s3 = smov [#allocation2]  }
 0x293   :  { %6900 = vmatprep.subr.bf16.mxu1 %v9668_v51  ;;  %v9912_v37 = vsub.f32 %v3382_v46, %v9889_v35  ;;  %v10799_v51 = vand.u32 4294901760, %v10767_v42  ;;  %v4324_v39 = vand.u32 4294901760, %v9904_v50  ;;  %v9928_v42 = vsub.f32 %v9865_v60, %v4318_v22  ;;  %v10811_v46 = vld [vmem:[#allocation14_spill] sm:$0xff]  ;;  %s4892_s14 = sshll.u32 %s7128_s3, 4  ;;  %s4893_s14 = int_to_ptr.vmem [resolvable:$true] %s4892_s14 }
 0x294   :  { %v4436_v23 = vand.u32 4294901760, %v9931_v14  ;;  %v6873_v10 = vpack.c.bf16 %v10810_v44, %v10809_v48  ;;  %v4417_v60 = vand.u32 4294901760, %v4416_v16  ;;  %v9991_v59 = vsub.f32 %v3385_v47, %v9967_v26  ;;  %s7103_s15 = scalar_lea.vmem %s4893_s14, 256  ;;  %p7108_p1 = scmp.lt.s32.totalorder %s4893_s14, %s4893_s14 }
 0x295   :  { %6862 = vmatpush3.bf16.msra.mxu0 %v6861_v13  ;;  %v6865_v17 = vpack.c.bf16 %v10800_v58, %v10799_v51  ;;  %v4380_v56 = vand.u32 4294901760, %v9912_v37  ;;  %v4429_v41 = vand.u32 4294901760, %v9928_v42  ;;  %v9962_v52 = vsub.f32 %v9904_v50, %v4324_v39  ;;  %p7104_p0 = scmp.ne.s32.totalorder %s4893_s14, %s7103_s15  ;;  %p7109_p2 = scmp.lt.s32.totalorder %s7103_s15, %s7103_s15 }
 0x296   :  { %6902 = vmatpush3.bf16.msra.mxu1 %v9675_v61  ;;  %6864 = vmatprep.subr.bf16.mxu0 %v6863_v54  ;;  %v4409_v61 = vsub.f32 %v9876_v53, %v4408_v2  ;;  %v4437_v24 = vsub.f32 %v9931_v14, %v4436_v23  ;;  %v9994_v8 = vpack.c.bf16 %v4321_v55, %v4318_v22  ;;  %v4390_v55 = vand.u32 4294901760, %v9991_v59 }
 0x297   :  { %6904 = vmatprep.subr.bf16.mxu1 %v9679_v25  ;;  %v6869_v25 = vpack.c.bf16 %v10804_v36, %v10803_v28  ;;  %v4381_v0 = vsub.f32 %v9912_v37, %v4380_v56  ;;  %v4430_v57 = vsub.f32 %v9928_v42, %v4429_v41  ;;  %v4443_v29 = vand.u32 4294901760, %v9962_v52  ;;  %p7110_p3 = por %p7109_p2, %p7108_p1 }
 0x298   :  { %v4410_v63 = vand.u32 4294901760, %v4409_v61  ;;  %v6927_v54 = vpack.c.bf16 %v4424_v3, %v4417_v60  ;;  %v4438_v30 = vand.u32 4294901760, %v4437_v24  ;;  %v4451_v22 = vsub.f32 %v9965_v40, %v4450_v33 }
 0x299   :  { %6866 = vmatpush3.bf16.msra.mxu0 %v6865_v17  ;;  %v4382_v11 = vand.u32 4294901760, %v4381_v0  ;;  %v4431_v50 = vand.u32 4294901760, %v4430_v57  ;;  %v4444_v51 = vsub.f32 %v9962_v52, %v4443_v29  ;;  %v10006_v58 = vpack.c.bf16 %v4327_v38, %v4324_v39  ;;  %p7111_p4 = pnand %p7110_p3, %p7104_p0 }
 0x29a   :  { %6906 = vmatpush3.bf16.msra.mxu1 %v10807_v21  ;;  %6868 = vmatprep.subr.bf16.mxu0 %v6867_v15  ;;  %v6923_v13 = vpack.c.bf16 %v4410_v63, %v4403_v6  ;;  %v4452_v34 = vand.u32 4294901760, %v4451_v22  ;;  %v4391_v15 = vsub.f32 %v9991_v59, %v4390_v55  ;;  %v6939_v27 = vpack.c.bf16 %v9876_v53, %v9873_v32 }
 0x29b   :  { %6908 = vmatprep.subr.bf16.mxu1 %v9934_v1  ;;  %v6931_v17 = vpack.c.bf16 %v4438_v30, %v4431_v50  ;;  %v4445_v43 = vand.u32 4294901760, %v4444_v51  ;;  %v6943_v61 = vpack.c.bf16 %v9887_v62, %v9884_v19  ;;  %v6947_v47 = vpack.c.bf16 %v9931_v14, %v9928_v42 }
 0x29c   :  { %v4392_v38 = vand.u32 4294901760, %v4391_v15  ;;  %v6951_v28 = vpack.c.bf16 %v9965_v40, %v9962_v52  ;;  %v6971_v36 = vpack.c.bf16 %v4408_v2, %v4401_v20  ;;  %v6979_v32 = vpack.c.bf16 %v4436_v23, %v4429_v41 }
 0x29d   :  { %4293 = vmatmul.mubr.f32.vlgmr.msra.gmra.mrb[16].mxu1 %v10808_v49  ;;  %6870 = vmatpush3.bf16.msra.mxu0 %v6869_v25  ;;  %v6935_v39 = vpack.c.bf16 %v4452_v34, %v4445_v43  ;;  %v6983_v53 = vpack.c.bf16 %v4450_v33, %v4443_v29 }
 0x29e   :  { %4298 = vmatprep.mubr.f32.mxu1 %v10811_v46  ;;  %6910 = vmatpush3.bf16.msra.mxu1 %v9934_v1 }
 0x29f   :  { %6872 = vmatprep.subr.bf16.mxu0 %v6871_v9  ;;  %6912 = vmatprep.subr.bf16.mxu1 %v9970_v5 }
 0x2a1   :  { %4300 = vmatmul.mubr.f32.gmra.mrb[18].mxu1 %v10812_v12  ;;  %6874 = vmatpush3.bf16.msra.mxu0 %v6873_v10 }
 0x2a2   :  { %6914 = vmatpush3.bf16.msra.mxu1 %v9970_v5  ;;  %5849 = vmatprep.mubr.f32.mxu1 %v4382_v11 }
 0x2a3   :  { %6916 = vmatprep.subr.bf16.mxu1 %v9994_v8  ;;  %6924 = vmatprep.subr.bf16.mxu0 %v6923_v13 }
 0x2a4   :  { %4182 = vmatmul.mubr.f32.vlgmr.msra.gmra.mrb[16].mxu0 %v10808_v49 }
 0x2a5   :  { %4187 = vmatprep.mubr.f32.mxu0 %v10811_v46  ;;  %6926 = vmatpush3.bf16.msra.mxu0 %v6923_v13 }
 0x2a6   :  { %6918 = vmatpush3.bf16.msra.mxu1 %v9994_v8  ;;  %6928 = vmatprep.subr.bf16.mxu0 %v6927_v54 }
 0x2a7   :  { %6920 = vmatprep.subr.bf16.mxu1 %v10006_v58 }
 0x2a8   :  { %4189 = vmatmul.mubr.f32.gmra.mrb[18].mxu0 %v10812_v12 }
 0x2a9   :  { %6930 = vmatpush3.bf16.msra.mxu0 %v6927_v54  ;;  %5868 = vmatprep.mubr.f32.mxu0 %v9889_v35 }
 0x2aa   :  { %6922 = vmatpush3.bf16.msra.mxu1 %v10006_v58  ;;  %6932 = vmatprep.subr.bf16.mxu0 %v6931_v17 }
 0x2ad   :  { %5850 = vmatmul.mubr.f32.vlgmr.msra.gmra.mrb[20].mxu1 %v4392_v38  ;;  %6934 = vmatpush3.bf16.msra.mxu0 %v6931_v17 }
 0x2ae   :  { %6936 = vmatprep.subr.bf16.mxu0 %v6935_v39 }
 0x2b1   :  { %6938 = vmatpush3.bf16.msra.mxu0 %v6935_v39 }
 0x2b2   :  { %6940 = vmatprep.subr.bf16.mxu0 %v6939_v27 }
 0x2b4   :  { %5869 = vmatmul.mubr.f32.vlgmr.msra.gmra.mrb[20].mxu0 %v9967_v26 }
 0x2b5   :  { %6942 = vmatpush3.bf16.msra.mxu0 %v6939_v27  ;;  %5887 = vmatprep.mubr.f32.mxu0 %v9912_v37  ;;  %v6975_v37 = vpack.c.bf16 %v4422_v18, %v4415_v4 }
 0x2b6   :  { %6944 = vmatprep.subr.bf16.mxu0 %v6943_v61 }
 0x2b9   :  { %6946 = vmatpush3.bf16.msra.mxu0 %v6943_v61 }
 0x2ba   :  { %6948 = vmatprep.subr.bf16.mxu0 %v6947_v47 }
 0x2bd   :  { %6950 = vmatpush3.bf16.msra.mxu0 %v6947_v47 }
 0x2be   :  { %6952 = vmatprep.subr.bf16.mxu0 %v6951_v28 }
 0x2c1   :  { %6954 = vmatpush3.bf16.msra.mxu0 %v6951_v28 }
 0x2c2   :  { %6956 = vmatprep.subr.bf16.mxu0 %v9934_v1 }
 0x2c4   :  { %5888 = vmatmul.mubr.f32.vlgmr.msra.gmra.mrb[20].mxu0 %v9991_v59 }
 0x2c5   :  { %6958 = vmatpush3.bf16.msra.mxu0 %v9934_v1  ;;  %5906 = vmatprep.mubr.f32.mxu0 %v4380_v56 }
 0x2c6   :  { %6960 = vmatprep.subr.bf16.mxu0 %v9970_v5 }
 0x2c9   :  { %6962 = vmatpush3.bf16.msra.mxu0 %v9970_v5 }
 0x2ca   :  { %6964 = vmatprep.subr.bf16.mxu0 %v9994_v8 }
 0x2cd   :  { %6966 = vmatpush3.bf16.msra.mxu0 %v9994_v8 }
 0x2ce   :  { %6968 = vmatprep.subr.bf16.mxu0 %v10006_v58 }
 0x2d1   :  { %6970 = vmatpush3.bf16.msra.mxu0 %v10006_v58 }
 0x2d2   :  { %6972 = vmatprep.subr.bf16.mxu0 %v6971_v36 }
 0x2d4   :  { %5907 = vmatmul.mubr.f32.vlgmr.msra.gmra.mrb[20].mxu0 %v4390_v55 }
 0x2d5   :  { %6974 = vmatpush3.bf16.msra.mxu0 %v6971_v36  ;;  %5925 = vmatprep.mubr.f32.mxu0 %v9889_v35 }
 0x2d6   :  { %6976 = vmatprep.subr.bf16.mxu0 %v6975_v37 }
 0x2d9   :  { %6978 = vmatpush3.bf16.msra.mxu0 %v6975_v37 }
 0x2da   :  { %6980 = vmatprep.subr.bf16.mxu0 %v6979_v32 }
 0x2dd   :  { %6982 = vmatpush3.bf16.msra.mxu0 %v6979_v32 }
 0x2de   :  { %6984 = vmatprep.subr.bf16.mxu0 %v6983_v53 }
 0x2e1   :  { %6986 = vmatpush3.bf16.msra.mxu0 %v6983_v53 }
 0x2e2   :  { %6988 = vmatprep.subr.bf16.mxu0 %v9934_v1 }
 0x2e4   :  { %5926 = vmatmul.mubr.f32.vlgmr.msra.gmra.mrb[20].mxu0 %v9967_v26 }
 0x2e5   :  { %6990 = vmatpush3.bf16.msra.mxu0 %v9934_v1  ;;  %5944 = vmatprep.mubr.f32.mxu0 %v9889_v35 }
 0x2e6   :  { %6992 = vmatprep.subr.bf16.mxu0 %v9970_v5 }
 0x2e9   :  { %6994 = vmatpush3.bf16.msra.mxu0 %v9970_v5 }
 0x2ea   :  { %6996 = vmatprep.subr.bf16.mxu0 %v9994_v8 }
 0x2ed   :  { %6998 = vmatpush3.bf16.msra.mxu0 %v9994_v8 }
 0x2ee   :  { %7000 = vmatprep.subr.bf16.mxu0 %v10006_v58 }
 0x2f1   :  { %7002 = vmatpush3.bf16.msra.mxu0 %v10006_v58 }
 0x2f4   :  { %5945 = vmatmul.mubr.f32.vlgmr.msra.gmra.mrb[20].mxu0 %v9967_v26 }
 0x32f   :  { %v5195_v19 = vpop.f32.mrb[8].mxu1 }
 0x330   :  { %v5196_v62 = vpop.f32.mrb[9].mxu1 }
 0x331   :  { %v5197_v20 = vadd.f32 %v5196_v62, %v5195_v19 }
 0x333   :  { %v5198_v2 = vpop.f32.mrb[10].mxu1 }
 0x334   :  { %v5199_v4 = vpop.f32.mrb[11].mxu1 }
 0x335   :  { %v5200_v35 = vadd.f32 %v5199_v4, %v5198_v2 }
 0x337   :  { %v5157_v18 = vpop.f32.mrb[8].mxu0 }
 0x338   :  { %v5158_v42 = vpop.f32.mrb[9].mxu0 }
 0x339   :  { %v5159_v14 = vadd.f32 %v5158_v42, %v5157_v18 }
 0x33b   :  { %v3743_v1 = vadd.f32 %v5197_v20, %v5159_v14  ;;  %v5160_v56 = vpop.f32.mrb[10].mxu0 }
 0x33c   :  { %v5161_v25 = vpop.f32.mrb[11].mxu0 }
 0x33d   :  { %v5162_v31 = vadd.f32 %v5161_v25, %v5160_v56 }
 0x33f   :  { %v3750_v7 = vadd.f32 %v5200_v35, %v5162_v31 }
 0x34f   :  { %v5271_v9 = vpop.f32.mrb[12].mxu1 }
 0x350   :  { %v5272_v16 = vpop.f32.mrb[13].mxu1 }
 0x351   :  { %v5273_v45 = vadd.f32 %v5272_v16, %v5271_v9 }
 0x353   :  { %v5274_v21 = vpop.f32.mrb[14].mxu1 }
 0x354   :  { %v5275_v41 = vpop.f32.mrb[15].mxu1 }
 0x355   :  { %v5276_v23 = vadd.f32 %v5275_v41, %v5274_v21 }
 0x357   :  { %v5233_v52 = vpop.f32.mrb[12].mxu0 }
 0x358   :  { %v5234_v40 = vpop.f32.mrb[13].mxu0 }
 0x359   :  { %v5235_v26 = vadd.f32 %v5234_v40, %v5233_v52 }
 0x35b   :  { %v3888_v5 = vadd.f32 %v5235_v26, %v3743_v1  ;;  %v5236_v6 = vpop.f32.mrb[14].mxu0 }
 0x35c   :  { %v5237_v63 = vpop.f32.mrb[15].mxu0 }
 0x35d   :  { %v5238_v0 = vadd.f32 %v5237_v63, %v5236_v6  ;;  %v4005_v49 = vadd.f32 %v5273_v45, %v3888_v5 }
 0x35f   :  { %v3897_v48 = vadd.f32 %v5238_v0, %v3750_v7 }
 0x361   :  { %v4016_v44 = vadd.f32 %v5276_v23, %v3897_v48 }
 0x370   :  { %v5347_v10 = vpop.f32.mrb[16].mxu1 }
 0x371   :  { %v5348_v60 = vpop.f32.mrb[17].mxu1 }
 0x372   :  { %v5349_v3 = vadd.f32 %v5348_v60, %v5347_v10 }
 0x374   :  { %v5350_v46 = vpop.f32.mrb[18].mxu1 }
 0x375   :  { %v5351_v57 = vpop.f32.mrb[19].mxu1 }
 0x376   :  { %v5352_v24 = vadd.f32 %v5351_v57, %v5350_v46 }
 0x377   :  { %v5309_v29 = vpop.f32.mrb[16].mxu0 }
 0x378   :  { %v5310_v33 = vpop.f32.mrb[17].mxu0 }
 0x379   :  { %v5311_v59 = vadd.f32 %v5310_v33, %v5309_v29 }
 0x37b   :  { %v4184_v8 = vadd.f32 %v5311_v59, %v4005_v49  ;;  %v5312_v13 = vpop.f32.mrb[18].mxu0 }
 0x37c   :  { %v5313_v11 = vpop.f32.mrb[19].mxu0 }
 0x37d   :  { %v5314_v12 = vadd.f32 %v5313_v11, %v5312_v13  ;;  %v4295_v54 = vadd.f32 %v5349_v3, %v4184_v8 }
 0x37f   :  { %v4191_v50 = vadd.f32 %v5314_v12, %v4016_v44 }
 0x380   :  { %v5851_v30 = vpop.f32.mrb[20].mxu1 }
 0x381   :  { %v4302_v51 = vadd.f32 %v5352_v24, %v4191_v50  ;;  %v4384_v22 = vpop.f32.mrb[21].mxu1 }
 0x382   :  { %v4385_v55 = vadd.f32 %v4384_v22, %v4295_v54 }
 0x383   :  { %v4395_v58 = vadd.f32 %v5851_v30, %v4302_v51 }
 0x3c7   :  { %v5946_v17 = vpop.f32.mrb[20].mxu0 }
 0x3c8   :  { %v7008_v43 = vadd.f32 %v5946_v17, %v4395_v58  ;;  %v4875_v34 = vpop.f32.mrb[21].mxu0 }
 0x3c9   :  { %v7010_v15 = vadd.f32 %v4875_v34, %v4385_v55 }
 0x3ca   :  { %4886 = vst [vmem:[#allocation2 + $0x8] sm:$0xff] %v7008_v43 }
 0x3cb   :  { %4885 = vst [vmem:[#allocation2] sm:$0xff] %v7010_v15 }
 0x3cc   :  { %7114 = shalt.err (!%p7111_p4)
}
 0x3cd   :  { %s7115_s18 = scalar_lea.hbm %s10081_s4, 256 }
 0x3ce   :  { %p7116_p5 = scmp.ne.s32.totalorder %s10081_s4, %s7115_s18  ;;  %p7119_p6 = scmp.lt.u32.totalorder %s7115_s18, %s10081_s4 }
 0x3d0   :  { %p7121_p7 = pnand %p7119_p6, %p7116_p5 }
 0x3d2   :  { %7124 = shalt.err (!%p7121_p7)
}
 0x3d3   :  { %s7129_s22 = smov 128   ;;  %s7130_s23 = smov 8  }
 0x3d4   :  { %4898 = dma.vmem_to_hbm [thread:$0]  %s4893_s14, 256, %s10081_s4, [#allocation3], %s7129_s22, %s7129_s22, %s7130_s23  }
 0x3d5   :  { %7125 = dma.done.wait [#allocation3], 256  }
 0x3d6   :  { %7126 = vsyncadd [#allocation3], 4294967040 }
 0x3d7   :  { %4902 = vsyncpa [#allocation3], 1 }

</bundles_post_ra>
